<compile_context>
chip_gen: v5e
topology: v5e:2x2
jax: 0.10.0
libtpu: 0.0.40
codegen_flags: <defaults>
</compile_context>

<pallas_src>
import functools

import jax
import jax.numpy as jnp
from jax.experimental import pallas as pl
from jax.experimental.pallas import tpu as pltpu

NZ = 100
NZ_PAD = 128        # layer-1 K padded to a full 128-lane / MXU-aligned tile
EPS = 1e-5          # nn.BatchNorm2d default eps
LANE = 128          # lane-dense output-channel padding
P = 4               # sub-pixel phases of a stride-2 transposed conv
FUSED_VMEM_BUDGET = 20 * 1024 * 1024   # resident-y budget (safe on v7x 64MiB)


def _round_up(x, m):
    return (x + m - 1) // m * m


def _pick_tm(m):
    """Row-tile: multiple of 16 (bf16 sublane packing), big to amortize grid steps."""
    return min(1024, _round_up(m, 16))


# ----------------------------------------------------------------------------
# Pallas kernels
# ----------------------------------------------------------------------------
def _matmul_act_kernel(a_ref, w_ref, y_ref, *, act):
    """(TM, K) @ (K, Cpad) on the MXU (bf16 in, f32 acc) + optional ReLU."""
    y = jnp.dot(a_ref[0], w_ref[0], preferred_element_type=jnp.float32)
    if act == "relu":
        y = jnp.maximum(y, 0.0)
    y_ref[0] = y.astype(y_ref.dtype)


def _fused_convt_bn_relu_kernel(a_ref, w_ref, g_ref, b_ref, o_ref,
                                y_scr, stats_scr, ss_scr, *, count, n_mt):
    """One ConvT(+BN+ReLU) layer in a single pallas_call.

    Grid = (pass, phase, m_tile), iterated pass-major:
      pass 0: y = A @ W into a VMEM-resident bf16 scratch + accumulate
              per-channel sum / sum-of-squares across all phases & M tiles.
      pass 1: compute scale/shift once from the global batch statistics,
              normalize each resident tile, ReLU, write bf16 output.
    """
    s = pl.program_id(0)           # 0 = matmul + stats, 1 = normalize + write
    ph = pl.program_id(1)
    i = pl.program_id(2)
    j = ph * n_mt + i              # flat (phase, m-tile) slot in y_scr

    @pl.when(s == 0)
    def _compute():
        @pl.when((ph == 0) & (i == 0))
        def _init():
            stats_scr[...] = jnp.zeros_like(stats_scr)

        y = jnp.dot(a_ref[0], w_ref[0], preferred_element_type=jnp.float32)
        y_scr[j] = y.astype(y_scr.dtype)
        stats_scr[...] += jnp.concatenate(
            [jnp.sum(y, axis=0, keepdims=True),
             jnp.sum(y * y, axis=0, keepdims=True)], axis=0)

    @pl.when(s == 1)
    def _normalize():
        @pl.when((ph == 0) & (i == 0))
        def _scale_shift():                      # once per layer (not per tile)
            inv_n = 1.0 / count
            mean = stats_scr[0:1, :] * inv_n
            var = jnp.maximum(stats_scr[1:2, :] * inv_n - mean * mean, 0.0)
            scale = jax.lax.rsqrt(var + EPS) * g_ref[...]
            shift = b_ref[...] - mean * scale
            ss_scr[...] = jnp.concatenate([scale, shift], axis=0)

        y = y_scr[j].astype(jnp.float32)
        y = y * ss_scr[0:1, :] + ss_scr[1:2, :]
        o_ref[0] = jnp.maximum(y, 0.0).astype(o_ref.dtype)


def _matmul_stats_kernel(a_ref, w_ref, y_ref, stats_ref):
    """Fallback pass 1: matmul tile (bf16 out) + per-phase sum / sumsq accum."""
    y = jnp.dot(a_ref[0], w_ref[0], preferred_element_type=jnp.float32)
    y_ref[0] = y.astype(y_ref.dtype)

    @pl.when(pl.program_id(1) == 0)
    def _():
        stats_ref[...] = jnp.zeros_like(stats_ref)

    stats_ref[0] += jnp.concatenate(
        [jnp.sum(y, axis=0, keepdims=True),
         jnp.sum(y * y, axis=0, keepdims=True)], axis=0)


def _scale_shift_relu_kernel(y_ref, ss_ref, o_ref):
    """Fallback pass 2: per-tile FMA with precomputed scale/shift + ReLU."""
    y = y_ref[0].astype(jnp.float32)
    y = y * ss_ref[0:1, :] + ss_ref[1:2, :]
    o_ref[0] = jnp.maximum(y, 0.0).astype(o_ref.dtype)


# ----------------------------------------------------------------------------
# pallas_call wrappers
# ----------------------------------------------------------------------------
def fused_matmul_act(a, w, *, act, out_dtype):
    """a: (P, M, K) bf16, w: (P, K, Cpad) bf16 -> act(a @ w): (P, Mp, Cpad)."""
    p, m, k = a.shape
    cpad = w.shape[2]
    tm = _pick_tm(m)
    mp = _round_up(m, tm)
    if mp != m:
        a = jnp.pad(a, ((0, 0), (0, mp - m), (0, 0)))     # zero rows, sliced later
    kern = functools.partial(_matmul_act_kernel, act=act)
    return pl.pallas_call(
        kern,
        out_shape=jax.ShapeDtypeStruct((p, mp, cpad), out_dtype),
        grid=(p, mp // tm),
        in_specs=[
            pl.BlockSpec((1, tm, k), lambda ph, i: (ph, i, 0)),
            pl.BlockSpec((1, k, cpad), lambda ph, i: (ph, 0, 0)),   # VMEM-resident
        ],
        out_specs=pl.BlockSpec((1, tm, cpad), lambda ph, i: (ph, i, 0)),
        compiler_params=pltpu.CompilerParams(
            dimension_semantics=("parallel", "parallel")),
        cost_estimate=pl.CostEstimate(
            flops=2 * p * mp * k * cpad, transcendentals=0,
            bytes_accessed=int(a.size) * 2 + int(w.size) * 2
            + p * mp * cpad * jnp.dtype(out_dtype).itemsize),
    )(a, w)


def fused_convt_bn_relu(a, w, gamma, beta, *, count):
    """Single-call ConvT matmul + BatchNorm(train) + ReLU (y stays in VMEM)."""
    p, m, k = a.shape
    cpad = w.shape[2]
    tm = _pick_tm(m)
    mp = _round_up(m, tm)
    if mp != m:
        a = jnp.pad(a, ((0, 0), (0, mp - m), (0, 0)))     # zero rows: exact stats
    n_mt = mp // tm
    kern = functools.partial(_fused_convt_bn_relu_kernel,
                             count=float(count), n_mt=n_mt)
    return pl.pallas_call(
        kern,
        out_shape=jax.ShapeDtypeStruct((p, mp, cpad), jnp.bfloat16),
        grid=(2, p, n_mt),                                 # pass-major iteration
        in_specs=[
            # pass 1 re-maps A to tile 0 to avoid redundant large DMAs.
            pl.BlockSpec((1, tm, k), lambda s, ph, i: (ph, i * (1 - s), 0)),
            pl.BlockSpec((1, k, cpad), lambda s, ph, i: (ph, 0, 0)),
            pl.BlockSpec((1, cpad), lambda s, ph, i: (0, 0)),
            pl.BlockSpec((1, cpad), lambda s, ph, i: (0, 0)),
        ],
        # pass 0 never writes the output: park its (unwritten) block on (0,0).
        out_specs=pl.BlockSpec((1, tm, cpad),
                               lambda s, ph, i: (ph * s, i * s, 0)),
        scratch_shapes=[
            pltpu.VMEM((p * n_mt, tm, cpad), jnp.bfloat16),   # resident bf16 y
            pltpu.VMEM((2, cpad), jnp.float32),               # [sum; sumsq]
            pltpu.VMEM((2, cpad), jnp.float32),               # [scale; shift]
        ],
        compiler_params=pltpu.CompilerParams(
            # TODO(synk): on v7x (2 TCs) split phases 2+2 across cores with a
            # cross-core stats combine to recover a parallel axis.
            dimension_semantics=("arbitrary", "arbitrary", "arbitrary"),
            vmem_limit_bytes=32 * 1024 * 1024),
        cost_estimate=pl.CostEstimate(
            flops=2 * p * mp * k * cpad, transcendentals=cpad,
            bytes_accessed=int(a.size) * 2 + int(w.size) * 2 + p * mp * cpad * 2),
    )(a, w, gamma, beta)


def twopass_convt_bn_relu(a, w, gamma, beta, *, count):
    """Fallback when the resident y would not fit VMEM: bf16 y via HBM."""
    p, m, k = a.shape
    cpad = w.shape[2]
    tm = _pick_tm(m)
    mp = _round_up(m, tm)
    if mp != m:
        a = jnp.pad(a, ((0, 0), (0, mp - m), (0, 0)))
    n_mt = mp // tm
    y, stats = pl.pallas_call(
        _matmul_stats_kernel,
        out_shape=(jax.ShapeDtypeStruct((p, mp, cpad), jnp.bfloat16),
                   jax.ShapeDtypeStruct((p, 2, cpad), jnp.float32)),
        grid=(p, n_mt),
        in_specs=[pl.BlockSpec((1, tm, k), lambda ph, i: (ph, i, 0)),
                  pl.BlockSpec((1, k, cpad), lambda ph, i: (ph, 0, 0))],
        out_specs=(pl.BlockSpec((1, tm, cpad), lambda ph, i: (ph, i, 0)),
                   pl.BlockSpec((1, 2, cpad), lambda ph, i: (ph, 0, 0))),
        compiler_params=pltpu.CompilerParams(
            dimension_semantics=("parallel", "arbitrary")),
    )(a, w)
    # Global batch statistics -> per-channel scale/shift (tiny, plain jnp).
    tot = jnp.sum(stats, axis=0)                           # (2, Cpad)
    mean = tot[0:1] / count
    var = jnp.maximum(tot[1:2] / count - mean * mean, 0.0)
    scale = jax.lax.rsqrt(var + EPS) * gamma
    shift = beta - mean * scale
    ss = jnp.concatenate([scale, shift], axis=0)           # (2, Cpad) f32
    return pl.pallas_call(
        _scale_shift_relu_kernel,
        out_shape=jax.ShapeDtypeStruct((p, mp, cpad), jnp.bfloat16),
        grid=(p, n_mt),
        in_specs=[pl.BlockSpec((1, tm, cpad), lambda ph, i: (ph, i, 0)),
                  pl.BlockSpec((2, cpad), lambda ph, i: (0, 0))],
        out_specs=pl.BlockSpec((1, tm, cpad), lambda ph, i: (ph, i, 0)),
        compiler_params=pltpu.CompilerParams(
            dimension_semantics=("parallel", "parallel")),
    )(y, ss)


# ----------------------------------------------------------------------------
# Plain-JAX layout glue: sub-pixel decomposition of ConvT(k=4, s=2, p=1)
# ----------------------------------------------------------------------------
_TAPS = ((3, 1), (2, 0))   # kernel tap per (output phase, 2x2 window offset)


def _phase_patches(x):
    """x: (N, H, W, C) -> (4, N*H*W, 4*C) per-phase 2x2 im2col."""
    n, h, w, c = x.shape
    xp = jnp.pad(x, ((0, 0), (1, 1), (1, 1), (0, 0)))
    phases = []
    for ph in (0, 1):
        for pw in (0, 1):
            cols = [xp[:, ph + dy:ph + dy + h, pw + dx:pw + dx + w, :]
                    for dy in (0, 1) for dx in (0, 1)]
            phases.append(jnp.concatenate(cols, axis=-1).reshape(n * h * w, 4 * c))
    # TODO(synk): fold this 2x2 im2col and the pixel-shuffle below into the
    # kernels' index maps (phase-major layout between layers) to remove the
    # remaining XLA-side HBM traffic at large batch.
    return jnp.stack(phases, axis=0)


def _assemble_phases(y, n, h, w, cout):
    """(4, >=N*H*W, >=cout) phase outputs -> (N, 2H, 2W, cout) pixel-shuffle."""
    y = y[:, :n * h * w, :cout].reshape(2, 2, n, h, w, cout)
    y = jnp.transpose(y, (2, 3, 0, 4, 1, 5))       # (N, H, ph, W, pw, C)
    return y.reshape(n, 2 * h, 2 * w, cout)


def _subpixel_weight(w, cpad):
    """ConvTranspose2d weight (Cin, Cout, 4, 4) -> (4, 4*Cin, cpad) bf16 matmul
    weights (one per output phase), output channels zero-padded to cpad lanes."""
    cin, cout = w.shape[0], w.shape[1]
    mats = []
    for ph in (0, 1):
        for pw in (0, 1):
            sub = w[:, :, jnp.array(_TAPS[ph]), :][:, :, :, jnp.array(_TAPS[pw])]
            m = jnp.transpose(sub, (2, 3, 0, 1)).reshape(4 * cin, cout)
            mats.append(jnp.pad(m, ((0, 0), (0, cpad - cout))))
    return jnp.stack(mats, axis=0).astype(jnp.bfloat16)


def _dense_weight_l1(w):
    """ConvT(nz,128,k4,s1,p0) on a 1x1 input == dense (nz_pad, 4*4*128) matmul."""
    cin, cout, k, _ = w.shape
    m = jnp.transpose(w, (0, 2, 3, 1)).reshape(cin, k * k * cout)
    m = jnp.pad(m, ((0, NZ_PAD - cin), (0, 0)))            # zero rows for padded K
    return m.astype(jnp.bfloat16)


# ----------------------------------------------------------------------------
# Generator
# ----------------------------------------------------------------------------
def init_params(key):
    ks = jax.random.split(key, 4)

    def w(k, cin, cout):   # DCGAN-style N(0, 0.02) init, PyTorch ConvT layout
        return 0.02 * jax.random.normal(k, (cin, cout, 4, 4), jnp.float32)

    w1, w2, w3, w4 = (w(ks[0], NZ, 128), w(ks[1], 128, 64),
                      w(ks[2], 64, 32), w(ks[3], 32, 3))
    # Matmul-ready bf16 weights are precomputed once here (not per forward).
    return {
        "w1": _dense_weight_l1(w1)[None],              # (1, 128, 2048)
        "w2": _subpixel_weight(w2, LANE),              # (4, 512, 128)
        "g2": jnp.ones((1, LANE), jnp.float32), "b2": jnp.zeros((1, LANE), jnp.float32),
        "w3": _subpixel_weight(w3, LANE),              # (4, 256, 128)
        "g3": jnp.ones((1, LANE), jnp.float32), "b3": jnp.zeros((1, LANE), jnp.float32),
        "w4": _subpixel_weight(w4, LANE),              # (4, 128, 128)
    }


def _convt_bn_relu(x, w_phases, gamma, beta, cout):
    """ConvT(k4,s2,p1,bias=False) + BatchNorm2d(train) + ReLU, NHWC bf16 in/out."""
    n, h, wd, _ = x.shape
    a = _phase_patches(x)                                  # (4, n*h*w, 4*Cin) bf16
    p, m, k = a.shape
    cpad = w_phases.shape[2]
    count = 4 * n * h * wd                                 # N * (2H) * (2W)
    tm = _pick_tm(m)
    mp = _round_up(m, tm)
    fused_bytes = (p * mp * cpad * 2                       # resident bf16 y
                   + 2 * tm * k * 2 + 2 * k * cpad * 2 + 2 * tm * cpad * 2)
    if fused_bytes <= FUSED_VMEM_BUDGET:
        yb = fused_convt_bn_relu(a, w_phases, gamma, beta, count=count)
    else:
        yb = twopass_convt_bn_relu(a, w_phases, gamma, beta, count=count)
    return _assemble_phases(yb, n, h, wd, cout)


def generator_forward(params, noise_nchw):
    n = noise_nchw.shape[0]

    # Layer 1: ConvT(nz,128,k4,s1,p0) on a 1x1 input == dense matmul + ReLU.
    z = noise_nchw.reshape(n, NZ).astype(jnp.bfloat16)
    z = jnp.pad(z, ((0, 0), (0, NZ_PAD - NZ)))[None]       # (1, N, 128), zero K pad
    y1 = fused_matmul_act(z, params["w1"], act="relu", out_dtype=jnp.bfloat16)
    x = y1[0, :n, :].reshape(n, 4, 4, 128)                 # (N, 4, 4, 128)

    # Layers 2-3: fused ConvT + BatchNorm(train) + ReLU (one pallas_call each).
    x = _convt_bn_relu(x, params["w2"], params["g2"], params["b2"], 64)   # (N, 8, 8, 64)
    x = _convt_bn_relu(x, params["w3"], params["g3"], params["b3"], 32)   # (N,16,16, 32)

    # Layer 4: ConvT pre-activation from the kernel (bf16); tanh applied outside
    # on the 3 real channels only (Cout=3 is lane-padded to 128 in the kernel).
    a = _phase_patches(x)                                  # (4, N*256, 128)
    y4 = fused_matmul_act(a, params["w4"], act="none", out_dtype=jnp.bfloat16)
    out = _assemble_phases(y4, n, 16, 16, 3)               # (N, 32, 32, 3) bf16
    out = jnp.tanh(out.astype(jnp.float32))

    # TODO(synk): BatchNorm2d running_mean/running_var buffer updates are a
    # stateful training side-effect and do not affect this forward output.
    return jnp.transpose(out, (0, 3, 1, 2))                # NCHW f32


if __name__ == "__main__":
    key = jax.random.PRNGKey(0)
    pkey, nkey = jax.random.split(key)
    params = init_params(pkey)

    batch = 2
    noise = jax.random.normal(nkey, (batch, NZ, 1, 1), jnp.float32)

    fwd = jax.jit(generator_forward)
    out = jax.block_until_ready(fwd(params, noise))

    assert out.shape == (batch, 3, 32, 32), out.shape
    assert out.dtype == jnp.float32
    assert bool(jnp.all(jnp.isfinite(out)))
    assert bool(jnp.all(jnp.abs(out) <= 1.0 + 1e-6))   # tanh output range
    print("KERNEL_OK")
</pallas_src>

<mosaic_0001>
module attributes {stable_mosaic.version = 11 : i64} {
  func.func @_matmul_act_kernel(%arg0: i32, %arg1: i32, %arg2: memref<1x16x128xbf16, #tpu.memory_space<vmem>>, %arg3: memref<1x128x2048xbf16, #tpu.memory_space<vmem>>, %arg4: memref<1x16x2048xbf16, #tpu.memory_space<vmem>>) attributes {dimension_semantics = [#tpu.dimension_semantics<parallel>, #tpu.dimension_semantics<parallel>], iteration_bounds = array<i64: 1, 1>, scalar_prefetch = 0 : i64, scratch_operands = 0 : i64, tpu.core_type = #tpu.core_type<tc>, window_params = [{transform_indices = @transform_0, window_bounds = array<i64: 1, 16, 128>}, {transform_indices = @transform_1, window_bounds = array<i64: 1, 128, 2048>}, {transform_indices = @transform_2, window_bounds = array<i64: 1, 16, 2048>}]} {
    %c0 = arith.constant 0 : index
    %c0_0 = arith.constant 0 : index
    %c0_1 = arith.constant 0 : index
    %0 = vector.load %arg2[%c0, %c0_0, %c0_1] : memref<1x16x128xbf16, #tpu.memory_space<vmem>>, vector<1x16x128xbf16>
    %1 = vector.shape_cast %0 : vector<1x16x128xbf16> to vector<16x128xbf16>
    %c0_2 = arith.constant 0 : index
    %c0_3 = arith.constant 0 : index
    %c0_4 = arith.constant 0 : index
    %2 = vector.load %arg3[%c0_2, %c0_3, %c0_4] : memref<1x128x2048xbf16, #tpu.memory_space<vmem>>, vector<1x128x2048xbf16>
    %3 = vector.shape_cast %2 : vector<1x128x2048xbf16> to vector<128x2048xbf16>
    %cst = arith.constant dense<0.000000e+00> : vector<16x2048xf32>
    %4 = tpu.matmul %1, %3, %cst {dimension_numbers = #tpu.dot_dimension_numbers<[1], [0], [0], [1], [0, 0, 1, 1], [], []>} : vector<16x128xbf16>, vector<128x2048xbf16>, vector<16x2048xf32> -> vector<16x2048xf32>
    %cst_5 = arith.constant 0.000000e+00 : f32
    %5 = vector.broadcast %cst_5 : f32 to vector<16x2048xf32>
    %6 = arith.maximumf %4, %5 : vector<16x2048xf32>
    %7 = arith.truncf %6 : vector<16x2048xf32> to vector<16x2048xbf16>
    %c0_6 = arith.constant 0 : index
    %c0_7 = arith.constant 0 : index
    %c0_8 = arith.constant 0 : index
    %8 = vector.load %arg4[%c0_6, %c0_7, %c0_8] : memref<1x16x2048xbf16, #tpu.memory_space<vmem>>, vector<1x16x2048xbf16>
    %9 = vector.shape_cast %8 : vector<1x16x2048xbf16> to vector<16x2048xbf16>
    %10 = vector.shape_cast %7 : vector<16x2048xbf16> to vector<1x16x2048xbf16>
    tpu.vector_store %arg4[%c0_6, %c0_7, %c0_8], %10 {strides = array<i32>} : memref<1x16x2048xbf16, #tpu.memory_space<vmem>>, vector<1x16x2048xbf16>,
    return
  }
  func.func @transform_0(%arg0: i32, %arg1: i32) -> (i32, i32, i32) {
    %c0_i32 = arith.constant 0 : i32
    %c0_i32_0 = arith.constant 0 : i32
    return %arg0, %arg1, %c0_i32 : i32, i32, i32
  }
  func.func @transform_1(%arg0: i32, %arg1: i32) -> (i32, i32, i32) {
    %c0_i32 = arith.constant 0 : i32
    %c0_i32_0 = arith.constant 0 : i32
    %c0_i32_1 = arith.constant 0 : i32
    return %arg0, %c0_i32, %c0_i32_0 : i32, i32, i32
  }
  func.func @transform_2(%arg0: i32, %arg1: i32) -> (i32, i32, i32) {
    %c0_i32 = arith.constant 0 : i32
    %c0_i32_0 = arith.constant 0 : i32
    return %arg0, %arg1, %c0_i32 : i32, i32, i32
  }
}

module attributes {stable_mosaic.version = 11 : i64} {
  func.func @_fused_convt_bn_relu_kernel(%arg0: i32, %arg1: i32, %arg2: i32, %arg3: memref<1x32x512xbf16, #tpu.memory_space<vmem>>, %arg4: memref<1x512x128xbf16, #tpu.memory_space<vmem>>, %arg5: memref<1x128xf32, #tpu.memory_space<vmem>>, %arg6: memref<1x128xf32, #tpu.memory_space<vmem>>, %arg7: memref<1x32x128xbf16, #tpu.memory_space<vmem>>, %arg8: memref<4x32x128xbf16, #tpu.memory_space<vmem>>, %arg9: memref<2x128xf32, #tpu.memory_space<vmem>>, %arg10: memref<2x128xf32, #tpu.memory_space<vmem>>) attributes {dimension_semantics = [#tpu.dimension_semantics<arbitrary>, #tpu.dimension_semantics<arbitrary>, #tpu.dimension_semantics<arbitrary>], iteration_bounds = array<i64: 2, 4, 1>, scalar_prefetch = 0 : i64, scratch_operands = 3 : i64, tpu.core_type = #tpu.core_type<tc>, window_params = [{transform_indices = @transform_0, window_bounds = array<i64: 1, 32, 512>}, {transform_indices = @transform_1, window_bounds = array<i64: 1, 512, 128>}, {pipeline_mode = #tpu.pipeline_mode<synchronous>, transform_indices = @transform_2, window_bounds = array<i64: 1, 128>}, {pipeline_mode = #tpu.pipeline_mode<synchronous>, transform_indices = @transform_3, window_bounds = array<i64: 1, 128>}, {transform_indices = @transform_4, window_bounds = array<i64: 1, 32, 128>}]} {
    %c1_i32 = arith.constant 1 : i32
    %0 = arith.muli %arg1, %c1_i32 : i32
    %1 = arith.addi %0, %arg2 : i32
    %c0_i32 = arith.constant 0 : i32
    %2 = arith.cmpi eq, %arg0, %c0_i32 : i32
    %3 = arith.extui %2 : i1 to i32
    %c0_i32_0 = arith.constant 0 : i32
    %4 = arith.cmpi ne, %3, %c0_i32_0 : i32
    scf.if %4 {
      %c0_i32_3 = arith.constant 0 : i32
      %8 = arith.cmpi eq, %arg1, %c0_i32_3 : i32
      %c0_i32_4 = arith.constant 0 : i32
      %9 = arith.cmpi eq, %arg2, %c0_i32_4 : i32
      %10 = arith.andi %8, %9 : i1
      %11 = arith.extui %10 : i1 to i32
      %c0_i32_5 = arith.constant 0 : i32
      %12 = arith.cmpi ne, %11, %c0_i32_5 : i32
      scf.if %12 {
        %cst_19 = arith.constant 0.000000e+00 : f32
        %32 = vector.broadcast %cst_19 : f32 to vector<2x128xf32>
        %c0_20 = arith.constant 0 : index
        %c0_21 = arith.constant 0 : index
        %33 = vector.load %arg9[%c0_20, %c0_21] : memref<2x128xf32, #tpu.memory_space<vmem>>, vector<2x128xf32>
        tpu.vector_store %arg9[%c0_20, %c0_21], %32 {strides = array<i32>} : memref<2x128xf32, #tpu.memory_space<vmem>>, vector<2x128xf32>,
      } else {
      }
      %c0 = arith.constant 0 : index
      %c0_6 = arith.constant 0 : index
      %c0_7 = arith.constant 0 : index
      %13 = vector.load %arg3[%c0, %c0_6, %c0_7] : memref<1x32x512xbf16, #tpu.memory_space<vmem>>, vector<1x32x512xbf16>
      %14 = vector.shape_cast %13 : vector<1x32x512xbf16> to vector<32x512xbf16>
      %c0_8 = arith.constant 0 : index
      %c0_9 = arith.constant 0 : index
      %c0_10 = arith.constant 0 : index
      %15 = vector.load %arg4[%c0_8, %c0_9, %c0_10] : memref<1x512x128xbf16, #tpu.memory_space<vmem>>, vector<1x512x128xbf16>
      %16 = vector.shape_cast %15 : vector<1x512x128xbf16> to vector<512x128xbf16>
      %cst = arith.constant dense<0.000000e+00> : vector<32x128xf32>
      %17 = tpu.matmul %14, %16, %cst {dimension_numbers = #tpu.dot_dimension_numbers<[1], [0], [0], [1], [0, 0, 1, 1], [], []>} : vector<32x512xbf16>, vector<512x128xbf16>, vector<32x128xf32> -> vector<32x128xf32>
      %18 = arith.truncf %17 : vector<32x128xf32> to vector<32x128xbf16>
      %19 = arith.index_cast %1 : i32 to index
      %c0_11 = arith.constant 0 : index
      %c0_12 = arith.constant 0 : index
      %20 = vector.load %arg8[%19, %c0_11, %c0_12] : memref<4x32x128xbf16, #tpu.memory_space<vmem>>, vector<1x32x128xbf16>
      %21 = vector.shape_cast %20 : vector<1x32x128xbf16> to vector<32x128xbf16>
      %22 = vector.shape_cast %18 : vector<32x128xbf16> to vector<1x32x128xbf16>
      tpu.vector_store %arg8[%19, %c0_11, %c0_12], %22 {strides = array<i32>} : memref<4x32x128xbf16, #tpu.memory_space<vmem>>, vector<1x32x128xbf16>,
      %c0_13 = arith.constant 0 : index
      %c0_14 = arith.constant 0 : index
      %23 = vector.load %arg9[%c0_13, %c0_14] : memref<2x128xf32, #tpu.memory_space<vmem>>, vector<2x128xf32>
      %cst_15 = arith.constant dense<0.000000e+00> : vector<128xf32>
      %24 = vector.multi_reduction <add>, %17, %cst_15 [0] : vector<32x128xf32> to vector<128xf32>
      %25 = vector.shape_cast %24 : vector<128xf32> to vector<1x128xf32>
      %26 = arith.mulf %17, %17 : vector<32x128xf32>
      %cst_16 = arith.constant dense<0.000000e+00> : vector<128xf32>
      %27 = vector.multi_reduction <add>, %26, %cst_16 [0] : vector<32x128xf32> to vector<128xf32>
      %28 = vector.shape_cast %27 : vector<128xf32> to vector<1x128xf32>
      %29 = tpu.concatenate %25, %28 in 0 : vector<1x128xf32>, vector<1x128xf32> -> vector<2x128xf32>
      %30 = arith.addf %23, %29 : vector<2x128xf32>
      %c0_17 = arith.constant 0 : index
      %c0_18 = arith.constant 0 : index
      %31 = vector.load %arg9[%c0_17, %c0_18] : memref<2x128xf32, #tpu.memory_space<vmem>>, vector<2x128xf32>
      tpu.vector_store %arg9[%c0_17, %c0_18], %30 {strides = array<i32>} : memref<2x128xf32, #tpu.memory_space<vmem>>, vector<2x128xf32>,
    } else {
    }
    %c1_i32_1 = arith.constant 1 : i32
    %5 = arith.cmpi eq, %arg0, %c1_i32_1 : i32
    %6 = arith.extui %5 : i1 to i32
    %c0_i32_2 = arith.constant 0 : i32
    %7 = arith.cmpi ne, %6, %c0_i32_2 : i32
    scf.if %7 {
      %c0_i32_3 = arith.constant 0 : i32
      %8 = arith.cmpi eq, %arg1, %c0_i32_3 : i32
      %c0_i32_4 = arith.constant 0 : i32
      %9 = arith.cmpi eq, %arg2, %c0_i32_4 : i32
      %10 = arith.andi %8, %9 : i1
      %11 = arith.extui %10 : i1 to i32
      %c0_i32_5 = arith.constant 0 : i32
      %12 = arith.cmpi ne, %11, %c0_i32_5 : i32
      scf.if %12 {
        %c0_13 = arith.constant 0 : index
        %c0_14 = arith.constant 0 : index
        %29 = vector.load %arg9[%c0_13, %c0_14] : memref<2x128xf32, #tpu.memory_space<vmem>>, vector<1x128xf32>
        %cst_15 = arith.constant 7.812500e-03 : f32
        %30 = vector.broadcast %cst_15 : f32 to vector<1x128xf32>
        %31 = arith.mulf %29, %30 : vector<1x128xf32>
        %c1_16 = arith.constant 1 : index
        %c0_17 = arith.constant 0 : index
        %32 = vector.load %arg9[%c1_16, %c0_17] : memref<2x128xf32, #tpu.memory_space<vmem>>, vector<1x128xf32>
        %cst_18 = arith.constant 7.812500e-03 : f32
        %33 = vector.broadcast %cst_18 : f32 to vector<1x128xf32>
        %34 = arith.mulf %32, %33 : vector<1x128xf32>
        %35 = arith.mulf %31, %31 : vector<1x128xf32>
        %36 = arith.subf %34, %35 : vector<1x128xf32>
        %cst_19 = arith.constant 0.000000e+00 : f32
        %37 = vector.broadcast %cst_19 : f32 to vector<1x128xf32>
        %38 = arith.maximumf %36, %37 : vector<1x128xf32>
        %cst_20 = arith.constant 9.99999974E-6 : f32
        %39 = vector.broadcast %cst_20 : f32 to vector<1x128xf32>
        %40 = arith.addf %38, %39 : vector<1x128xf32>
        %41 = math.rsqrt %40 : vector<1x128xf32>
        %c0_21 = arith.constant 0 : index
        %c0_22 = arith.constant 0 : index
        %42 = vector.load %arg5[%c0_21, %c0_22] : memref<1x128xf32, #tpu.memory_space<vmem>>, vector<1x128xf32>
        %43 = arith.mulf %41, %42 : vector<1x128xf32>
        %c0_23 = arith.constant 0 : index
        %c0_24 = arith.constant 0 : index
        %44 = vector.load %arg6[%c0_23, %c0_24] : memref<1x128xf32, #tpu.memory_space<vmem>>, vector<1x128xf32>
        %45 = arith.mulf %31, %43 : vector<1x128xf32>
        %46 = arith.subf %44, %45 : vector<1x128xf32>
        %47 = tpu.concatenate %43, %46 in 0 : vector<1x128xf32>, vector<1x128xf32> -> vector<2x128xf32>
        %c0_25 = arith.constant 0 : index
        %c0_26 = arith.constant 0 : index
        %48 = vector.load %arg10[%c0_25, %c0_26] : memref<2x128xf32, #tpu.memory_space<vmem>>, vector<2x128xf32>
        tpu.vector_store %arg10[%c0_25, %c0_26], %47 {strides = array<i32>} : memref<2x128xf32, #tpu.memory_space<vmem>>, vector<2x128xf32>,
      } else {
      }
      %13 = arith.index_cast %1 : i32 to index
      %c0 = arith.constant 0 : index
      %c0_6 = arith.constant 0 : index
      %14 = vector.load %arg8[%13, %c0, %c0_6] : memref<4x32x128xbf16, #tpu.memory_space<vmem>>, vector<1x32x128xbf16>
      %15 = vector.shape_cast %14 : vector<1x32x128xbf16> to vector<32x128xbf16>
      %16 = arith.extf %15 : vector<32x128xbf16> to vector<32x128xf32>
      %c0_7 = arith.constant 0 : index
      %c0_8 = arith.constant 0 : index
      %17 = vector.load %arg10[%c0_7, %c0_8] : memref<2x128xf32, #tpu.memory_space<vmem>>, vector<1x128xf32>
      %18 = vector.broadcast %17 : vector<1x128xf32> to vector<32x128xf32>
      %19 = arith.mulf %16, %18 : vector<32x128xf32>
      %c1 = arith.constant 1 : index
      %c0_9 = arith.constant 0 : index
      %20 = vector.load %arg10[%c1, %c0_9] : memref<2x128xf32, #tpu.memory_space<vmem>>, vector<1x128xf32>
      %21 = vector.broadcast %20 : vector<1x128xf32> to vector<32x128xf32>
      %22 = arith.addf %19, %21 : vector<32x128xf32>
      %cst = arith.constant 0.000000e+00 : f32
      %23 = vector.broadcast %cst : f32 to vector<32x128xf32>
      %24 = arith.maximumf %22, %23 : vector<32x128xf32>
      %25 = arith.truncf %24 : vector<32x128xf32> to vector<32x128xbf16>
      %c0_10 = arith.constant 0 : index
      %c0_11 = arith.constant 0 : index
      %c0_12 = arith.constant 0 : index
      %26 = vector.load %arg7[%c0_10, %c0_11, %c0_12] : memref<1x32x128xbf16, #tpu.memory_space<vmem>>, vector<1x32x128xbf16>
      %27 = vector.shape_cast %26 : vector<1x32x128xbf16> to vector<32x128xbf16>
      %28 = vector.shape_cast %25 : vector<32x128xbf16> to vector<1x32x128xbf16>
      tpu.vector_store %arg7[%c0_10, %c0_11, %c0_12], %28 {strides = array<i32>} : memref<1x32x128xbf16, #tpu.memory_space<vmem>>, vector<1x32x128xbf16>,
    } else {
    }
    return
  }
  func.func @transform_0(%arg0: i32, %arg1: i32, %arg2: i32) -> (i32, i32, i32) {
    %c1_i32 = arith.constant 1 : i32
    %0 = arith.subi %c1_i32, %arg0 : i32
    %1 = arith.muli %arg2, %0 : i32
    %c0_i32 = arith.constant 0 : i32
    %c0_i32_0 = arith.constant 0 : i32
    return %arg1, %1, %c0_i32 : i32, i32, i32
  }
  func.func @transform_1(%arg0: i32, %arg1: i32, %arg2: i32) -> (i32, i32, i32) {
    %c0_i32 = arith.constant 0 : i32
    %c0_i32_0 = arith.constant 0 : i32
    %c0_i32_1 = arith.constant 0 : i32
    return %arg1, %c0_i32, %c0_i32_0 : i32, i32, i32
  }
  func.func @transform_2(%arg0: i32, %arg1: i32, %arg2: i32) -> (i32, i32) {
    %c0_i32 = arith.constant 0 : i32
    %c0_i32_0 = arith.constant 0 : i32
    %c0_i32_1 = arith.constant 0 : i32
    return %c0_i32, %c0_i32_0 : i32, i32
  }
  func.func @transform_3(%arg0: i32, %arg1: i32, %arg2: i32) -> (i32, i32) {
    %c0_i32 = arith.constant 0 : i32
    %c0_i32_0 = arith.constant 0 : i32
    %c0_i32_1 = arith.constant 0 : i32
    return %c0_i32, %c0_i32_0 : i32, i32
  }
  func.func @transform_4(%arg0: i32, %arg1: i32, %arg2: i32) -> (i32, i32, i32) {
    %0 = arith.muli %arg1, %arg0 : i32
    %1 = arith.muli %arg2, %arg0 : i32
    %c0_i32 = arith.constant 0 : i32
    %c0_i32_0 = arith.constant 0 : i32
    return %0, %1, %c0_i32 : i32, i32, i32
  }
}

module attributes {stable_mosaic.version = 11 : i64} {
  func.func @_fused_convt_bn_relu_kernel(%arg0: i32, %arg1: i32, %arg2: i32, %arg3: memref<1x128x256xbf16, #tpu.memory_space<vmem>>, %arg4: memref<1x256x128xbf16, #tpu.memory_space<vmem>>, %arg5: memref<1x128xf32, #tpu.memory_space<vmem>>, %arg6: memref<1x128xf32, #tpu.memory_space<vmem>>, %arg7: memref<1x128x128xbf16, #tpu.memory_space<vmem>>, %arg8: memref<4x128x128xbf16, #tpu.memory_space<vmem>>, %arg9: memref<2x128xf32, #tpu.memory_space<vmem>>, %arg10: memref<2x128xf32, #tpu.memory_space<vmem>>) attributes {dimension_semantics = [#tpu.dimension_semantics<arbitrary>, #tpu.dimension_semantics<arbitrary>, #tpu.dimension_semantics<arbitrary>], iteration_bounds = array<i64: 2, 4, 1>, scalar_prefetch = 0 : i64, scratch_operands = 3 : i64, tpu.core_type = #tpu.core_type<tc>, window_params = [{transform_indices = @transform_0, window_bounds = array<i64: 1, 128, 256>}, {transform_indices = @transform_1, window_bounds = array<i64: 1, 256, 128>}, {pipeline_mode = #tpu.pipeline_mode<synchronous>, transform_indices = @transform_2, window_bounds = array<i64: 1, 128>}, {pipeline_mode = #tpu.pipeline_mode<synchronous>, transform_indices = @transform_3, window_bounds = array<i64: 1, 128>}, {transform_indices = @transform_4, window_bounds = array<i64: 1, 128, 128>}]} {
    %c1_i32 = arith.constant 1 : i32
    %0 = arith.muli %arg1, %c1_i32 : i32
    %1 = arith.addi %0, %arg2 : i32
    %c0_i32 = arith.constant 0 : i32
    %2 = arith.cmpi eq, %arg0, %c0_i32 : i32
    %3 = arith.extui %2 : i1 to i32
    %c0_i32_0 = arith.constant 0 : i32
    %4 = arith.cmpi ne, %3, %c0_i32_0 : i32
    scf.if %4 {
      %c0_i32_3 = arith.constant 0 : i32
      %8 = arith.cmpi eq, %arg1, %c0_i32_3 : i32
      %c0_i32_4 = arith.constant 0 : i32
      %9 = arith.cmpi eq, %arg2, %c0_i32_4 : i32
      %10 = arith.andi %8, %9 : i1
      %11 = arith.extui %10 : i1 to i32
      %c0_i32_5 = arith.constant 0 : i32
      %12 = arith.cmpi ne, %11, %c0_i32_5 : i32
      scf.if %12 {
        %cst_19 = arith.constant 0.000000e+00 : f32
        %32 = vector.broadcast %cst_19 : f32 to vector<2x128xf32>
        %c0_20 = arith.constant 0 : index
        %c0_21 = arith.constant 0 : index
        %33 = vector.load %arg9[%c0_20, %c0_21] : memref<2x128xf32, #tpu.memory_space<vmem>>, vector<2x128xf32>
        tpu.vector_store %arg9[%c0_20, %c0_21], %32 {strides = array<i32>} : memref<2x128xf32, #tpu.memory_space<vmem>>, vector<2x128xf32>,
      } else {
      }
      %c0 = arith.constant 0 : index
      %c0_6 = arith.constant 0 : index
      %c0_7 = arith.constant 0 : index
      %13 = vector.load %arg3[%c0, %c0_6, %c0_7] : memref<1x128x256xbf16, #tpu.memory_space<vmem>>, vector<1x128x256xbf16>
      %14 = vector.shape_cast %13 : vector<1x128x256xbf16> to vector<128x256xbf16>
      %c0_8 = arith.constant 0 : index
      %c0_9 = arith.constant 0 : index
      %c0_10 = arith.constant 0 : index
      %15 = vector.load %arg4[%c0_8, %c0_9, %c0_10] : memref<1x256x128xbf16, #tpu.memory_space<vmem>>, vector<1x256x128xbf16>
      %16 = vector.shape_cast %15 : vector<1x256x128xbf16> to vector<256x128xbf16>
      %cst = arith.constant dense<0.000000e+00> : vector<128x128xf32>
      %17 = tpu.matmul %14, %16, %cst {dimension_numbers = #tpu.dot_dimension_numbers<[1], [0], [0], [1], [0, 0, 1, 1], [], []>} : vector<128x256xbf16>, vector<256x128xbf16>, vector<128x128xf32> -> vector<128x128xf32>
      %18 = arith.truncf %17 : vector<128x128xf32> to vector<128x128xbf16>
      %19 = arith.index_cast %1 : i32 to index
      %c0_11 = arith.constant 0 : index
      %c0_12 = arith.constant 0 : index
      %20 = vector.load %arg8[%19, %c0_11, %c0_12] : memref<4x128x128xbf16, #tpu.memory_space<vmem>>, vector<1x128x128xbf16>
      %21 = vector.shape_cast %20 : vector<1x128x128xbf16> to vector<128x128xbf16>
      %22 = vector.shape_cast %18 : vector<128x128xbf16> to vector<1x128x128xbf16>
      tpu.vector_store %arg8[%19, %c0_11, %c0_12], %22 {strides = array<i32>} : memref<4x128x128xbf16, #tpu.memory_space<vmem>>, vector<1x128x128xbf16>,
      %c0_13 = arith.constant 0 : index
      %c0_14 = arith.constant 0 : index
      %23 = vector.load %arg9[%c0_13, %c0_14] : memref<2x128xf32, #tpu.memory_space<vmem>>, vector<2x128xf32>
      %cst_15 = arith.constant dense<0.000000e+00> : vector<128xf32>
      %24 = vector.multi_reduction <add>, %17, %cst_15 [0] : vector<128x128xf32> to vector<128xf32>
      %25 = vector.shape_cast %24 : vector<128xf32> to vector<1x128xf32>
      %26 = arith.mulf %17, %17 : vector<128x128xf32>
      %cst_16 = arith.constant dense<0.000000e+00> : vector<128xf32>
      %27 = vector.multi_reduction <add>, %26, %cst_16 [0] : vector<128x128xf32> to vector<128xf32>
      %28 = vector.shape_cast %27 : vector<128xf32> to vector<1x128xf32>
      %29 = tpu.concatenate %25, %28 in 0 : vector<1x128xf32>, vector<1x128xf32> -> vector<2x128xf32>
      %30 = arith.addf %23, %29 : vector<2x128xf32>
      %c0_17 = arith.constant 0 : index
      %c0_18 = arith.constant 0 : index
      %31 = vector.load %arg9[%c0_17, %c0_18] : memref<2x128xf32, #tpu.memory_space<vmem>>, vector<2x128xf32>
      tpu.vector_store %arg9[%c0_17, %c0_18], %30 {strides = array<i32>} : memref<2x128xf32, #tpu.memory_space<vmem>>, vector<2x128xf32>,
    } else {
    }
    %c1_i32_1 = arith.constant 1 : i32
    %5 = arith.cmpi eq, %arg0, %c1_i32_1 : i32
    %6 = arith.extui %5 : i1 to i32
    %c0_i32_2 = arith.constant 0 : i32
    %7 = arith.cmpi ne, %6, %c0_i32_2 : i32
    scf.if %7 {
      %c0_i32_3 = arith.constant 0 : i32
      %8 = arith.cmpi eq, %arg1, %c0_i32_3 : i32
      %c0_i32_4 = arith.constant 0 : i32
      %9 = arith.cmpi eq, %arg2, %c0_i32_4 : i32
      %10 = arith.andi %8, %9 : i1
      %11 = arith.extui %10 : i1 to i32
      %c0_i32_5 = arith.constant 0 : i32
      %12 = arith.cmpi ne, %11, %c0_i32_5 : i32
      scf.if %12 {
        %c0_13 = arith.constant 0 : index
        %c0_14 = arith.constant 0 : index
        %29 = vector.load %arg9[%c0_13, %c0_14] : memref<2x128xf32, #tpu.memory_space<vmem>>, vector<1x128xf32>
        %cst_15 = arith.constant 0.001953125 : f32
        %30 = vector.broadcast %cst_15 : f32 to vector<1x128xf32>
        %31 = arith.mulf %29, %30 : vector<1x128xf32>
        %c1_16 = arith.constant 1 : index
        %c0_17 = arith.constant 0 : index
        %32 = vector.load %arg9[%c1_16, %c0_17] : memref<2x128xf32, #tpu.memory_space<vmem>>, vector<1x128xf32>
        %cst_18 = arith.constant 0.001953125 : f32
        %33 = vector.broadcast %cst_18 : f32 to vector<1x128xf32>
        %34 = arith.mulf %32, %33 : vector<1x128xf32>
        %35 = arith.mulf %31, %31 : vector<1x128xf32>
        %36 = arith.subf %34, %35 : vector<1x128xf32>
        %cst_19 = arith.constant 0.000000e+00 : f32
        %37 = vector.broadcast %cst_19 : f32 to vector<1x128xf32>
        %38 = arith.maximumf %36, %37 : vector<1x128xf32>
        %cst_20 = arith.constant 9.99999974E-6 : f32
        %39 = vector.broadcast %cst_20 : f32 to vector<1x128xf32>
        %40 = arith.addf %38, %39 : vector<1x128xf32>
        %41 = math.rsqrt %40 : vector<1x128xf32>
        %c0_21 = arith.constant 0 : index
        %c0_22 = arith.constant 0 : index
        %42 = vector.load %arg5[%c0_21, %c0_22] : memref<1x128xf32, #tpu.memory_space<vmem>>, vector<1x128xf32>
        %43 = arith.mulf %41, %42 : vector<1x128xf32>
        %c0_23 = arith.constant 0 : index
        %c0_24 = arith.constant 0 : index
        %44 = vector.load %arg6[%c0_23, %c0_24] : memref<1x128xf32, #tpu.memory_space<vmem>>, vector<1x128xf32>
        %45 = arith.mulf %31, %43 : vector<1x128xf32>
        %46 = arith.subf %44, %45 : vector<1x128xf32>
        %47 = tpu.concatenate %43, %46 in 0 : vector<1x128xf32>, vector<1x128xf32> -> vector<2x128xf32>
        %c0_25 = arith.constant 0 : index
        %c0_26 = arith.constant 0 : index
        %48 = vector.load %arg10[%c0_25, %c0_26] : memref<2x128xf32, #tpu.memory_space<vmem>>, vector<2x128xf32>
        tpu.vector_store %arg10[%c0_25, %c0_26], %47 {strides = array<i32>} : memref<2x128xf32, #tpu.memory_space<vmem>>, vector<2x128xf32>,
      } else {
      }
      %13 = arith.index_cast %1 : i32 to index
      %c0 = arith.constant 0 : index
      %c0_6 = arith.constant 0 : index
      %14 = vector.load %arg8[%13, %c0, %c0_6] : memref<4x128x128xbf16, #tpu.memory_space<vmem>>, vector<1x128x128xbf16>
      %15 = vector.shape_cast %14 : vector<1x128x128xbf16> to vector<128x128xbf16>
      %16 = arith.extf %15 : vector<128x128xbf16> to vector<128x128xf32>
      %c0_7 = arith.constant 0 : index
      %c0_8 = arith.constant 0 : index
      %17 = vector.load %arg10[%c0_7, %c0_8] : memref<2x128xf32, #tpu.memory_space<vmem>>, vector<1x128xf32>
      %18 = vector.broadcast %17 : vector<1x128xf32> to vector<128x128xf32>
      %19 = arith.mulf %16, %18 : vector<128x128xf32>
      %c1 = arith.constant 1 : index
      %c0_9 = arith.constant 0 : index
      %20 = vector.load %arg10[%c1, %c0_9] : memref<2x128xf32, #tpu.memory_space<vmem>>, vector<1x128xf32>
      %21 = vector.broadcast %20 : vector<1x128xf32> to vector<128x128xf32>
      %22 = arith.addf %19, %21 : vector<128x128xf32>
      %cst = arith.constant 0.000000e+00 : f32
      %23 = vector.broadcast %cst : f32 to vector<128x128xf32>
      %24 = arith.maximumf %22, %23 : vector<128x128xf32>
      %25 = arith.truncf %24 : vector<128x128xf32> to vector<128x128xbf16>
      %c0_10 = arith.constant 0 : index
      %c0_11 = arith.constant 0 : index
      %c0_12 = arith.constant 0 : index
      %26 = vector.load %arg7[%c0_10, %c0_11, %c0_12] : memref<1x128x128xbf16, #tpu.memory_space<vmem>>, vector<1x128x128xbf16>
      %27 = vector.shape_cast %26 : vector<1x128x128xbf16> to vector<128x128xbf16>
      %28 = vector.shape_cast %25 : vector<128x128xbf16> to vector<1x128x128xbf16>
      tpu.vector_store %arg7[%c0_10, %c0_11, %c0_12], %28 {strides = array<i32>} : memref<1x128x128xbf16, #tpu.memory_space<vmem>>, vector<1x128x128xbf16>,
    } else {
    }
    return
  }
  func.func @transform_0(%arg0: i32, %arg1: i32, %arg2: i32) -> (i32, i32, i32) {
    %c1_i32 = arith.constant 1 : i32
    %0 = arith.subi %c1_i32, %arg0 : i32
    %1 = arith.muli %arg2, %0 : i32
    %c0_i32 = arith.constant 0 : i32
    %c0_i32_0 = arith.constant 0 : i32
    return %arg1, %1, %c0_i32 : i32, i32, i32
  }
  func.func @transform_1(%arg0: i32, %arg1: i32, %arg2: i32) -> (i32, i32, i32) {
    %c0_i32 = arith.constant 0 : i32
    %c0_i32_0 = arith.constant 0 : i32
    %c0_i32_1 = arith.constant 0 : i32
    return %arg1, %c0_i32, %c0_i32_0 : i32, i32, i32
  }
  func.func @transform_2(%arg0: i32, %arg1: i32, %arg2: i32) -> (i32, i32) {
    %c0_i32 = arith.constant 0 : i32
    %c0_i32_0 = arith.constant 0 : i32
    %c0_i32_1 = arith.constant 0 : i32
    return %c0_i32, %c0_i32_0 : i32, i32
  }
  func.func @transform_3(%arg0: i32, %arg1: i32, %arg2: i32) -> (i32, i32) {
    %c0_i32 = arith.constant 0 : i32
    %c0_i32_0 = arith.constant 0 : i32
    %c0_i32_1 = arith.constant 0 : i32
    return %c0_i32, %c0_i32_0 : i32, i32
  }
  func.func @transform_4(%arg0: i32, %arg1: i32, %arg2: i32) -> (i32, i32, i32) {
    %0 = arith.muli %arg1, %arg0 : i32
    %1 = arith.muli %arg2, %arg0 : i32
    %c0_i32 = arith.constant 0 : i32
    %c0_i32_0 = arith.constant 0 : i32
    return %0, %1, %c0_i32 : i32, i32, i32
  }
}

module attributes {stable_mosaic.version = 11 : i64} {
  func.func @_matmul_act_kernel(%arg0: i32, %arg1: i32, %arg2: memref<1x512x128xbf16, #tpu.memory_space<vmem>>, %arg3: memref<1x128x128xbf16, #tpu.memory_space<vmem>>, %arg4: memref<1x512x128xbf16, #tpu.memory_space<vmem>>) attributes {dimension_semantics = [#tpu.dimension_semantics<parallel>, #tpu.dimension_semantics<parallel>], iteration_bounds = array<i64: 4, 1>, scalar_prefetch = 0 : i64, scratch_operands = 0 : i64, tpu.core_type = #tpu.core_type<tc>, window_params = [{transform_indices = @transform_0, window_bounds = array<i64: 1, 512, 128>}, {transform_indices = @transform_1, window_bounds = array<i64: 1, 128, 128>}, {transform_indices = @transform_2, window_bounds = array<i64: 1, 512, 128>}]} {
    %c0 = arith.constant 0 : index
    %c0_0 = arith.constant 0 : index
    %c0_1 = arith.constant 0 : index
    %0 = vector.load %arg2[%c0, %c0_0, %c0_1] : memref<1x512x128xbf16, #tpu.memory_space<vmem>>, vector<1x512x128xbf16>
    %1 = vector.shape_cast %0 : vector<1x512x128xbf16> to vector<512x128xbf16>
    %c0_2 = arith.constant 0 : index
    %c0_3 = arith.constant 0 : index
    %c0_4 = arith.constant 0 : index
    %2 = vector.load %arg3[%c0_2, %c0_3, %c0_4] : memref<1x128x128xbf16, #tpu.memory_space<vmem>>, vector<1x128x128xbf16>
    %3 = vector.shape_cast %2 : vector<1x128x128xbf16> to vector<128x128xbf16>
    %cst = arith.constant dense<0.000000e+00> : vector<512x128xf32>
    %4 = tpu.matmul %1, %3, %cst {dimension_numbers = #tpu.dot_dimension_numbers<[1], [0], [0], [1], [0, 0, 1, 1], [], []>} : vector<512x128xbf16>, vector<128x128xbf16>, vector<512x128xf32> -> vector<512x128xf32>
    %5 = arith.truncf %4 : vector<512x128xf32> to vector<512x128xbf16>
    %c0_5 = arith.constant 0 : index
    %c0_6 = arith.constant 0 : index
    %c0_7 = arith.constant 0 : index
    %6 = vector.load %arg4[%c0_5, %c0_6, %c0_7] : memref<1x512x128xbf16, #tpu.memory_space<vmem>>, vector<1x512x128xbf16>
    %7 = vector.shape_cast %6 : vector<1x512x128xbf16> to vector<512x128xbf16>
    %8 = vector.shape_cast %5 : vector<512x128xbf16> to vector<1x512x128xbf16>
    tpu.vector_store %arg4[%c0_5, %c0_6, %c0_7], %8 {strides = array<i32>} : memref<1x512x128xbf16, #tpu.memory_space<vmem>>, vector<1x512x128xbf16>,
    return
  }
  func.func @transform_0(%arg0: i32, %arg1: i32) -> (i32, i32, i32) {
    %c0_i32 = arith.constant 0 : i32
    %c0_i32_0 = arith.constant 0 : i32
    return %arg0, %arg1, %c0_i32 : i32, i32, i32
  }
  func.func @transform_1(%arg0: i32, %arg1: i32) -> (i32, i32, i32) {
    %c0_i32 = arith.constant 0 : i32
    %c0_i32_0 = arith.constant 0 : i32
    %c0_i32_1 = arith.constant 0 : i32
    return %arg0, %c0_i32, %c0_i32_0 : i32, i32, i32
  }
  func.func @transform_2(%arg0: i32, %arg1: i32) -> (i32, i32, i32) {
    %c0_i32 = arith.constant 0 : i32
    %c0_i32_0 = arith.constant 0 : i32
    return %arg0, %arg1, %c0_i32 : i32, i32, i32
  }
}

</mosaic_0001>

<bundles_post_ra>
// kernel: squeeze.1
= control target key start
LH: loop header
LB: loop body
LE: loop exit
PB: predicated region body
PF: predicated region fallthrough
CT: control target
= control target key end

     0   :  { %s496_s0 = inlined_call_operand.vmem [shape: bf16[1,2,2048], index: 0, kind: input, shape index: {}]   ;;  %s497_s1 = inlined_call_operand.vmem [shape: bf16[2,4,4,128], index: 1, kind: output, shape index: {}]  }
   0x1   :  { %v392_v0 = vld [vmem:[%s496_s0 + $0xf] sm:$0x1]  ;;  %v393_v1 = vld [vmem:[%s496_s0 + $0xe] sm:$0x1]  ;;  %v394_v2 = vld [vmem:[%s496_s0 + $0xd] sm:$0x1] }
   0x2   :  { %v15_v3 = vunpack.c.l.bf16 %v392_v0  ;;  %v30_v4 = vunpack.c.l.bf16 %v393_v1  ;;  %v45_v5 = vunpack.c.l.bf16 %v394_v2  ;;  %v395_v6 = vld [vmem:[%s496_s0 + $0xc] sm:$0x1]  ;;  %v396_v7 = vld [vmem:[%s496_s0 + $0xb] sm:$0x1]  ;;  %v397_v8 = vld [vmem:[%s496_s0 + $0xa] sm:$0x1] }
   0x3   :  { %v60_v9 = vunpack.c.l.bf16 %v395_v6  ;;  %v398_v10 = vld [vmem:[%s496_s0 + $0x9] sm:$0x1]  ;;  %v75_v11 = vunpack.c.l.bf16 %v396_v7  ;;  %v399_v12 = vld [vmem:[%s496_s0 + $0x8] sm:$0x1]  ;;  %v90_v13 = vunpack.c.l.bf16 %v397_v8  ;;  %v400_v14 = vld [vmem:[%s496_s0 + $0x7] sm:$0x1] }
   0x4   :  { %18 = vst [vmem:[#allocation1 + $0x48] sm:$0x3] %v15_v3  ;;  %v105_v15 = vunpack.c.l.bf16 %v398_v10  ;;  %v401_v16 = vld [vmem:[%s496_s0 + $0x6] sm:$0x1]  ;;  %v120_v17 = vunpack.c.l.bf16 %v399_v12  ;;  %v402_v18 = vld [vmem:[%s496_s0 + $0x5] sm:$0x1]  ;;  %v135_v19 = vunpack.c.l.bf16 %v400_v14 }
   0x5   :  { %33 = vst [vmem:[#allocation1 + $0x78] sm:$0x3] %v30_v4  ;;  %v403_v20 = vld [vmem:[%s496_s0 + $0x4] sm:$0x1]  ;;  %v150_v21 = vunpack.c.l.bf16 %v401_v16  ;;  %v404_v22 = vld [vmem:[%s496_s0 + $0x3] sm:$0x1]  ;;  %v165_v23 = vunpack.c.l.bf16 %v402_v18 }
   0x6   :  { %48 = vst [vmem:[#allocation1 + $0x20] sm:$0x3] %v45_v5  ;;  %v405_v24 = vld [vmem:[%s496_s0 + $0x2] sm:$0x1]  ;;  %v180_v25 = vunpack.c.l.bf16 %v403_v20  ;;  %v406_v26 = vld [vmem:[%s496_s0 + $0x1] sm:$0x1]  ;;  %v195_v27 = vunpack.c.l.bf16 %v404_v22 }
   0x7   :  { %63 = vst [vmem:[#allocation1 + $0x60] sm:$0x3] %v60_v9  ;;  %v238_v28 = vld [vmem:[%s496_s0] sm:$0x1]  ;;  %v210_v29 = vunpack.c.l.bf16 %v405_v24  ;;  %v225_v30 = vunpack.c.l.bf16 %v406_v26 }
   0x8   :  { %78 = vst [vmem:[#allocation1 + $0x28] sm:$0x3] %v75_v11  ;;  %v239_v31 = vunpack.c.l.bf16 %v238_v28 }
   0x9   :  { %93 = vst [vmem:[#allocation1 + $0x10] sm:$0x3] %v90_v13 }
   0xa   :  { %108 = vst [vmem:[#allocation1 + $0x70] sm:$0x3] %v105_v15 }
   0xb   :  { %123 = vst [vmem:[#allocation1 + $0x30] sm:$0x3] %v120_v17  ;;  %v331_v49 = vld [vmem:[#allocation1 + $0x48] sm:$0x3]  }
   0xc   :  { %138 = vst [vmem:[#allocation1 + $0x38] sm:$0x3] %v135_v19  ;;  %v325_v46 = vld [vmem:[#allocation1 + $0x78] sm:$0x3]  }
   0xd   :  { %153 = vst [vmem:[#allocation1 + $0x58] sm:$0x3] %v150_v21  ;;  %v319_v45 = vld [vmem:[#allocation1 + $0x20] sm:$0x3]  }
   0xe   :  { %168 = vst [vmem:[#allocation1 + $0x68] sm:$0x3] %v165_v23  ;;  %v313_v44 = vld [vmem:[#allocation1 + $0x60] sm:$0x3]  }
   0xf   :  { %183 = vst [vmem:[#allocation1 + $0x40] sm:$0x3] %v180_v25  ;;  %v307_v43 = vld [vmem:[#allocation1 + $0x28] sm:$0x3]  }
  0x10   :  { %198 = vst [vmem:[#allocation1 + $0x18] sm:$0x3] %v195_v27  ;;  %v301_v42 = vld [vmem:[#allocation1 + $0x10] sm:$0x3]  }
  0x11   :  { %213 = vst [vmem:[#allocation1 + $0x8] sm:$0x3] %v210_v29  ;;  %v295_v41 = vld [vmem:[#allocation1 + $0x70] sm:$0x3]  }
  0x12   :  { %228 = vst [vmem:[#allocation1] sm:$0x3] %v225_v30  ;;  %v289_v40 = vld [vmem:[#allocation1 + $0x30] sm:$0x3]  }
  0x13   :  { %241 = vst [vmem:[#allocation1 + $0x50] sm:$0x3] %v239_v31  ;;  %v283_v32 = vld [vmem:[#allocation1 + $0x38] sm:$0x3]  }
  0x14   :  { %v277_v33 = vld [vmem:[#allocation1 + $0x58] sm:$0x3]   ;;  %285 = vst [vmem:[#allocation0 + $0xb] sm:$0x1] %v283_v32  }
  0x15   :  { %v271_v34 = vld [vmem:[#allocation1 + $0x68] sm:$0x3]   ;;  %279 = vst [vmem:[#allocation0 + $0xa] sm:$0x1] %v277_v33  }
  0x16   :  { %v265_v35 = vld [vmem:[#allocation1 + $0x40] sm:$0x3]   ;;  %273 = vst [vmem:[#allocation0 + $0x9] sm:$0x1] %v271_v34  }
  0x17   :  { %v259_v36 = vld [vmem:[#allocation1 + $0x18] sm:$0x3]   ;;  %267 = vst [vmem:[#allocation0 + $0x8] sm:$0x1] %v265_v35  }
  0x18   :  { %v253_v37 = vld [vmem:[#allocation1 + $0x8] sm:$0x3]   ;;  %261 = vst [vmem:[#allocation0 + $0x3] sm:$0x1] %v259_v36  }
  0x19   :  { %v247_v38 = vld [vmem:[#allocation1] sm:$0x3]   ;;  %255 = vst [vmem:[#allocation0 + $0x2] sm:$0x1] %v253_v37  }
  0x1a   :  { %v242_v39 = vld [vmem:[#allocation1 + $0x50] sm:$0x3]   ;;  %249 = vst [vmem:[#allocation0 + $0x1] sm:$0x1] %v247_v38  }
  0x1b   :  { %243 = vst [vmem:[#allocation0] sm:$0x1] %v242_v39  }
  0x1c   :  { %245 = vst [vmem:[#allocation0 + $0x1f] sm:$0x2] %v242_v39  }
  0x1d   :  { %251 = vst [vmem:[#allocation0 + $0x20] sm:$0x2] %v247_v38  }
  0x1e   :  { %257 = vst [vmem:[#allocation0 + $0x21] sm:$0x2] %v253_v37   ;;  %v344_v48 = vld [vmem:[#allocation0 + $0x8] sm:$0xf] }
  0x1f   :  { %263 = vst [vmem:[#allocation0 + $0x22] sm:$0x2] %v259_v36   ;;  %v345_v51 = vpack.c.bf16 0.0, %v344_v48 }
  0x20   :  { %269 = vst [vmem:[#allocation0 + $0x27] sm:$0x2] %v265_v35  }
  0x21   :  { %275 = vst [vmem:[#allocation0 + $0x28] sm:$0x2] %v271_v34  }
  0x22   :  { %281 = vst [vmem:[#allocation0 + $0x29] sm:$0x2] %v277_v33   ;;  %v338_v47 = vld [vmem:[#allocation0] sm:$0xf] }
  0x23   :  { %287 = vst [vmem:[#allocation0 + $0x2a] sm:$0x2] %v283_v32   ;;  %v339_v50 = vpack.c.bf16 0.0, %v338_v47 }
  0x24   :  { %291 = vst [vmem:[#allocation0 + $0x10] sm:$0x1] %v289_v40  }
  0x25   :  { %293 = vst [vmem:[#allocation0 + $0x2f] sm:$0x2] %v289_v40  }
  0x26   :  { %297 = vst [vmem:[#allocation0 + $0x11] sm:$0x1] %v295_v41   ;;  %v365_v52 = vld [vmem:[#allocation0 + $0x20] sm:$0xf] }
  0x27   :  { %299 = vst [vmem:[#allocation0 + $0x30] sm:$0x2] %v295_v41   ;;  %v366_v57 = vpack.c.bf16 0.0, %v365_v52 }
  0x28   :  { %303 = vst [vmem:[#allocation0 + $0x12] sm:$0x1] %v301_v42  }
  0x29   :  { %305 = vst [vmem:[#allocation0 + $0x31] sm:$0x2] %v301_v42  }
  0x2a   :  { %309 = vst [vmem:[#allocation0 + $0x13] sm:$0x1] %v307_v43   ;;  %v372_v54 = vld [vmem:[#allocation0 + $0x28] sm:$0xf] }
  0x2b   :  { %311 = vst [vmem:[#allocation0 + $0x32] sm:$0x2] %v307_v43   ;;  %v373_v58 = vpack.c.bf16 0.0, %v372_v54 }
  0x2c   :  { %315 = vst [vmem:[#allocation0 + $0x18] sm:$0x1] %v313_v44  }
  0x2d   :  { %317 = vst [vmem:[#allocation0 + $0x37] sm:$0x2] %v313_v44  }
  0x2e   :  { %321 = vst [vmem:[#allocation0 + $0x19] sm:$0x1] %v319_v45  }
  0x2f   :  { %323 = vst [vmem:[#allocation0 + $0x38] sm:$0x2] %v319_v45  }
  0x30   :  { %327 = vst [vmem:[#allocation0 + $0x1a] sm:$0x1] %v325_v46  }
  0x31   :  { %329 = vst [vmem:[#allocation0 + $0x39] sm:$0x2] %v325_v46   ;;  %v351_v53 = vld [vmem:[#allocation0 + $0x10] sm:$0xf] }
  0x32   :  { %333 = vst [vmem:[#allocation0 + $0x1b] sm:$0x1] %v331_v49   ;;  %v352_v55 = vpack.c.bf16 0.0, %v351_v53  ;;  %v379_v56 = vld [vmem:[#allocation0 + $0x30] sm:$0xf] }
  0x33   :  { %335 = vst [vmem:[#allocation0 + $0x3a] sm:$0x2] %v331_v49   ;;  %v380_v59 = vpack.c.bf16 0.0, %v379_v56 }
  0x34   :  { %342 = vst [vmem:[%s497_s1] sm:$0x3] %v339_v50 }
  0x35   :  { %407 = vst [vmem:[%s497_s1 + $0x2] sm:$0x3] %v345_v51 }
  0x36   :  { %408 = vst [vmem:[%s497_s1 + $0x4] sm:$0x3] %v352_v55 }
  0x37   :  { %410 = vst [vmem:[%s497_s1 + $0x8] sm:$0x3] %v366_v57 }
  0x38   :  { %411 = vst [vmem:[%s497_s1 + $0xa] sm:$0x3] %v373_v58 }
  0x39   :  { %v358_v60 = vld [vmem:[#allocation0 + $0x18] sm:$0xf]  ;;  %412 = vst [vmem:[%s497_s1 + $0xc] sm:$0x3] %v380_v59 }
  0x3a   :  { %v359_v61 = vpack.c.bf16 0.0, %v358_v60  ;;  %v386_v62 = vld [vmem:[#allocation0 + $0x38] sm:$0xf] }
  0x3b   :  { %v387_v63 = vpack.c.bf16 0.0, %v386_v62 }
  0x3c   :  { %409 = vst [vmem:[%s497_s1 + $0x6] sm:$0x3] %v359_v61 }
  0x3d   :  { %413 = vst [vmem:[%s497_s1 + $0xe] sm:$0x3] %v387_v63 }

// kernel: generator_forward.4
= control target key start
LH: loop header
LB: loop body
LE: loop exit
PB: predicated region body
PF: predicated region fallthrough
CT: control target
= control target key end

     0   :  { %7 = vsyncpa [#allocation3], 0  ;;  %s1770_s12 = smov [#allocation2]   ;;  %s1771_s14 = smov 1024   ;;  %s1860_s0 = inlined_call_operand.vmem [shape: bf16[1,16,128], index: 0, kind: input, shape index: {}]   ;;  %s1861_s1 = inlined_call_operand.hbm [shape: bf16[1,128,2048], index: 1, kind: input, shape index: {}]   ;;  %s1862_s2 = inlined_call_operand.vmem [shape: bf16[1,16,2048], index: 2, kind: output, shape index: {}]  }
   0x1   :  { %s14_s11 = sshll.u32 %s1861_s1, 4  ;;  %s16_s13 = sshll.u32 %s1770_s12, 4  ;;  %s15_s11 = int_to_ptr.hbm [resolvable:$true] %s14_s11  ;;  %s17_s13 = int_to_ptr.vmem [resolvable:$true] %s16_s13 }
   0x2   :  { %s1772_s15 = smov 64  }
   0x3   :  { %22 = dma.hbm_to_vmem [thread:$0]  %s15_s11, 16384, %s17_s13, [#allocation3], %s1771_s14, %s1771_s14, %s1772_s15  }
   0x4   :  { %1768 = dma.done.wait [#allocation3], 16384  }
   0x5   :  { %1769 = vsyncadd [#allocation3], 4294950912  ;;  %v1550_v0 = vld [vmem:[#allocation2 + $0x380] sm:$0xf]  ;;  %v1725_v2 = vld [vmem:[#allocation2 + $0x384] sm:$0xf] }
   0x6   :  { %v1733_v1 = vld [vmem:[#allocation2 + $0x3bc] sm:$0xf0]  ;;  %v1552_v4 = vld [vmem:[#allocation2 + $0x3c0] sm:$0xf0]  ;;  %v1558_v5 = vld [vmem:[#allocation2 + $0x388] sm:$0xf] }
   0x7   :  { %v1551_v3 = vor.u32 %v1733_v1, %v1550_v0  ;;  %v1734_v6 = vld [vmem:[#allocation2 + $0x3c4] sm:$0xf0]  ;;  %v1555_v7 = vor.u32 %v1725_v2, %v1552_v4  ;;  %v1726_v9 = vld [vmem:[#allocation2 + $0x38c] sm:$0xf]  ;;  %v1486_v11 = vld [vmem:[#allocation2 + $0x300] sm:$0xf] }
   0x8   :  { %v1559_v8 = vor.u32 %v1734_v6, %v1558_v5  ;;  %v1560_v10 = vld [vmem:[#allocation2 + $0x3c8] sm:$0xf0]  ;;  %v1717_v13 = vld [vmem:[#allocation2 + $0x33c] sm:$0xf0]  ;;  %v1709_v14 = vld [vmem:[#allocation2 + $0x304] sm:$0xf] }
   0x9   :  { %803 = vmatpush.bf16.msra.mxu0 %v1551_v3  ;;  %v1563_v12 = vor.u32 %v1726_v9, %v1560_v10  ;;  %v1488_v15 = vld [vmem:[#allocation2 + $0x340] sm:$0xf0]  ;;  %817 = vmatpush.bf16.msra.mxu1 %v1555_v7  ;;  %v1487_v16 = vor.u32 %v1717_v13, %v1486_v11  ;;  %v1494_v18 = vld [vmem:[#allocation2 + $0x308] sm:$0xf]  ;;  %v1710_v20 = vld [vmem:[#allocation2 + $0x30c] sm:$0xf] }
   0xa   :  { %831 = vmatpush.bf16.msra.mxu2 %v1559_v8  ;;  %v1491_v17 = vor.u32 %v1709_v14, %v1488_v15  ;;  %v1718_v19 = vld [vmem:[#allocation2 + $0x344] sm:$0xf0]  ;;  %v1496_v22 = vld [vmem:[#allocation2 + $0x348] sm:$0xf0]  ;;  %v1422_v23 = vld [vmem:[#allocation2 + $0x280] sm:$0xf] }
   0xb   :  { %845 = vmatpush.bf16.msra.mxu3 %v1563_v12  ;;  %v1495_v21 = vor.u32 %v1718_v19, %v1494_v18  ;;  %v1701_v24 = vld [vmem:[#allocation2 + $0x2bc] sm:$0xf0]  ;;  %v1499_v25 = vor.u32 %v1710_v20, %v1496_v22  ;;  %v1693_v26 = vld [vmem:[#allocation2 + $0x284] sm:$0xf]  ;;  %v1430_v28 = vld [vmem:[#allocation2 + $0x288] sm:$0xf] }
   0xc   :  { %v1424_v27 = vld [vmem:[#allocation2 + $0x2c0] sm:$0xf0]  ;;  %v1423_v29 = vor.u32 %v1701_v24, %v1422_v23  ;;  %v1702_v30 = vld [vmem:[#allocation2 + $0x2c4] sm:$0xf0]  ;;  %v1694_v31 = vld [vmem:[#allocation2 + $0x28c] sm:$0xf] }
   0xd   :  { %804 = vmatpush.bf16.msra.mxu0 %v1487_v16  ;;  %v1432_v32 = vld [vmem:[#allocation2 + $0x2c8] sm:$0xf0]  ;;  %818 = vmatpush.bf16.msra.mxu1 %v1491_v17  ;;  %v1427_v33 = vor.u32 %v1693_v26, %v1424_v27  ;;  %v1431_v34 = vor.u32 %v1702_v30, %v1430_v28  ;;  %v1358_v35 = vld [vmem:[#allocation2 + $0x200] sm:$0xf]  ;;  %v1677_v37 = vld [vmem:[#allocation2 + $0x204] sm:$0xf] }
   0xe   :  { %832 = vmatpush.bf16.msra.mxu2 %v1495_v21  ;;  %v1685_v36 = vld [vmem:[#allocation2 + $0x23c] sm:$0xf0]  ;;  %v1435_v38 = vor.u32 %v1694_v31, %v1432_v32  ;;  %v1360_v39 = vld [vmem:[#allocation2 + $0x240] sm:$0xf0]  ;;  %v1366_v40 = vld [vmem:[#allocation2 + $0x208] sm:$0xf] }
   0xf   :  { %846 = vmatpush.bf16.msra.mxu3 %v1499_v25  ;;  %v1686_v41 = vld [vmem:[#allocation2 + $0x244] sm:$0xf0]  ;;  %v1678_v42 = vld [vmem:[#allocation2 + $0x20c] sm:$0xf]  ;;  %v1359_v44 = vor.u32 %v1685_v36, %v1358_v35  ;;  %v1363_v45 = vor.u32 %v1677_v37, %v1360_v39  ;;  %v1294_v47 = vld [vmem:[#allocation2 + $0x180] sm:$0xf] }
  0x10   :  { %v1368_v43 = vld [vmem:[#allocation2 + $0x248] sm:$0xf0]  ;;  %v1367_v46 = vor.u32 %v1686_v41, %v1366_v40  ;;  %v1669_v48 = vld [vmem:[#allocation2 + $0x1bc] sm:$0xf0]  ;;  %v1661_v49 = vld [vmem:[#allocation2 + $0x184] sm:$0xf] }
  0x11   :  { %805 = vmatpush.bf16.msra.mxu0 %v1423_v29  ;;  %819 = vmatpush.bf16.msra.mxu1 %v1427_v33  ;;  %v1371_v50 = vor.u32 %v1678_v42, %v1368_v43  ;;  %v1296_v51 = vld [vmem:[#allocation2 + $0x1c0] sm:$0xf0]  ;;  %v1302_v52 = vld [vmem:[#allocation2 + $0x188] sm:$0xf]  ;;  %v1662_v54 = vld [vmem:[#allocation2 + $0x18c] sm:$0xf]  ;;  %v1295_v56 = vor.u32 %v1669_v48, %v1294_v47 }
  0x12   :  { %833 = vmatpush.bf16.msra.mxu2 %v1431_v34  ;;  %v1670_v53 = vld [vmem:[#allocation2 + $0x1c4] sm:$0xf0]  ;;  %v1304_v55 = vld [vmem:[#allocation2 + $0x1c8] sm:$0xf0]  ;;  %v1299_v57 = vor.u32 %v1661_v49, %v1296_v51  ;;  %v1230_v59 = vld [vmem:[#allocation2 + $0x100] sm:$0xf] }
  0x13   :  { %847 = vmatpush.bf16.msra.mxu3 %v1435_v38  ;;  %v1303_v58 = vor.u32 %v1670_v53, %v1302_v52  ;;  %v1653_v60 = vld [vmem:[#allocation2 + $0x13c] sm:$0xf0]  ;;  %v1645_v61 = vld [vmem:[#allocation2 + $0x104] sm:$0xf]  ;;  %v1307_v62 = vor.u32 %v1662_v54, %v1304_v55  ;;  %v1238_v0 = vld [vmem:[#allocation2 + $0x108] sm:$0xf] }
  0x14   :  { %v1232_v63 = vld [vmem:[#allocation2 + $0x140] sm:$0xf0]  ;;  %v1654_v1 = vld [vmem:[#allocation2 + $0x144] sm:$0xf0]  ;;  %v1646_v2 = vld [vmem:[#allocation2 + $0x10c] sm:$0xf]  ;;  %v1231_v4 = vor.u32 %v1653_v60, %v1230_v59 }
  0x15   :  { %806 = vmatpush.bf16.msra.mxu0 %v1359_v44  ;;  %820 = vmatpush.bf16.msra.mxu1 %v1363_v45  ;;  %v1240_v3 = vld [vmem:[#allocation2 + $0x148] sm:$0xf0]  ;;  %v1235_v5 = vor.u32 %v1645_v61, %v1232_v63  ;;  %v1239_v6 = vor.u32 %v1654_v1, %v1238_v0  ;;  %v1166_v7 = vld [vmem:[#allocation2 + $0x80] sm:$0xf]  ;;  %v1629_v9 = vld [vmem:[#allocation2 + $0x84] sm:$0xf] }
  0x16   :  { %834 = vmatpush.bf16.msra.mxu2 %v1367_v46  ;;  %v1637_v8 = vld [vmem:[#allocation2 + $0xbc] sm:$0xf0]  ;;  %v1243_v10 = vor.u32 %v1646_v2, %v1240_v3  ;;  %v1168_v11 = vld [vmem:[#allocation2 + $0xc0] sm:$0xf0]  ;;  %v1174_v12 = vld [vmem:[#allocation2 + $0x88] sm:$0xf] }
  0x17   :  { %848 = vmatpush.bf16.msra.mxu3 %v1371_v50  ;;  %v1638_v13 = vld [vmem:[#allocation2 + $0xc4] sm:$0xf0]  ;;  %v1630_v14 = vld [vmem:[#allocation2 + $0x8c] sm:$0xf]  ;;  %v1167_v16 = vor.u32 %v1637_v8, %v1166_v7  ;;  %v1102_v17 = vld [vmem:[#allocation2] sm:$0xf]  ;;  %v1171_v19 = vor.u32 %v1629_v9, %v1168_v11 }
  0x18   :  { %v1176_v15 = vld [vmem:[#allocation2 + $0xc8] sm:$0xf0]  ;;  %v1621_v18 = vld [vmem:[#allocation2 + $0x3c] sm:$0xf0]  ;;  %v1175_v20 = vor.u32 %v1638_v13, %v1174_v12  ;;  %v1613_v21 = vld [vmem:[#allocation2 + $0x4] sm:$0xf] }
  0x19   :  { %807 = vmatpush.bf16.msra.mxu0 %v1295_v56  ;;  %821 = vmatpush.bf16.msra.mxu1 %v1299_v57  ;;  %v1104_v22 = vld [vmem:[#allocation2 + $0x40] sm:$0xf0]  ;;  %v1110_v23 = vld [vmem:[#allocation2 + $0x8] sm:$0xf]  ;;  %v1179_v24 = vor.u32 %v1630_v14, %v1176_v15  ;;  %v1614_v26 = vld [vmem:[#allocation2 + $0xc] sm:$0xf]  ;;  %v1103_v31 = vor.u32 %v1621_v18, %v1102_v17 }
  0x1a   :  { %835 = vmatpush.bf16.msra.mxu2 %v1303_v58  ;;  %v1622_v25 = vld [vmem:[#allocation2 + $0x44] sm:$0xf0]  ;;  %v1112_v27 = vld [vmem:[#allocation2 + $0x48] sm:$0xf0]  ;;  %v1566_v28 = vld [vmem:[#allocation2 + $0x390] sm:$0xf]  ;;  %v1107_v35 = vor.u32 %v1613_v21, %v1104_v22 }
  0x1b   :  { %849 = vmatpush.bf16.msra.mxu3 %v1307_v62  ;;  %v1735_v29 = vld [vmem:[#allocation2 + $0x3cc] sm:$0xf0]  ;;  %v1727_v30 = vld [vmem:[#allocation2 + $0x394] sm:$0xf]  ;;  %v1574_v33 = vld [vmem:[#allocation2 + $0x398] sm:$0xf]  ;;  %v1111_v36 = vor.u32 %v1622_v25, %v1110_v23  ;;  %v1115_v39 = vor.u32 %v1614_v26, %v1112_v27 }
  0x1c   :  { %v1568_v32 = vld [vmem:[#allocation2 + $0x3d0] sm:$0xf0]  ;;  %v1736_v34 = vld [vmem:[#allocation2 + $0x3d4] sm:$0xf0]  ;;  %v1728_v37 = vld [vmem:[#allocation2 + $0x39c] sm:$0xf]  ;;  %v1567_v40 = vor.u32 %v1735_v29, %v1566_v28 }
  0x1d   :  { %808 = vmatpush.bf16.msra.mxu0 %v1231_v4  ;;  %822 = vmatpush.bf16.msra.mxu1 %v1235_v5  ;;  %v1576_v38 = vld [vmem:[#allocation2 + $0x3d8] sm:$0xf0]  ;;  %v1571_v41 = vor.u32 %v1727_v30, %v1568_v32  ;;  %v1575_v42 = vor.u32 %v1736_v34, %v1574_v33  ;;  %v1502_v43 = vld [vmem:[#allocation2 + $0x310] sm:$0xf]  ;;  %v1711_v45 = vld [vmem:[#allocation2 + $0x314] sm:$0xf] }
  0x1e   :  { %836 = vmatpush.bf16.msra.mxu2 %v1239_v6  ;;  %v1719_v44 = vld [vmem:[#allocation2 + $0x34c] sm:$0xf0]  ;;  %v1579_v46 = vor.u32 %v1728_v37, %v1576_v38  ;;  %v1504_v47 = vld [vmem:[#allocation2 + $0x350] sm:$0xf0]  ;;  %v1510_v48 = vld [vmem:[#allocation2 + $0x318] sm:$0xf] }
  0x1f   :  { %850 = vmatpush.bf16.msra.mxu3 %v1243_v10  ;;  %v1720_v49 = vld [vmem:[#allocation2 + $0x354] sm:$0xf0]  ;;  %v1712_v50 = vld [vmem:[#allocation2 + $0x31c] sm:$0xf]  ;;  %v1503_v52 = vor.u32 %v1719_v44, %v1502_v43  ;;  %v1507_v53 = vor.u32 %v1711_v45, %v1504_v47  ;;  %v1438_v55 = vld [vmem:[#allocation2 + $0x290] sm:$0xf] }
  0x20   :  { %v1512_v51 = vld [vmem:[#allocation2 + $0x358] sm:$0xf0]  ;;  %v1511_v54 = vor.u32 %v1720_v49, %v1510_v48  ;;  %v1703_v56 = vld [vmem:[#allocation2 + $0x2cc] sm:$0xf0]  ;;  %v1695_v57 = vld [vmem:[#allocation2 + $0x294] sm:$0xf] }
  0x21   :  { %809 = vmatpush.bf16.msra.mxu0 %v1167_v16  ;;  %823 = vmatpush.bf16.msra.mxu1 %v1171_v19  ;;  %v1515_v58 = vor.u32 %v1712_v50, %v1512_v51  ;;  %v1440_v59 = vld [vmem:[#allocation2 + $0x2d0] sm:$0xf0]  ;;  %v1446_v60 = vld [vmem:[#allocation2 + $0x298] sm:$0xf]  ;;  %v1696_v62 = vld [vmem:[#allocation2 + $0x29c] sm:$0xf]  ;;  %v1439_v0 = vor.u32 %v1703_v56, %v1438_v55 }
  0x22   :  { %837 = vmatpush.bf16.msra.mxu2 %v1175_v20  ;;  %v1704_v61 = vld [vmem:[#allocation2 + $0x2d4] sm:$0xf0]  ;;  %v1448_v63 = vld [vmem:[#allocation2 + $0x2d8] sm:$0xf0]  ;;  %v1794_v1 = vld [vmem:[%s1860_s0] sm:$0xff]  ;;  %v1443_v2 = vor.u32 %v1695_v57, %v1440_v59 }
  0x23   :  { %851 = vmatpush.bf16.msra.mxu3 %v1179_v24  ;;  %v1447_v3 = vor.u32 %v1704_v61, %v1446_v60  ;;  %v1374_v4 = vld [vmem:[#allocation2 + $0x210] sm:$0xf]  ;;  %v1679_v6 = vld [vmem:[#allocation2 + $0x214] sm:$0xf]  ;;  %v1451_v7 = vor.u32 %v1696_v62, %v1448_v63  ;;  %v1382_v9 = vld [vmem:[#allocation2 + $0x218] sm:$0xf] }
  0x24   :  { %v1687_v5 = vld [vmem:[#allocation2 + $0x24c] sm:$0xf0]  ;;  %v1376_v8 = vld [vmem:[#allocation2 + $0x250] sm:$0xf0]  ;;  %v1688_v10 = vld [vmem:[#allocation2 + $0x254] sm:$0xf0] }
  0x25   :  { %810 = vmatpush.bf16.msra.mxu0 %v1103_v31  ;;  %824 = vmatpush.bf16.msra.mxu1 %v1107_v35  ;;  %v1680_v11 = vld [vmem:[#allocation2 + $0x21c] sm:$0xf]  ;;  %v1375_v13 = vor.u32 %v1687_v5, %v1374_v4  ;;  %v1379_v14 = vor.u32 %v1679_v6, %v1376_v8  ;;  %v1383_v15 = vor.u32 %v1688_v10, %v1382_v9  ;;  %v1310_v16 = vld [vmem:[#allocation2 + $0x190] sm:$0xf]  ;;  %v1663_v18 = vld [vmem:[#allocation2 + $0x194] sm:$0xf] }
  0x26   :  { %838 = vmatpush.bf16.msra.mxu2 %v1111_v36  ;;  %v1384_v12 = vld [vmem:[#allocation2 + $0x258] sm:$0xf0]  ;;  %v1671_v17 = vld [vmem:[#allocation2 + $0x1cc] sm:$0xf0]  ;;  %v1312_v20 = vld [vmem:[#allocation2 + $0x1d0] sm:$0xf0] }
  0x27   :  { %852 = vmatpush.bf16.msra.mxu3 %v1115_v39  ;;  %v1387_v19 = vor.u32 %v1680_v11, %v1384_v12  ;;  %v1318_v21 = vld [vmem:[#allocation2 + $0x198] sm:$0xf]  ;;  %v1664_v23 = vld [vmem:[#allocation2 + $0x19c] sm:$0xf]  ;;  %v1311_v25 = vor.u32 %v1671_v17, %v1310_v16  ;;  %v1315_v26 = vor.u32 %v1663_v18, %v1312_v20  ;;  %v1246_v28 = vld [vmem:[#allocation2 + $0x110] sm:$0xf] }
  0x28   :  { %811 = vmatmul.bf16.vlgmr.msra.gmra.mxu0 %v1794_v1  ;;  %825 = vmatmul.bf16.vlgmr.msra.gmra.mxu1 %v1794_v1  ;;  %v1672_v22 = vld [vmem:[#allocation2 + $0x1d4] sm:$0xf0]  ;;  %v1320_v24 = vld [vmem:[#allocation2 + $0x1d8] sm:$0xf0]  ;;  %v1655_v29 = vld [vmem:[#allocation2 + $0x14c] sm:$0xf0] }
  0x29   :  { %859 = vmatpush.bf16.msrb.mxu0 %v1567_v40  ;;  %873 = vmatpush.bf16.msrb.mxu1 %v1571_v41  ;;  %v1319_v27 = vor.u32 %v1672_v22, %v1318_v21  ;;  %v1647_v30 = vld [vmem:[#allocation2 + $0x114] sm:$0xf]  ;;  %v1323_v31 = vor.u32 %v1664_v23, %v1320_v24  ;;  %v1254_v33 = vld [vmem:[#allocation2 + $0x118] sm:$0xf]  ;;  %v1648_v35 = vld [vmem:[#allocation2 + $0x11c] sm:$0xf]  ;;  %v1247_v37 = vor.u32 %v1655_v29, %v1246_v28 }
  0x2a   :  { %887 = vmatpush.bf16.msrb.mxu2 %v1575_v42  ;;  %853 = vmatmul.bf16.vlgmr.msra.gmra.mxu3 %v1794_v1  ;;  %v1248_v32 = vld [vmem:[#allocation2 + $0x150] sm:$0xf0]  ;;  %v1656_v34 = vld [vmem:[#allocation2 + $0x154] sm:$0xf0]  ;;  %v1256_v36 = vld [vmem:[#allocation2 + $0x158] sm:$0xf0] }
  0x2b   :  { %901 = vmatpush.bf16.msrb.mxu3 %v1579_v46  ;;  %839 = vmatmul.bf16.vlgmr.msra.gmra.mxu2 %v1794_v1  ;;  %v1251_v38 = vor.u32 %v1647_v30, %v1248_v32  ;;  %v1255_v39 = vor.u32 %v1656_v34, %v1254_v33  ;;  %v1182_v40 = vld [vmem:[#allocation2 + $0x90] sm:$0xf]  ;;  %v1631_v42 = vld [vmem:[#allocation2 + $0x94] sm:$0xf]  ;;  %v1259_v43 = vor.u32 %v1648_v35, %v1256_v36  ;;  %v1190_v45 = vld [vmem:[#allocation2 + $0x98] sm:$0xf] }
  0x2c   :  { %v1639_v41 = vld [vmem:[#allocation2 + $0xcc] sm:$0xf0]  ;;  %v1184_v44 = vld [vmem:[#allocation2 + $0xd0] sm:$0xf0]  ;;  %v1640_v46 = vld [vmem:[#allocation2 + $0xd4] sm:$0xf0] }
  0x2d   :  { %860 = vmatpush.bf16.msrb.mxu0 %v1503_v52  ;;  %874 = vmatpush.bf16.msrb.mxu1 %v1507_v53  ;;  %v1632_v47 = vld [vmem:[#allocation2 + $0x9c] sm:$0xf]  ;;  %v1183_v49 = vor.u32 %v1639_v41, %v1182_v40  ;;  %v1118_v50 = vld [vmem:[#allocation2 + $0x10] sm:$0xf]  ;;  %v1187_v52 = vor.u32 %v1631_v42, %v1184_v44  ;;  %v1191_v53 = vor.u32 %v1640_v46, %v1190_v45  ;;  %v1120_v55 = vld [vmem:[#allocation2 + $0x50] sm:$0xf0] }
  0x2e   :  { %888 = vmatpush.bf16.msrb.mxu2 %v1511_v54  ;;  %v1192_v48 = vld [vmem:[#allocation2 + $0xd8] sm:$0xf0]  ;;  %v1623_v51 = vld [vmem:[#allocation2 + $0x4c] sm:$0xf0]  ;;  %v1615_v54 = vld [vmem:[#allocation2 + $0x14] sm:$0xf] }
  0x2f   :  { %902 = vmatpush.bf16.msrb.mxu3 %v1515_v58  ;;  %v1126_v56 = vld [vmem:[#allocation2 + $0x18] sm:$0xf]  ;;  %v1195_v57 = vor.u32 %v1632_v47, %v1192_v48  ;;  %v1616_v59 = vld [vmem:[#allocation2 + $0x1c] sm:$0xf]  ;;  %v1582_v61 = vld [vmem:[#allocation2 + $0x3a0] sm:$0xf]  ;;  %v1123_v5 = vor.u32 %v1615_v54, %v1120_v55 }
  0x30   :  { %v1624_v58 = vld [vmem:[#allocation2 + $0x54] sm:$0xf0]  ;;  %v1128_v60 = vld [vmem:[#allocation2 + $0x58] sm:$0xf0]  ;;  %v1737_v62 = vld [vmem:[#allocation2 + $0x3dc] sm:$0xf0] }
  0x31   :  { %861 = vmatpush.bf16.msrb.mxu0 %v1439_v0  ;;  %875 = vmatpush.bf16.msrb.mxu1 %v1443_v2  ;;  %v1729_v63 = vld [vmem:[#allocation2 + $0x3a4] sm:$0xf]  ;;  %v1119_v0 = vor.u32 %v1623_v51, %v1118_v50  ;;  %v1738_v4 = vld [vmem:[#allocation2 + $0x3e4] sm:$0xf0]  ;;  %v1127_v6 = vor.u32 %v1624_v58, %v1126_v56  ;;  %v1592_v8 = vld [vmem:[#allocation2 + $0x3e8] sm:$0xf0]  ;;  %v1131_v9 = vor.u32 %v1616_v59, %v1128_v60 }
  0x32   :  { %889 = vmatpush.bf16.msrb.mxu2 %v1447_v3  ;;  %v1584_v2 = vld [vmem:[#allocation2 + $0x3e0] sm:$0xf0]  ;;  %v1590_v3 = vld [vmem:[#allocation2 + $0x3a8] sm:$0xf]  ;;  %v1583_v10 = vor.u32 %v1737_v62, %v1582_v61  ;;  %v1714_v20 = vld [vmem:[#allocation2 + $0x32c] sm:$0xf] }
  0x33   :  { %903 = vmatpush.bf16.msrb.mxu3 %v1451_v7  ;;  %v1730_v7 = vld [vmem:[#allocation2 + $0x3ac] sm:$0xf]  ;;  %v1587_v11 = vor.u32 %v1729_v63, %v1584_v2  ;;  %v1591_v12 = vor.u32 %v1738_v4, %v1590_v3  ;;  %v1520_v17 = vld [vmem:[#allocation2 + $0x360] sm:$0xf0]  ;;  %v1526_v18 = vld [vmem:[#allocation2 + $0x328] sm:$0xf] }
  0x34   :  { %v1595_v16 = vor.u32 %v1730_v7, %v1592_v8  ;;  %v1528_v21 = vld [vmem:[#allocation2 + $0x368] sm:$0xf0]  ;;  %v1456_v29 = vld [vmem:[#allocation2 + $0x2e0] sm:$0xf0]  ;;  %v1462_v30 = vld [vmem:[#allocation2 + $0x2a8] sm:$0xf] }
  0x35   :  { %862 = vmatpush.bf16.msrb.mxu0 %v1375_v13  ;;  %876 = vmatpush.bf16.msrb.mxu1 %v1379_v14  ;;  %v1518_v13 = vld [vmem:[#allocation2 + $0x320] sm:$0xf]  ;;  %v1531_v28 = vor.u32 %v1714_v20, %v1528_v21  ;;  %v1698_v32 = vld [vmem:[#allocation2 + $0x2ac] sm:$0xf]  ;;  %v1392_v41 = vld [vmem:[#allocation2 + $0x260] sm:$0xf0] }
  0x36   :  { %890 = vmatpush.bf16.msrb.mxu2 %v1383_v15  ;;  %v1721_v14 = vld [vmem:[#allocation2 + $0x35c] sm:$0xf0]  ;;  %v1713_v15 = vld [vmem:[#allocation2 + $0x324] sm:$0xf]  ;;  %v1464_v33 = vld [vmem:[#allocation2 + $0x2e8] sm:$0xf0] }
  0x37   :  { %904 = vmatpush.bf16.msrb.mxu3 %v1387_v19  ;;  %v1722_v19 = vld [vmem:[#allocation2 + $0x364] sm:$0xf0]  ;;  %v1519_v22 = vor.u32 %v1721_v14, %v1518_v13  ;;  %v1523_v23 = vor.u32 %v1713_v15, %v1520_v17  ;;  %v1467_v40 = vor.u32 %v1698_v32, %v1464_v33  ;;  %v1682_v44 = vld [vmem:[#allocation2 + $0x22c] sm:$0xf]  ;;  %v1673_v50 = vld [vmem:[#allocation2 + $0x1dc] sm:$0xf0] }
  0x38   :  { %v1527_v24 = vor.u32 %v1722_v19, %v1526_v18  ;;  %v1398_v42 = vld [vmem:[#allocation2 + $0x228] sm:$0xf]  ;;  %v1400_v45 = vld [vmem:[#allocation2 + $0x268] sm:$0xf0]  ;;  %v1665_v51 = vld [vmem:[#allocation2 + $0x1a4] sm:$0xf] }
  0x39   :  { %863 = vmatpush.bf16.msrb.mxu0 %v1311_v25  ;;  %877 = vmatpush.bf16.msrb.mxu1 %v1315_v26  ;;  %v1454_v25 = vld [vmem:[#allocation2 + $0x2a0] sm:$0xf]  ;;  %v1334_v54 = vld [vmem:[#allocation2 + $0x1a8] sm:$0xf]  ;;  %v1666_v56 = vld [vmem:[#allocation2 + $0x1ac] sm:$0xf] }
  0x3a   :  { %891 = vmatpush.bf16.msrb.mxu2 %v1319_v27  ;;  %v1705_v26 = vld [vmem:[#allocation2 + $0x2dc] sm:$0xf0]  ;;  %v1697_v27 = vld [vmem:[#allocation2 + $0x2a4] sm:$0xf]  ;;  %v1674_v55 = vld [vmem:[#allocation2 + $0x1e4] sm:$0xf0] }
  0x3b   :  { %905 = vmatpush.bf16.msrb.mxu3 %v1323_v31  ;;  %v1706_v31 = vld [vmem:[#allocation2 + $0x2e4] sm:$0xf0]  ;;  %v1455_v34 = vor.u32 %v1705_v26, %v1454_v25  ;;  %v1459_v35 = vor.u32 %v1697_v27, %v1456_v29  ;;  %v1335_v60 = vor.u32 %v1674_v55, %v1334_v54  ;;  %v1262_v61 = vld [vmem:[#allocation2 + $0x120] sm:$0xf]  ;;  %v1649_v63 = vld [vmem:[#allocation2 + $0x124] sm:$0xf] }
  0x3c   :  { %v1463_v36 = vor.u32 %v1706_v31, %v1462_v30  ;;  %v1657_v62 = vld [vmem:[#allocation2 + $0x15c] sm:$0xf0]  ;;  %v1264_v2 = vld [vmem:[#allocation2 + $0x160] sm:$0xf0]  ;;  %v1270_v3 = vld [vmem:[#allocation2 + $0x128] sm:$0xf] }
  0x3d   :  { %864 = vmatpush.bf16.msrb.mxu0 %v1247_v37  ;;  %878 = vmatpush.bf16.msrb.mxu1 %v1251_v38  ;;  %v1390_v37 = vld [vmem:[#allocation2 + $0x220] sm:$0xf]  ;;  %v1658_v4 = vld [vmem:[#allocation2 + $0x164] sm:$0xf0]  ;;  %v1263_v7 = vor.u32 %v1657_v62, %v1262_v61  ;;  %v1267_v8 = vor.u32 %v1649_v63, %v1264_v2  ;;  %v1200_v14 = vld [vmem:[#allocation2 + $0xe0] sm:$0xf0] }
  0x3e   :  { %892 = vmatpush.bf16.msrb.mxu2 %v1255_v39  ;;  %v1689_v38 = vld [vmem:[#allocation2 + $0x25c] sm:$0xf0]  ;;  %v1681_v39 = vld [vmem:[#allocation2 + $0x224] sm:$0xf]  ;;  %v1206_v15 = vld [vmem:[#allocation2 + $0xa8] sm:$0xf] }
  0x3f   :  { %906 = vmatpush.bf16.msrb.mxu3 %v1259_v43  ;;  %v1690_v43 = vld [vmem:[#allocation2 + $0x264] sm:$0xf0]  ;;  %v1391_v46 = vor.u32 %v1689_v38, %v1390_v37  ;;  %v1395_v47 = vor.u32 %v1681_v39, %v1392_v41  ;;  %v1634_v17 = vld [vmem:[#allocation2 + $0xac] sm:$0xf]  ;;  %v1134_v20 = vld [vmem:[#allocation2 + $0x20] sm:$0xf] }
  0x40   :  { %v1399_v48 = vor.u32 %v1690_v43, %v1398_v42  ;;  %v1208_v18 = vld [vmem:[#allocation2 + $0xe8] sm:$0xf0]  ;;  %v1625_v21 = vld [vmem:[#allocation2 + $0x5c] sm:$0xf0]  ;;  %v1136_v25 = vld [vmem:[#allocation2 + $0x60] sm:$0xf0] }
  0x41   :  { %865 = vmatpush.bf16.msrb.mxu0 %v1183_v49  ;;  %879 = vmatpush.bf16.msrb.mxu1 %v1187_v52  ;;  %v1326_v49 = vld [vmem:[#allocation2 + $0x1a0] sm:$0xf]  ;;  %v1403_v52 = vor.u32 %v1682_v44, %v1400_v45  ;;  %v1142_v26 = vld [vmem:[#allocation2 + $0x28] sm:$0xf]  ;;  %v1211_v27 = vor.u32 %v1634_v17, %v1208_v18  ;;  %v1618_v29 = vld [vmem:[#allocation2 + $0x2c] sm:$0xf] }
  0x42   :  { %893 = vmatpush.bf16.msrb.mxu2 %v1191_v53  ;;  %v1328_v53 = vld [vmem:[#allocation2 + $0x1e0] sm:$0xf0]  ;;  %v1327_v58 = vor.u32 %v1673_v50, %v1326_v49  ;;  %v1144_v30 = vld [vmem:[#allocation2 + $0x68] sm:$0xf0]  ;;  %v1598_v31 = vld [vmem:[#allocation2 + $0x3b0] sm:$0xf] }
  0x43   :  { %907 = vmatpush.bf16.msrb.mxu3 %v1195_v57  ;;  %v1336_v57 = vld [vmem:[#allocation2 + $0x1e8] sm:$0xf0]  ;;  %v1331_v59 = vor.u32 %v1665_v51, %v1328_v53  ;;  %v1739_v32 = vld [vmem:[#allocation2 + $0x3ec] sm:$0xf0]  ;;  %v1731_v33 = vld [vmem:[#allocation2 + $0x3b4] sm:$0xf]  ;;  %v1147_v42 = vor.u32 %v1618_v29, %v1144_v30 }
  0x44   :  { %v1740_v37 = vld [vmem:[#allocation2 + $0x3f4] sm:$0xf0]  ;;  %v1608_v41 = vld [vmem:[#allocation2 + $0x3f8] sm:$0xf0]  ;;  %v1599_v43 = vor.u32 %v1739_v32, %v1598_v31  ;;  %v1536_v50 = vld [vmem:[#allocation2 + $0x370] sm:$0xf0] }
  0x45   :  { %866 = vmatpush.bf16.msrb.mxu0 %v1119_v0  ;;  %880 = vmatpush.bf16.msrb.mxu1 %v1123_v5  ;;  %v1339_v0 = vor.u32 %v1666_v56, %v1336_v57  ;;  %v1650_v5 = vld [vmem:[#allocation2 + $0x12c] sm:$0xf]  ;;  %v1542_v51 = vld [vmem:[#allocation2 + $0x338] sm:$0xf]  ;;  %v1716_v53 = vld [vmem:[#allocation2 + $0x33c] sm:$0xf] }
  0x46   :  { %894 = vmatpush.bf16.msrb.mxu2 %v1127_v6  ;;  %v1272_v6 = vld [vmem:[#allocation2 + $0x168] sm:$0xf0]  ;;  %v1544_v54 = vld [vmem:[#allocation2 + $0x378] sm:$0xf0]  ;;  %v1472_v62 = vld [vmem:[#allocation2 + $0x2f0] sm:$0xf0] }
  0x47   :  { %908 = vmatpush.bf16.msrb.mxu3 %v1131_v9  ;;  %v1271_v9 = vor.u32 %v1658_v4, %v1270_v3  ;;  %v1275_v13 = vor.u32 %v1650_v5, %v1272_v6  ;;  %v1547_v61 = vor.u32 %v1716_v53, %v1544_v54  ;;  %v1478_v63 = vld [vmem:[#allocation2 + $0x2b8] sm:$0xf]  ;;  %v1700_v2 = vld [vmem:[#allocation2 + $0x2bc] sm:$0xf]  ;;  %v1278_v31 = vld [vmem:[#allocation2 + $0x130] sm:$0xf] }
  0x48   :  { %867 = vmatmul.bf16.vlgmr.msrb.gmra.mxu0 %v1794_v1  ;;  %881 = vmatmul.bf16.vlgmr.msrb.gmra.mxu1 %v1794_v1  ;;  %v1480_v3 = vld [vmem:[#allocation2 + $0x2f8] sm:$0xf0]  ;;  %v1659_v32 = vld [vmem:[#allocation2 + $0x16c] sm:$0xf0] }
  0x49   :  { %915 = vmatpush.bf16.msra.mxu0 %v1583_v10  ;;  %929 = vmatpush.bf16.msra.mxu1 %v1587_v11  ;;  %v1198_v10 = vld [vmem:[#allocation2 + $0xa0] sm:$0xf] }
  0x4a   :  { %943 = vmatpush.bf16.msra.mxu2 %v1591_v12  ;;  %909 = vmatmul.bf16.vlgmr.msrb.gmra.mxu3 %v1794_v1  ;;  %v1641_v11 = vld [vmem:[#allocation2 + $0xdc] sm:$0xf0]  ;;  %v1633_v12 = vld [vmem:[#allocation2 + $0xa4] sm:$0xf] }
  0x4b   :  { %957 = vmatpush.bf16.msra.mxu3 %v1595_v16  ;;  %895 = vmatmul.bf16.vlgmr.msrb.gmra.mxu2 %v1794_v1  ;;  %v1642_v16 = vld [vmem:[#allocation2 + $0xe4] sm:$0xf0]  ;;  %v1199_v19 = vor.u32 %v1641_v11, %v1198_v10  ;;  %v1483_v10 = vor.u32 %v1700_v2, %v1480_v3  ;;  %v1408_v11 = vld [vmem:[#allocation2 + $0x270] sm:$0xf0] }
  0x4d   :  { %916 = vmatpush.bf16.msra.mxu0 %v1519_v22  ;;  %930 = vmatpush.bf16.msra.mxu1 %v1523_v23  ;;  %v1203_v22 = vor.u32 %v1633_v12, %v1200_v14  ;;  %v1207_v23 = vor.u32 %v1642_v16, %v1206_v15  ;;  %v1414_v12 = vld [vmem:[#allocation2 + $0x238] sm:$0xf]  ;;  %v1684_v14 = vld [vmem:[#allocation2 + $0x23c] sm:$0xf] }
  0x4e   :  { %944 = vmatpush.bf16.msra.mxu2 %v1527_v24  ;;  %v1617_v24 = vld [vmem:[#allocation2 + $0x24] sm:$0xf]  ;;  %v1416_v15 = vld [vmem:[#allocation2 + $0x278] sm:$0xf0] }
  0x4f   :  { %958 = vmatpush.bf16.msra.mxu3 %v1531_v28  ;;  %v1626_v28 = vld [vmem:[#allocation2 + $0x64] sm:$0xf0]  ;;  %v1139_v38 = vor.u32 %v1617_v24, %v1136_v25  ;;  %v1350_v24 = vld [vmem:[#allocation2 + $0x1b8] sm:$0xf] }
  0x50   :  { %v1143_v39 = vor.u32 %v1626_v28, %v1142_v26  ;;  %v1676_v25 = vld [vmem:[#allocation2 + $0x1f4] sm:$0xf0]  ;;  %v1668_v26 = vld [vmem:[#allocation2 + $0x1bc] sm:$0xf] }
  0x51   :  { %917 = vmatpush.bf16.msra.mxu0 %v1455_v34  ;;  %931 = vmatpush.bf16.msra.mxu1 %v1459_v35  ;;  %v1135_v34 = vor.u32 %v1625_v21, %v1134_v20  ;;  %v1600_v35 = vld [vmem:[#allocation2 + $0x3f0] sm:$0xf0]  ;;  %v1675_v20 = vld [vmem:[#allocation2 + $0x1ec] sm:$0xf0]  ;;  %v1351_v30 = vor.u32 %v1676_v25, %v1350_v24 }
  0x52   :  { %945 = vmatpush.bf16.msra.mxu2 %v1463_v36  ;;  %v1606_v36 = vld [vmem:[#allocation2 + $0x3b8] sm:$0xf]  ;;  %v1603_v44 = vor.u32 %v1731_v33, %v1600_v35  ;;  %v1667_v21 = vld [vmem:[#allocation2 + $0x1b4] sm:$0xf] }
  0x53   :  { %959 = vmatpush.bf16.msra.mxu3 %v1467_v40  ;;  %v1732_v40 = vld [vmem:[#allocation2 + $0x3bc] sm:$0xf]  ;;  %v1607_v45 = vor.u32 %v1740_v37, %v1606_v36  ;;  %v1651_v33 = vld [vmem:[#allocation2 + $0x134] sm:$0xf]  ;;  %v1286_v36 = vld [vmem:[#allocation2 + $0x138] sm:$0xf] }
  0x54   :  { %v1611_v49 = vor.u32 %v1732_v40, %v1608_v41  ;;  %v1280_v35 = vld [vmem:[#allocation2 + $0x170] sm:$0xf0]  ;;  %v1660_v37 = vld [vmem:[#allocation2 + $0x174] sm:$0xf0]  ;;  %v1279_v40 = vor.u32 %v1659_v32, %v1278_v31 }
  0x55   :  { %918 = vmatpush.bf16.msra.mxu0 %v1391_v46  ;;  %932 = vmatpush.bf16.msra.mxu1 %v1395_v47  ;;  %v1534_v46 = vld [vmem:[#allocation2 + $0x330] sm:$0xf]  ;;  %v1283_v41 = vor.u32 %v1651_v33, %v1280_v35 }
  0x56   :  { %946 = vmatpush.bf16.msra.mxu2 %v1399_v48  ;;  %v1723_v47 = vld [vmem:[#allocation2 + $0x36c] sm:$0xf0]  ;;  %v1715_v48 = vld [vmem:[#allocation2 + $0x334] sm:$0xf] }
  0x57   :  { %960 = vmatpush.bf16.msra.mxu3 %v1403_v52  ;;  %v1724_v52 = vld [vmem:[#allocation2 + $0x374] sm:$0xf0]  ;;  %v1535_v55 = vor.u32 %v1723_v47, %v1534_v46  ;;  %v1539_v56 = vor.u32 %v1715_v48, %v1536_v50  ;;  %v1216_v47 = vld [vmem:[#allocation2 + $0xf0] sm:$0xf0]  ;;  %v1636_v50 = vld [vmem:[#allocation2 + $0xbc] sm:$0xf] }
  0x58   :  { %v1543_v57 = vor.u32 %v1724_v52, %v1542_v51  ;;  %v1222_v48 = vld [vmem:[#allocation2 + $0xb8] sm:$0xf]  ;;  %v1224_v51 = vld [vmem:[#allocation2 + $0xf8] sm:$0xf0] }
  0x59   :  { %919 = vmatpush.bf16.msra.mxu0 %v1327_v58  ;;  %933 = vmatpush.bf16.msra.mxu1 %v1331_v59  ;;  %v1470_v58 = vld [vmem:[#allocation2 + $0x2b0] sm:$0xf] }
  0x5a   :  { %947 = vmatpush.bf16.msra.mxu2 %v1335_v60  ;;  %v1707_v59 = vld [vmem:[#allocation2 + $0x2ec] sm:$0xf0]  ;;  %v1699_v60 = vld [vmem:[#allocation2 + $0x2b4] sm:$0xf] }
  0x5b   :  { %961 = vmatpush.bf16.msra.mxu3 %v1339_v0  ;;  %v1708_v0 = vld [vmem:[#allocation2 + $0x2f4] sm:$0xf0]  ;;  %v1471_v4 = vor.u32 %v1707_v59, %v1470_v58  ;;  %v1475_v5 = vor.u32 %v1699_v60, %v1472_v62  ;;  %v1227_v58 = vor.u32 %v1636_v50, %v1224_v51  ;;  %v1152_v59 = vld [vmem:[#allocation2 + $0x70] sm:$0xf0]  ;;  %v1620_v62 = vld [vmem:[#allocation2 + $0x3c] sm:$0xf] }
  0x5c   :  { %v1479_v6 = vor.u32 %v1708_v0, %v1478_v63  ;;  %v1158_v60 = vld [vmem:[#allocation2 + $0x38] sm:$0xf]  ;;  %v1160_v63 = vld [vmem:[#allocation2 + $0x78] sm:$0xf0] }
  0x5d   :  { %920 = vmatpush.bf16.msra.mxu0 %v1263_v7  ;;  %934 = vmatpush.bf16.msra.mxu1 %v1267_v8  ;;  %v1406_v7 = vld [vmem:[#allocation2 + $0x230] sm:$0xf] }
  0x5e   :  { %948 = vmatpush.bf16.msra.mxu2 %v1271_v9  ;;  %v1691_v8 = vld [vmem:[#allocation2 + $0x26c] sm:$0xf0]  ;;  %v1683_v9 = vld [vmem:[#allocation2 + $0x234] sm:$0xf] }
  0x5f   :  { %962 = vmatpush.bf16.msra.mxu3 %v1275_v13  ;;  %v1692_v13 = vld [vmem:[#allocation2 + $0x274] sm:$0xf0]  ;;  %v1407_v16 = vor.u32 %v1691_v8, %v1406_v7  ;;  %v1411_v17 = vor.u32 %v1683_v9, %v1408_v11 }
  0x60   :  { %v1415_v18 = vor.u32 %v1692_v13, %v1414_v12 }
  0x61   :  { %921 = vmatpush.bf16.msra.mxu0 %v1199_v19  ;;  %935 = vmatpush.bf16.msra.mxu1 %v1203_v22  ;;  %v1342_v19 = vld [vmem:[#allocation2 + $0x1b0] sm:$0xf]  ;;  %v1419_v22 = vor.u32 %v1684_v14, %v1416_v15 }
  0x62   :  { %949 = vmatpush.bf16.msra.mxu2 %v1207_v23  ;;  %v1344_v23 = vld [vmem:[#allocation2 + $0x1f0] sm:$0xf0]  ;;  %v1343_v28 = vor.u32 %v1675_v20, %v1342_v19 }
  0x63   :  { %963 = vmatpush.bf16.msra.mxu3 %v1211_v27  ;;  %v1352_v27 = vld [vmem:[#allocation2 + $0x1f8] sm:$0xf0]  ;;  %v1347_v29 = vor.u32 %v1667_v21, %v1344_v23 }
  0x65   :  { %922 = vmatpush.bf16.msra.mxu0 %v1135_v34  ;;  %936 = vmatpush.bf16.msra.mxu1 %v1139_v38  ;;  %v1355_v34 = vor.u32 %v1668_v26, %v1352_v27  ;;  %v1652_v38 = vld [vmem:[#allocation2 + $0x13c] sm:$0xf] }
  0x66   :  { %950 = vmatpush.bf16.msra.mxu2 %v1143_v39  ;;  %v1288_v39 = vld [vmem:[#allocation2 + $0x178] sm:$0xf0] }
  0x67   :  { %964 = vmatpush.bf16.msra.mxu3 %v1147_v42  ;;  %v1287_v42 = vor.u32 %v1660_v37, %v1286_v36  ;;  %v1291_v46 = vor.u32 %v1652_v38, %v1288_v39 }
  0x68   :  { %923 = vmatmul.bf16.vlgmr.msra.gmra.mxu0 %v1794_v1  ;;  %937 = vmatmul.bf16.vlgmr.msra.gmra.mxu1 %v1794_v1 }
  0x69   :  { %971 = vmatpush.bf16.msrb.mxu0 %v1599_v43  ;;  %985 = vmatpush.bf16.msrb.mxu1 %v1603_v44  ;;  %v1214_v43 = vld [vmem:[#allocation2 + $0xb0] sm:$0xf] }
  0x6a   :  { %999 = vmatpush.bf16.msrb.mxu2 %v1607_v45  ;;  %965 = vmatmul.bf16.vlgmr.msra.gmra.mxu3 %v1794_v1  ;;  %v1643_v44 = vld [vmem:[#allocation2 + $0xec] sm:$0xf0]  ;;  %v1635_v45 = vld [vmem:[#allocation2 + $0xb4] sm:$0xf] }
  0x6b   :  { %1013 = vmatpush.bf16.msrb.mxu3 %v1611_v49  ;;  %951 = vmatmul.bf16.vlgmr.msra.gmra.mxu2 %v1794_v1  ;;  %v1644_v49 = vld [vmem:[#allocation2 + $0xf4] sm:$0xf0]  ;;  %v1215_v52 = vor.u32 %v1643_v44, %v1214_v43  ;;  %v1219_v53 = vor.u32 %v1635_v45, %v1216_v47 }
  0x6c   :  { %v1223_v54 = vor.u32 %v1644_v49, %v1222_v48 }
  0x6d   :  { %972 = vmatpush.bf16.msrb.mxu0 %v1535_v55  ;;  %986 = vmatpush.bf16.msrb.mxu1 %v1539_v56  ;;  %v1150_v55 = vld [vmem:[#allocation2 + $0x30] sm:$0xf] }
  0x6e   :  { %1000 = vmatpush.bf16.msrb.mxu2 %v1543_v57  ;;  %v1627_v56 = vld [vmem:[#allocation2 + $0x6c] sm:$0xf0]  ;;  %v1619_v57 = vld [vmem:[#allocation2 + $0x34] sm:$0xf] }
  0x6f   :  { %1014 = vmatpush.bf16.msrb.mxu3 %v1547_v61  ;;  %v1628_v61 = vld [vmem:[#allocation2 + $0x74] sm:$0xf0]  ;;  %v1151_v0 = vor.u32 %v1627_v56, %v1150_v55  ;;  %v1155_v2 = vor.u32 %v1619_v57, %v1152_v59 }
  0x70   :  { %v1159_v3 = vor.u32 %v1628_v61, %v1158_v60 }
  0x71   :  { %973 = vmatpush.bf16.msrb.mxu0 %v1471_v4  ;;  %987 = vmatpush.bf16.msrb.mxu1 %v1475_v5  ;;  %v1163_v4 = vor.u32 %v1620_v62, %v1160_v63 }
  0x72   :  { %1001 = vmatpush.bf16.msrb.mxu2 %v1479_v6 }
  0x73   :  { %1015 = vmatpush.bf16.msrb.mxu3 %v1483_v10 }
  0x75   :  { %974 = vmatpush.bf16.msrb.mxu0 %v1407_v16  ;;  %988 = vmatpush.bf16.msrb.mxu1 %v1411_v17 }
  0x76   :  { %1002 = vmatpush.bf16.msrb.mxu2 %v1415_v18 }
  0x77   :  { %1016 = vmatpush.bf16.msrb.mxu3 %v1419_v22 }
  0x79   :  { %975 = vmatpush.bf16.msrb.mxu0 %v1343_v28  ;;  %989 = vmatpush.bf16.msrb.mxu1 %v1347_v29 }
  0x7a   :  { %1003 = vmatpush.bf16.msrb.mxu2 %v1351_v30 }
  0x7b   :  { %1017 = vmatpush.bf16.msrb.mxu3 %v1355_v34 }
  0x7d   :  { %976 = vmatpush.bf16.msrb.mxu0 %v1279_v40  ;;  %990 = vmatpush.bf16.msrb.mxu1 %v1283_v41 }
  0x7e   :  { %1004 = vmatpush.bf16.msrb.mxu2 %v1287_v42 }
  0x7f   :  { %1018 = vmatpush.bf16.msrb.mxu3 %v1291_v46 }
  0x81   :  { %977 = vmatpush.bf16.msrb.mxu0 %v1215_v52  ;;  %991 = vmatpush.bf16.msrb.mxu1 %v1219_v53 }
  0x82   :  { %1005 = vmatpush.bf16.msrb.mxu2 %v1223_v54 }
  0x83   :  { %1019 = vmatpush.bf16.msrb.mxu3 %v1227_v58 }
  0x85   :  { %978 = vmatpush.bf16.msrb.mxu0 %v1151_v0  ;;  %992 = vmatpush.bf16.msrb.mxu1 %v1155_v2 }
  0x86   :  { %1006 = vmatpush.bf16.msrb.mxu2 %v1159_v3 }
  0x87   :  { %1020 = vmatpush.bf16.msrb.mxu3 %v1163_v4 }
  0x88   :  { %979 = vmatmul.bf16.vlgmr.msrb.gmra.mxu0 %v1794_v1  ;;  %993 = vmatmul.bf16.vlgmr.msrb.gmra.mxu1 %v1794_v1 }
  0x89   :  { %1007 = vmatmul.bf16.vlgmr.msrb.gmra.mxu2 %v1794_v1 }
  0x8a   :  { %1021 = vmatmul.bf16.vlgmr.msrb.gmra.mxu3 %v1794_v1 }
  0xa5   :  { %v812_v5 = vpop.f32.mrf.mxu0  ;;  %v826_v7 = vpop.f32.mrf.mxu1 }
  0xa6   :  { %v1027_v6 = vmax.f32 %v812_v5, 0.0  ;;  %v1028_v8 = vmax.f32 %v826_v7, 0.0 }
  0xa8   :  { %v1059_v9 = vpack.c.bf16 %v1028_v8, %v1027_v6 }
  0xaa   :  { %1075 = vst [vmem:[%s1862_s2] sm:$0xff] %v1059_v9 }
  0xad   :  { %v854_v12 = vpop.f32.mrf.mxu3  ;;  %v814_v14 = vpop.f32.mrf.mxu0 }
  0xae   :  { %v840_v10 = vpop.f32.mrf.mxu2  ;;  %v1030_v13 = vmax.f32 %v854_v12, 0.0  ;;  %v1043_v16 = vmax.f32 %v814_v14, 0.0  ;;  %v828_v17 = vpop.f32.mrf.mxu1 }
  0xaf   :  { %v1029_v11 = vmax.f32 %v840_v10, 0.0  ;;  %v1044_v18 = vmax.f32 %v828_v17, 0.0 }
  0xb1   :  { %v1060_v15 = vpack.c.bf16 %v1030_v13, %v1029_v11  ;;  %v1067_v1 = vpack.c.bf16 %v1044_v18, %v1043_v16 }
  0xb3   :  { %1076 = vst [vmem:[%s1862_s2 + $0x8] sm:$0xff] %v1060_v15 }
  0xb4   :  { %1083 = vst [vmem:[%s1862_s2 + $0x40] sm:$0xff] %v1067_v1 }
  0xb5   :  { %v856_v21 = vpop.f32.mrf.mxu3 }
  0xb6   :  { %v842_v19 = vpop.f32.mrf.mxu2  ;;  %v1046_v22 = vmax.f32 %v856_v21, 0.0 }
  0xb7   :  { %v1045_v20 = vmax.f32 %v842_v19, 0.0 }
  0xb9   :  { %v1068_v23 = vpack.c.bf16 %v1046_v22, %v1045_v20 }
  0xbb   :  { %1084 = vst [vmem:[%s1862_s2 + $0x48] sm:$0xff] %v1068_v23 }
  0xc5   :  { %v868_v24 = vpop.f32.mrf.mxu0  ;;  %v882_v26 = vpop.f32.mrf.mxu1 }
  0xc6   :  { %v1031_v25 = vmax.f32 %v868_v24, 0.0  ;;  %v1032_v27 = vmax.f32 %v882_v26, 0.0 }
  0xc8   :  { %v1061_v28 = vpack.c.bf16 %v1032_v27, %v1031_v25 }
  0xca   :  { %1077 = vst [vmem:[%s1862_s2 + $0x10] sm:$0xff] %v1061_v28 }
  0xcd   :  { %v910_v31 = vpop.f32.mrf.mxu3  ;;  %v870_v33 = vpop.f32.mrf.mxu0 }
  0xce   :  { %v896_v29 = vpop.f32.mrf.mxu2  ;;  %v1034_v32 = vmax.f32 %v910_v31, 0.0  ;;  %v1047_v35 = vmax.f32 %v870_v33, 0.0  ;;  %v884_v36 = vpop.f32.mrf.mxu1 }
  0xcf   :  { %v1033_v30 = vmax.f32 %v896_v29, 0.0  ;;  %v1048_v37 = vmax.f32 %v884_v36, 0.0 }
  0xd1   :  { %v1062_v34 = vpack.c.bf16 %v1034_v32, %v1033_v30  ;;  %v1069_v38 = vpack.c.bf16 %v1048_v37, %v1047_v35 }
  0xd3   :  { %1078 = vst [vmem:[%s1862_s2 + $0x18] sm:$0xff] %v1062_v34 }
  0xd4   :  { %1085 = vst [vmem:[%s1862_s2 + $0x50] sm:$0xff] %v1069_v38 }
  0xd5   :  { %v912_v41 = vpop.f32.mrf.mxu3 }
  0xd6   :  { %v898_v39 = vpop.f32.mrf.mxu2  ;;  %v1050_v42 = vmax.f32 %v912_v41, 0.0 }
  0xd7   :  { %v1049_v40 = vmax.f32 %v898_v39, 0.0 }
  0xd9   :  { %v1070_v43 = vpack.c.bf16 %v1050_v42, %v1049_v40 }
  0xdb   :  { %1086 = vst [vmem:[%s1862_s2 + $0x58] sm:$0xff] %v1070_v43 }
  0xe5   :  { %v924_v44 = vpop.f32.mrf.mxu0  ;;  %v938_v46 = vpop.f32.mrf.mxu1 }
  0xe6   :  { %v1035_v45 = vmax.f32 %v924_v44, 0.0  ;;  %v1036_v47 = vmax.f32 %v938_v46, 0.0 }
  0xe8   :  { %v1063_v48 = vpack.c.bf16 %v1036_v47, %v1035_v45 }
  0xea   :  { %1079 = vst [vmem:[%s1862_s2 + $0x20] sm:$0xff] %v1063_v48 }
  0xed   :  { %v966_v51 = vpop.f32.mrf.mxu3  ;;  %v926_v53 = vpop.f32.mrf.mxu0 }
  0xee   :  { %v952_v49 = vpop.f32.mrf.mxu2  ;;  %v1038_v52 = vmax.f32 %v966_v51, 0.0  ;;  %v1051_v55 = vmax.f32 %v926_v53, 0.0  ;;  %v940_v56 = vpop.f32.mrf.mxu1 }
  0xef   :  { %v1037_v50 = vmax.f32 %v952_v49, 0.0  ;;  %v1052_v57 = vmax.f32 %v940_v56, 0.0 }
  0xf1   :  { %v1064_v54 = vpack.c.bf16 %v1038_v52, %v1037_v50  ;;  %v1071_v58 = vpack.c.bf16 %v1052_v57, %v1051_v55 }
  0xf3   :  { %1080 = vst [vmem:[%s1862_s2 + $0x28] sm:$0xff] %v1064_v54 }
  0xf4   :  { %1087 = vst [vmem:[%s1862_s2 + $0x60] sm:$0xff] %v1071_v58 }
  0xf5   :  { %v968_v61 = vpop.f32.mrf.mxu3 }
  0xf6   :  { %v954_v59 = vpop.f32.mrf.mxu2  ;;  %v1054_v62 = vmax.f32 %v968_v61, 0.0 }
  0xf7   :  { %v1053_v60 = vmax.f32 %v954_v59, 0.0 }
  0xf9   :  { %v1072_v63 = vpack.c.bf16 %v1054_v62, %v1053_v60 }
  0xfb   :  { %1088 = vst [vmem:[%s1862_s2 + $0x68] sm:$0xff] %v1072_v63 }
 0x105   :  { %v980_v0 = vpop.f32.mrf.mxu0  ;;  %v994_v3 = vpop.f32.mrf.mxu1 }
 0x106   :  { %v1039_v2 = vmax.f32 %v980_v0, 0.0  ;;  %v1040_v4 = vmax.f32 %v994_v3, 0.0 }
 0x108   :  { %v1065_v5 = vpack.c.bf16 %v1040_v4, %v1039_v2 }
 0x10a   :  { %1081 = vst [vmem:[%s1862_s2 + $0x30] sm:$0xff] %v1065_v5 }
 0x10c   :  { %v1008_v6 = vpop.f32.mrf.mxu2 }
 0x10d   :  { %v1041_v7 = vmax.f32 %v1008_v6, 0.0  ;;  %v1022_v8 = vpop.f32.mrf.mxu3  ;;  %v982_v9 = vpop.f32.mrf.mxu0 }
 0x10e   :  { %v1042_v10 = vmax.f32 %v1022_v8, 0.0  ;;  %v1055_v11 = vmax.f32 %v982_v9, 0.0  ;;  %v996_v12 = vpop.f32.mrf.mxu1 }
 0x10f   :  { %v1056_v13 = vmax.f32 %v996_v12, 0.0 }
 0x110   :  { %v1066_v14 = vpack.c.bf16 %v1042_v10, %v1041_v7 }
 0x111   :  { %v1073_v15 = vpack.c.bf16 %v1056_v13, %v1055_v11 }
 0x112   :  { %1082 = vst [vmem:[%s1862_s2 + $0x38] sm:$0xff] %v1066_v14 }
 0x113   :  { %1089 = vst [vmem:[%s1862_s2 + $0x70] sm:$0xff] %v1073_v15 }
 0x114   :  { %v1010_v16 = vpop.f32.mrf.mxu2 }
 0x115   :  { %v1057_v17 = vmax.f32 %v1010_v16, 0.0  ;;  %v1024_v18 = vpop.f32.mrf.mxu3 }
 0x116   :  { %v1058_v1 = vmax.f32 %v1024_v18, 0.0 }
 0x118   :  { %v1074_v19 = vpack.c.bf16 %v1058_v1, %v1057_v17 }
 0x11a   :  { %1090 = vst [vmem:[%s1862_s2 + $0x78] sm:$0xff] %v1074_v19 }
 0x11b   :  { %1095 = vsyncpa [#allocation3], 1 }

// kernel: generator_forward.5
= control target key start
LH: loop header
LB: loop body
LE: loop exit
PB: predicated region body
PF: predicated region fallthrough
CT: control target
= control target key end

     0   :  { %s1761_s0 = inlined_call_operand.vmem [shape: bf16[4,32,512], index: 0, kind: input, shape index: {}]   ;;  %s1762_s1 = inlined_call_operand.hbm [shape: bf16[4,512,128], index: 1, kind: input, shape index: {}]   ;;  %s1763_s2 = inlined_call_operand.hbm [shape: f32[1,128], index: 2, kind: input, shape index: {}]   ;;  %s1764_s3 = inlined_call_operand.hbm [shape: f32[1,128], index: 3, kind: input, shape index: {}]   ;;  %s1765_s4 = inlined_call_operand.vmem [shape: bf16[4,32,128], index: 4, kind: output, shape index: {}]  }
   0x1   :  { %1766 = sst [smem:[#allocation12_spill]] %s1763_s2 }
   0x2   :  { %1767 = sst [smem:[#allocation13_spill]] %s1764_s3 }
   0x3   :  { %9 = vsyncpa [#allocation6], 0 }
   0x4   :  { %11 = vsyncpa [#allocation6 + $0x1], 0 }
   0x5   :  { %12 = vsyncpa [#allocation8], 0  ;;  %s1552_s15 = smov 0   ;;  %s1554_s16 = smov 0  }
   0x6   :  { %s1556_s17 = smov 0   ;;  %s1558_s18 = smov 0  }
   0x7   :  { %s1560_s19 = smov 0   ;;  %s1562_s20 = smov 0  }
   0x8   :  { %s1564_s21 = smov 0   ;;  %s1566_s22 = smov 0  }
   0x9 LB: > { %s996_s23 = sadd.s32 4294967295, %s1520_s22   ;;  %s76_s24 = sadd.s32 1, %s1500_s17  ;;  %s1520_s22 = sphi %s1566_s22, %s18_s22   ;;  %s1516_s21 = sphi %s1564_s21, %s1782_s21   ;;  %s1512_s20 = sphi %s1562_s20, %s1781_s20   ;;  %s1508_s19 = sphi %s1560_s19, %s1780_s19   ;;  %s1504_s18 = sphi %s1558_s18, %s1779_s18   ;;  %s1500_s17 = sphi %s1556_s17, %s1778_s17   ;;  %s1496_s16 = sphi %s1554_s16, %s1777_s16   ;;  %s1492_s15 = sphi %s1552_s15, %s1776_s15  }
   0xa   : > { %p83_p0 = scmp.ne.s32.totalorder %s1500_s17, %s1496_s16  ;;  %p84_p1 = scmp.eq.s32.totalorder %s1520_s22, 0 }
   0xb   : > { %p89_p2 = scmp.ne.s32.totalorder %s1496_s16, %s1492_s15  ;;  %p1596_p3 = scmp.eq.s32.totalorder %s996_s23, 0 }
   0xc   : > { %p1600_p4 = por %p84_p1, %p83_p0  ;;  %p998_p5 = scmp.ge.s32.totalorder %s1520_s22, 1 }
   0xd   : > { %p1607_p6 = por %p1596_p3, %p89_p2  ;;  %p174_p7 = scmp.lt.s32.totalorder %s1520_s22, 9 }
   0xe   : > { %s1771_s2 = sld [smem:[#allocation12_spill]]  ;;  %s1522_s6 = smov [#allocation7]  }
   0xf   : > { %p1615_p8 = pnand %p998_p5, %p174_p7  ;;  %s188_s7 = sshll.u32 %s1522_s6, 4  ;;  %s189_s7 = int_to_ptr.vmem [resolvable:$true] %s188_s7 }
  0x10   : > { %p1284_p10 = scmp.lt.s32.totalorder %s1520_s22, 8  ;;  %s1773_s3 = sld [smem:[#allocation13_spill]] }
  0x11   : > { %p1271_p9 = pneg %p1615_p8  ;;  %s1523_s12 = smov [#allocation9]  }
  0x12   : > { %p1629_p12 = pnand %p1284_p10, %p1600_p4  ;;  %s200_s13 = sshll.u32 %s1523_s12, 4  ;;  %s201_s13 = int_to_ptr.vmem [resolvable:$true] %s200_s13 }
  0x13   : > { %p1272_p11 = pnand %p1271_p9, %p1596_p3  ;;  %s33_s14 = sadd.s32 1, %s1512_s20 }
  0x14   : > { %s186_s30 = sshll.u32 %s1771_s2, 4  ;;  %p35_p13 = scmp.ge.s32.totalorder %s33_s14, 4  ;;  %s187_s30 = int_to_ptr.hbm [resolvable:$true] %s186_s30 }
  0x15   : > { %1274 = dma.hbm_to_vmem [thread:$0]  (!%p1272_p11), %s187_s30, 16, %s189_s7, [#allocation8]  }
  0x16   : > { %s198_s10 = sshll.u32 %s1773_s3, 4  ;;  %s37_s15 = sadd.s32 1, %s1516_s21  ;;  %s199_s10 = int_to_ptr.hbm [resolvable:$true] %s198_s10 }
  0x17   : > { %1277 = dma.hbm_to_vmem [thread:$0]  (!%p1272_p11), %s199_s10, 16, %s201_s13, [#allocation8]  }
  0x18   : > { %s229_s23 = sand.u32 1, %s1500_s17   ;;  %s1183_s28 = sshll.u32 %s1512_s20, 8 }
  0x19   : > { %s1784_s14 = smov (%p35_p13, %s33_s14), 0  ;;  %s1786_s15 = smov (!%p35_p13, %s37_s15), %s1516_s21 }
  0x1a   : > { %s73_s26 = ssub.s32 %s1512_s20, %s1784_s14  ;;  %p39_p0 = scmp.ge.s32.totalorder %s1786_s15, 2 }
  0x1b   : > { %p74_p1 = scmp.eq.s32.totalorder %s73_s26, 0  ;;  %s1002_s29 = sshll.u32 %s229_s23, 8 }
  0x1c   : > { %s238_s7 = scalar_lea.hbm %s1762_s1, %s1183_s28  ;;  %s1788_s15 = smov (%p39_p0, %s1786_s15), 0 }
  0x1d   : > { %s1650_s8 = scalar_select %p74_p1, %s1500_s17, %s76_s24  }
  0x1e   : > { %s239_s9 = sshll.u32 %s238_s7, 4  ;;  %s233_s10 = scalar_lea.vmem [#allocation5], %s1002_s29  ;;  %s240_s9 = int_to_ptr.hbm [resolvable:$true] %s239_s9 }
  0x1f   : > { %s241_s12 = sshll.u32 %s233_s10, 4  ;;  %s230_s13 = scalar_lea.sflag [#allocation6], %s229_s23  ;;  %s242_s12 = int_to_ptr.vmem [resolvable:$true] %s241_s12 }
  0x20   : > { %s1524_s2 = smov 64   ;;  %s1525_s3 = smov 4  }
  0x21   : > { %1281 = dma.hbm_to_vmem [thread:$0]  (!%p1629_p12), %s240_s9, 4096, %s242_s12, %s230_s13, %s1524_s2, %s1524_s2, %s1525_s3  }
  0x22   : > { %253 = sbr.rel (%p1615_p8) target bundleno = 332 (0x14c), region = 36  ;;  %s255_s28 = sand.u32 (!%p1615_p8), 1, %s1496_s16  }
  0x23   : > { %s1006_s26 = sshll.u32 (!%p1615_p8), %s255_s28, 8  ;;  %s256_s30 = scalar_lea.sflag (!%p1615_p8), [#allocation6], %s255_s28 }
  0x24   : > { %s1657_s24 = scalar_lea.vmem (!%p1615_p8), [#allocation5], %s1006_s26 }
  0x27   : > { %1483 = dma.done.wait (%p1607_p6), %s256_s30, 4096  }
  0x28   : > { %1485 = vsyncadd (%p1607_p6), %s256_s30, 4294963200 }
  0x29   : > { %1487 = dma.done.wait (%p1596_p3), [#allocation8], 32  }
  0x2a   : > { %1489 = vsyncadd (%p1596_p3), [#allocation8], 4294967264  ;;  %p316_p2 = scmp.lt.s32.totalorder %s1504_s18, 3  ;;  %s328_s2 = smul.u32 %s1504_s18, %s1508_s19 }
  0x2b   : > { %p1013_p3 = scmp.ne.s32.totalorder %s1508_s19, 0 }
  0x2c   : > { %s317_s3 = scalar_select %p316_p2, %s1504_s18, 3 }
  0x2d   : > { %p331_p4 = scmp.lt.s32.totalorder %s328_s2, 3  ;;  %346 = sbr.rel (%p1013_p3) target bundleno = 269 (0x10d), region = 52 }
  0x2e   : > { %s1184_s5 = sshll.u32 %s317_s3, 6  ;;  %p347_p5 = scmp.eq.s32.totalorder (!%p1013_p3), %s1504_s18, 0 }
  0x2f   : > { %s1674_s27 = scalar_lea.vmem %s1761_s0, %s1184_s5  ;;  %s1790_s2 = smov (!%p331_p4, %s328_s2), 3 }
  0x30   : > { %s1185_s29 = sshll.u32 %s1790_s2, 4 }
  0x31   : > { %s1679_s25 = scalar_lea.vmem %s1765_s4, %s1185_s29 }
  0x32   : > { %352 = sbr.rel (!%p347_p5) target bundleno = 55 (0x37), region = 56  ;;  %v1526_v0 = vmov (%p347_p5), 0.0  }
  0x33   : > { %353 = vst [vmem:[#allocation3] sm:$0x3] (%p347_p5), %v1526_v0 }
  0x37 PF: > { %v1202_v1 = vld [vmem:[%s1657_s24 + $0x38] sm:$0xff]  ;;  %v1201_v5 = vld [vmem:[%s1657_s24 + $0x30] sm:$0xff]  ;;  %v1200_v9 = vld [vmem:[%s1657_s24 + $0x28] sm:$0xff]  ;;  %s1227_s9 = sshll.u32 %s1504_s18, 4  ;;  %vm768_vm0 = vcmask 1040384  }
  0x38   : > { %v1210_v2 = vld [vmem:[%s1657_s24 + $0x78] sm:$0xff]  ;;  %658 = vmatpush.bf16.msra.mxu0 %v1202_v1  ;;  %v1209_v6 = vld [vmem:[%s1657_s24 + $0x70] sm:$0xff]  ;;  %v1208_v10 = vld [vmem:[%s1657_s24 + $0x68] sm:$0xff]  ;;  %s740_s10 = scalar_lea.vmem [#allocation2], %s1227_s9 }
  0x39   : > { %v1218_v3 = vld [vmem:[%s1657_s24 + $0xb8] sm:$0xff]  ;;  %677 = vmatpush.bf16.msra.mxu1 %v1210_v2  ;;  %v1217_v7 = vld [vmem:[%s1657_s24 + $0xb0] sm:$0xff]  ;;  %v1216_v11 = vld [vmem:[%s1657_s24 + $0xa8] sm:$0xff] }
  0x3a   : > { %v1226_v4 = vld [vmem:[%s1657_s24 + $0xf8] sm:$0xff]  ;;  %696 = vmatpush.bf16.msra.mxu2 %v1218_v3  ;;  %v1225_v8 = vld [vmem:[%s1657_s24 + $0xf0] sm:$0xff]  ;;  %v1224_v12 = vld [vmem:[%s1657_s24 + $0xe8] sm:$0xff] }
  0x3b   : > { %715 = vmatpush.bf16.msra.mxu3 %v1226_v4  ;;  %v1199_v13 = vld [vmem:[%s1657_s24 + $0x20] sm:$0xff]  ;;  %v1198_v17 = vld [vmem:[%s1657_s24 + $0x18] sm:$0xff]  ;;  %v1197_v21 = vld [vmem:[%s1657_s24 + $0x10] sm:$0xff] }
  0x3c   : > { %659 = vmatpush.bf16.msra.mxu0 %v1201_v5  ;;  %v1207_v14 = vld [vmem:[%s1657_s24 + $0x60] sm:$0xff]  ;;  %v1206_v18 = vld [vmem:[%s1657_s24 + $0x58] sm:$0xff]  ;;  %v1205_v22 = vld [vmem:[%s1657_s24 + $0x50] sm:$0xff] }
  0x3d   : > { %678 = vmatpush.bf16.msra.mxu1 %v1209_v6  ;;  %v1215_v15 = vld [vmem:[%s1657_s24 + $0xa0] sm:$0xff]  ;;  %v1214_v19 = vld [vmem:[%s1657_s24 + $0x98] sm:$0xff]  ;;  %v1213_v23 = vld [vmem:[%s1657_s24 + $0x90] sm:$0xff] }
  0x3e   : > { %697 = vmatpush.bf16.msra.mxu2 %v1217_v7  ;;  %v1223_v16 = vld [vmem:[%s1657_s24 + $0xe0] sm:$0xff]  ;;  %v1222_v20 = vld [vmem:[%s1657_s24 + $0xd8] sm:$0xff]  ;;  %v1221_v24 = vld [vmem:[%s1657_s24 + $0xd0] sm:$0xff] }
  0x3f   : > { %716 = vmatpush.bf16.msra.mxu3 %v1225_v8  ;;  %v1196_v25 = vld [vmem:[%s1657_s24 + $0x8] sm:$0xff]  ;;  %v1195_v29 = vld [vmem:[%s1657_s24] sm:$0xff]  ;;  %v1017_v33 = vld [vmem:[%s1674_s27] sm:$0xf] }
  0x40   : > { %660 = vmatpush.bf16.msra.mxu0 %v1200_v9  ;;  %v1204_v26 = vld [vmem:[%s1657_s24 + $0x48] sm:$0xff]  ;;  %v1203_v30 = vld [vmem:[%s1657_s24 + $0x40] sm:$0xff]  ;;  %v1019_v36 = vld [vmem:[%s1674_s27 + $0x10] sm:$0xf0] }
  0x41   : > { %679 = vmatpush.bf16.msra.mxu1 %v1208_v10  ;;  %v1212_v27 = vld [vmem:[%s1657_s24 + $0x88] sm:$0xff]  ;;  %v1211_v31 = vld [vmem:[%s1657_s24 + $0x80] sm:$0xff]  ;;  %v1190_v38 = vld [vmem:[%s1674_s27 + $0x14] sm:$0xf0] }
  0x42   : > { %698 = vmatpush.bf16.msra.mxu2 %v1216_v11  ;;  %v1220_v28 = vld [vmem:[%s1657_s24 + $0xc8] sm:$0xff]  ;;  %v1219_v32 = vld [vmem:[%s1657_s24 + $0xc0] sm:$0xff]  ;;  %v1027_v40 = vld [vmem:[%s1674_s27 + $0x18] sm:$0xf0] }
  0x43   : > { %717 = vmatpush.bf16.msra.mxu3 %v1224_v12  ;;  %v1189_v34 = vld [vmem:[%s1674_s27 + $0xc] sm:$0xf0]  ;;  %v1187_v35 = vld [vmem:[%s1674_s27 + $0x4] sm:$0xf]  ;;  %v1025_v37 = vld [vmem:[%s1674_s27 + $0x8] sm:$0xf] }
  0x44   : > { %661 = vmatpush.bf16.msra.mxu0 %v1199_v13  ;;  %v1188_v39 = vld [vmem:[%s1674_s27 + $0xc] sm:$0xf]  ;;  %v1018_v41 = vor.u32 %v1189_v34, %v1017_v33  ;;  %v1022_v42 = vor.u32 %v1187_v35, %v1019_v36  ;;  %v1026_v43 = vor.u32 %v1190_v38, %v1025_v37  ;;  %v1033_v45 = vld [vmem:[%s1674_s27 + $0x20] sm:$0xf]  ;;  %v1193_v46 = vld [vmem:[%s1674_s27 + $0x2c] sm:$0xf0] }
  0x45   : > { %680 = vmatpush.bf16.msra.mxu1 %v1207_v14  ;;  %v1030_v44 = vor.u32 %v1188_v39, %v1027_v40  ;;  %v1191_v47 = vld [vmem:[%s1674_s27 + $0x24] sm:$0xf]  ;;  %v1035_v48 = vld [vmem:[%s1674_s27 + $0x30] sm:$0xf0]  ;;  %v1041_v49 = vld [vmem:[%s1674_s27 + $0x28] sm:$0xf]  ;;  %v1034_v53 = vor.u32 %v1193_v46, %v1033_v45 }
  0x46   : > { %699 = vmatpush.bf16.msra.mxu2 %v1215_v15  ;;  %v1194_v50 = vld [vmem:[%s1674_s27 + $0x34] sm:$0xf0]  ;;  %v1192_v51 = vld [vmem:[%s1674_s27 + $0x2c] sm:$0xf]  ;;  %v1043_v52 = vld [vmem:[%s1674_s27 + $0x38] sm:$0xf0]  ;;  %v1038_v54 = vor.u32 %v1191_v47, %v1035_v48 }
  0x47   : > { %718 = vmatpush.bf16.msra.mxu3 %v1223_v16  ;;  %v1042_v55 = vor.u32 %v1194_v50, %v1041_v49  ;;  %v1046_v56 = vor.u32 %v1192_v51, %v1043_v52 }
  0x48   : > { %662 = vmatpush.bf16.msra.mxu0 %v1198_v17 }
  0x49   : > { %681 = vmatpush.bf16.msra.mxu1 %v1206_v18 }
  0x4a   : > { %700 = vmatpush.bf16.msra.mxu2 %v1214_v19 }
  0x4b   : > { %719 = vmatpush.bf16.msra.mxu3 %v1222_v20 }
  0x4c   : > { %663 = vmatpush.bf16.msra.mxu0 %v1197_v21 }
  0x4d   : > { %682 = vmatpush.bf16.msra.mxu1 %v1205_v22 }
  0x4e   : > { %701 = vmatpush.bf16.msra.mxu2 %v1213_v23 }
  0x4f   : > { %720 = vmatpush.bf16.msra.mxu3 %v1221_v24 }
  0x50   : > { %664 = vmatpush.bf16.msra.mxu0 %v1196_v25 }
  0x51   : > { %683 = vmatpush.bf16.msra.mxu1 %v1204_v26 }
  0x52   : > { %702 = vmatpush.bf16.msra.mxu2 %v1212_v27 }
  0x53   : > { %721 = vmatpush.bf16.msra.mxu3 %v1220_v28 }
  0x54   : > { %665 = vmatpush.bf16.msra.mxu0 %v1195_v29 }
  0x55   : > { %684 = vmatpush.bf16.msra.mxu1 %v1203_v30 }
  0x56   : > { %703 = vmatpush.bf16.msra.mxu2 %v1211_v31 }
  0x57   : > { %722 = vmatpush.bf16.msra.mxu3 %v1219_v32  ;;  %666 = vmatmul.bf16.vlgmr.msra.gmra.mxu0 %v1018_v41 }
  0x58   : > { %685 = vmatmul.bf16.vlgmr.msra.gmra.mxu1 %v1022_v42 }
  0x59   : > { %704 = vmatmul.bf16.vlgmr.msra.gmra.mxu2 %v1026_v43  ;;  %v745_v43 = vld [vmem:[#allocation3] sm:$0x3] }
  0x5a   : > { %723 = vmatmul.bf16.vlgmr.msra.gmra.mxu3 %v1030_v44 }
  0x67   : > { %671 = vmatmul.bf16.gmra.mxu0 %v1034_v53 }
  0x68   : > { %690 = vmatmul.bf16.gmra.mxu1 %v1038_v54 }
  0x69   : > { %709 = vmatmul.bf16.gmra.mxu2 %v1042_v55 }
  0x6a   : > { %728 = vmatmul.bf16.gmra.mxu3 %v1046_v56 }
  0xd4   : > { %v667_v57 = vpop.f32.mrf.mxu0 }
  0xd5   : > { %v686_v58 = vpop.f32.mrf.mxu1 }
  0xd6   : > { %v687_v63 = vadd.f32 %v686_v58, %v667_v57 }
  0xdc   : > { %v705_v59 = vpop.f32.mrf.mxu2  ;;  %v669_v61 = vpop.f32.mrf.mxu0 }
  0xdd   : > { %v724_v60 = vpop.f32.mrf.mxu3  ;;  %v688_v62 = vpop.f32.mrf.mxu1  ;;  %v706_v0 = vadd.f32 %v705_v59, %v687_v63 }
  0xde   : > { %v689_v1 = vadd.f32 %v688_v62, %v669_v61 }
  0xdf   : > { %v725_v7 = vadd.f32 %v724_v60, %v706_v0 }
  0xe1   : > { %v755_v20 = vmul.f32 %v725_v7, %v725_v7 }
  0xe4   : > { %v707_v2 = vpop.f32.mrf.mxu2  ;;  %v672_v5 = vpop.f32.mrf.mxu0 }
  0xe5   : > { %v726_v3 = vpop.f32.mrf.mxu3  ;;  %v708_v4 = vadd.f32 %v707_v2, %v689_v1  ;;  %v691_v6 = vpop.f32.mrf.mxu1 }
  0xe6   : > { %v692_v10 = vadd.f32 %v691_v6, %v672_v5 }
  0xe7   : > { %v727_v8 = vadd.f32 %v726_v3, %v708_v4 }
  0xe9   : > { %v1233_v9 = vpack.c.bf16 %v727_v8, %v725_v7  ;;  %v756_v17 = vmul.f32 %v727_v8, %v727_v8  ;;  %v746_v21 = vadd.f32 %v727_v8, %v725_v7 }
  0xeb   : > { %1234 = vst [vmem:[%s740_s10] sm:$0xff] %v1233_v9   ;;  %v759_v25 = vadd.f32 %v756_v17, %v755_v20 }
  0xec   : > { %v710_v11 = vpop.f32.mrf.mxu2  ;;  %v674_v14 = vpop.f32.mrf.mxu0 }
  0xed   : > { %v729_v12 = vpop.f32.mrf.mxu3  ;;  %v711_v13 = vadd.f32 %v710_v11, %v692_v10  ;;  %v693_v15 = vpop.f32.mrf.mxu1 }
  0xee   : > { %v694_v18 = vadd.f32 %v693_v15, %v674_v14 }
  0xef   : > { %v730_v16 = vadd.f32 %v729_v12, %v711_v13 }
  0xf1   : > { %v757_v22 = vmul.f32 %v730_v16, %v730_v16  ;;  %v747_v26 = vadd.f32 %v746_v21, %v730_v16 }
  0xf3   : > { %v760_v28 = vadd.f32 %v759_v25, %v757_v22 }
  0xf4   : > { %v712_v19 = vpop.f32.mrf.mxu2 }
  0xf5   : > { %v713_v23 = vadd.f32 %v712_v19, %v694_v18  ;;  %v731_v24 = vpop.f32.mrf.mxu3 }
  0xf7   : > { %v732_v27 = vadd.f32 %v731_v24, %v713_v23 }
  0xf9   : > { %v1238_v29 = vpack.c.bf16 %v732_v27, %v730_v16  ;;  %v748_v30 = vadd.f32 %v747_v26, %v732_v27  ;;  %v758_v31 = vmul.f32 %v732_v27, %v732_v27 }
  0xfb   : > { %1258 = vst [vmem:[%s740_s10 + $0x8] sm:$0xff] %v1238_v29   ;;  %v749_v32 = vrot.slane %v748_v30, 4  ;;  %v761_v33 = vadd.f32 %v760_v28, %v758_v31 }
  0xfd   : > { %v750_v34 = vadd.f32 %v749_v32, %v748_v30  ;;  %v762_v35 = vrot.slane %v761_v33, 4 }
  0xff   : > { %v751_v36 = vrot.slane %v750_v34, 2  ;;  %v763_v37 = vadd.f32 %v762_v35, %v761_v33 }
 0x101   : > { %v752_v38 = vadd.f32 %v751_v36, %v750_v34  ;;  %v764_v39 = vrot.slane %v763_v37, 2 }
 0x103   : > { %v753_v40 = vrot.slane %v752_v38, 1  ;;  %v765_v41 = vadd.f32 %v764_v39, %v763_v37 }
 0x105   : > { %v766_v42 = vrot.slane %v765_v41, 1  ;;  %v754_v44 = vadd.f32 %v753_v40, %v752_v38 }
 0x107   : > { %v767_v45 = vadd.f32 %v766_v42, %v765_v41 }
 0x109   : > { %v769_v46 = vsel %vm768_vm0, %v754_v44, %v767_v45 }
 0x10a   : > { %v770_v47 = vadd.f32 %v769_v46, %v745_v43 }
 0x10c   : > { %771 = vst [vmem:[#allocation3] sm:$0x3] %v770_v47 }
 0x10d PF: > { %p1177_p6 = scmp.ne.s32.totalorder %s1508_s19, 1 }
 0x10e   : > { %p776_p7 = scmp.eq.s32.totalorder (!%p1177_p6), %s1504_s18, 0 }
 0x10f   : > { %775 = sbr.rel (%p1177_p6) target bundleno = 332 (0x14c), region = 60 }
 0x114   : > { %781 = sbr.rel (!%p776_p7) target bundleno = 315 (0x13b), region = 64  ;;  %v782_v48 = vld [vmem:[#allocation3] sm:$0x1] (%p776_p7)  ;;  %v784_v49 = vld [vmem:[#allocation3 + $0x1] sm:$0x1] (%p776_p7)  ;;  %vm808_vm4 = vcmask (%p776_p7), 1040384  }
 0x115   : > { %v783_v50 = vmul.f32 (%p776_p7), 0.0078125, %v782_v48  ;;  %v785_v51 = vmul.f32 (%p776_p7), 0.0078125, %v784_v49  ;;  %v800_v62 = vld [vmem:[#allocation7] sm:$0x1] (%p776_p7)  ;;  %v802_v1 = vld [vmem:[#allocation9] sm:$0x1] (%p776_p7) }
 0x117   : > { %v786_v52 = vmul.f32 (%p776_p7), %v783_v50, %v783_v50 }
 0x119   : > { %v787_v53 = vsub.f32 %v785_v51, %v786_v52 }
 0x11b   : > { %v788_v54 = vmax.f32 %v787_v53, 0.0 }
 0x11d   : > { %v789_v55 = vadd.f32 1e-05, %v788_v54 }
 0x11f   : > { %1356 = vrsqrt.f32 %v789_v55  ;;  %vm796_vm1 = vweird.f32 %v789_v55 }
 0x125   : > { %v1357_v56 = vpop.eup %1356 }
 0x126   : > { %v791_v57 = vmul.f32 %v1357_v56, %v789_v55  ;;  %vm797_vm2 = vweird.f32 %v1357_v56 }
 0x127   : > { %vm798_vm3 = vmor %vm796_vm1, %vm797_vm2 }
 0x128   : > { %v792_v58 = vmul.f32 %v1357_v56, %v791_v57 }
 0x12a   : > { %v793_v59 = vmul.f32 0.5, %v792_v58 }
 0x12c   : > { %v794_v60 = vsub.f32 1.5, %v793_v59 }
 0x12e   : > { %v795_v61 = vmul.f32 %v1357_v56, %v794_v60 }
 0x130   : > { %v799_v63 = vsel %vm798_vm3, %v1357_v56, %v795_v61 }
 0x131   : > { %v801_v0 = vmul.f32 %v800_v62, %v799_v63 }
 0x133   : > { %v803_v2 = vmul.f32 %v801_v0, %v783_v50 }
 0x135   : > { %v804_v3 = vsub.f32 %v802_v1, %v803_v2 }
 0x137   : > { %v806_v4 = vperm.slane %v804_v3, 0 }
 0x139   : > { %v809_v5 = vsel %vm808_vm4, %v801_v0, %v806_v4 }
 0x13a   : > { %810 = vst [vmem:[#allocation4] sm:$0x3] %v809_v5 }
 0x13b PF: > { %s1229_s19 = sshll.u32 %s1504_s18, 4 }
 0x13c   : > { %s813_s12 = scalar_lea.vmem [#allocation2], %s1229_s19 }
 0x13d   : > { %v1241_v7 = vld [vmem:[%s813_s12] sm:$0xff]   ;;  %v1259_v8 = vld [vmem:[%s813_s12 + $0x8] sm:$0xff]  }
 0x13e   : > { %v1242_v9 = vunpack.c.l.bf16 %v1241_v7  ;;  %v1243_v10 = vunpack.c.h.bf16 %v1241_v7  ;;  %v1246_v12 = vunpack.c.l.bf16 %v1259_v8  ;;  %v1247_v13 = vunpack.c.h.bf16 %v1259_v8 }
 0x141   : > { %v1358_v6 = vld [vmem:[#allocation4] ss:$0 sm:$0xff]  ;;  %v1359_v11 = vld [vmem:[#allocation4 + $0x1] ss:$0 sm:$0xff] }
 0x142   : > { %v824_v14 = vmul.f32 %v1358_v6, %v1242_v9  ;;  %v825_v15 = vmul.f32 %v1358_v6, %v1243_v10  ;;  %v826_v16 = vmul.f32 %v1358_v6, %v1246_v12  ;;  %v827_v17 = vmul.f32 %v1358_v6, %v1247_v13 }
 0x144   : > { %v830_v18 = vadd.f32 %v1359_v11, %v824_v14  ;;  %v831_v19 = vadd.f32 %v1359_v11, %v825_v15  ;;  %v832_v20 = vadd.f32 %v1359_v11, %v826_v16  ;;  %v833_v21 = vadd.f32 %v1359_v11, %v827_v17 }
 0x146   : > { %v834_v22 = vmax.f32 %v830_v18, 0.0  ;;  %v835_v23 = vmax.f32 %v831_v19, 0.0  ;;  %v836_v24 = vmax.f32 %v832_v20, 0.0  ;;  %v837_v25 = vmax.f32 %v833_v21, 0.0 }
 0x148   : > { %v1251_v26 = vpack.c.bf16 %v835_v23, %v834_v22  ;;  %v1256_v27 = vpack.c.bf16 %v837_v25, %v836_v24 }
 0x14a   : > { %1252 = vst [vmem:[%s1679_s25] sm:$0xff] %v1251_v26  }
 0x14b   : > { %1260 = vst [vmem:[%s1679_s25 + $0x8] sm:$0xff] %v1256_v27  }
 0x14c PF: > { %s18_s22 = sadd.s32 1, %s1520_s22   ;;  %s1775_s13 = smov %s1788_s15 }
 0x14d   : > { %p15_p8 = scmp.ge.s32.totalorder %s18_s22, 10   ;;  %s1776_s15 = smov %s1496_s16 }
 0x14e   : > { %s1777_s16 = smov %s1500_s17  ;;  %s1778_s17 = smov %s1650_s8 }
 0x14f   : > { %s1779_s18 = smov %s1512_s20  ;;  %s1780_s19 = smov %s1516_s21 }
 0x150   : > { %s1781_s20 = smov %s1784_s14  ;;  %s1782_s21 = smov %s1775_s13 }
 0x151   :  { %17 = sbr.rel (!%p15_p8) target bundleno = 9 (0x9), region = 105 }
 0x156   :  { %882 = vsyncpa [#allocation6], 1 }
 0x157   :  { %884 = vsyncpa [#allocation6 + $0x1], 1 }
 0x158   :  { %885 = vsyncpa [#allocation8], 1 }

// kernel: generator_forward.6
= control target key start
LH: loop header
LB: loop body
LE: loop exit
PB: predicated region body
PF: predicated region fallthrough
CT: control target
= control target key end

     0   :  { %s1449_s15 = smov 0   ;;  %s1451_s16 = smov 0   ;;  %s1665_s0 = inlined_call_operand.vmem [shape: bf16[4,128,256], index: 0, kind: input, shape index: {}]   ;;  %s1666_s1 = inlined_call_operand.vmem [shape: bf16[4,256,128], index: 1, kind: input, shape index: {}]   ;;  %s1667_s2 = inlined_call_operand.vmem [shape: f32[1,128], index: 2, kind: input, shape index: {}]   ;;  %s1668_s3 = inlined_call_operand.vmem [shape: f32[1,128], index: 3, kind: input, shape index: {}]   ;;  %s1669_s4 = inlined_call_operand.vmem [shape: bf16[4,128,128], index: 4, kind: output, shape index: {}]  }
   0x1   :  { %s1453_s17 = smov 0   ;;  %s1455_s18 = smov 0  }
   0x2   :  { %s1457_s19 = smov 0  }
   0x3 LB: > { %s29_s20 = sadd.s32 1, %s1413_s17  ;;  %s33_s21 = sadd.s32 1, %s1417_s18  ;;  %s1421_s19 = sphi %s1457_s19, %s14_s19   ;;  %s1417_s18 = sphi %s1455_s18, %s1673_s18   ;;  %s1413_s17 = sphi %s1453_s17, %s1672_s17   ;;  %s1409_s16 = sphi %s1451_s16, %s1671_s16   ;;  %s1405_s15 = sphi %s1449_s15, %s1670_s15  }
   0x4   : > { %p31_p0 = scmp.ge.s32.totalorder %s29_s20, 4  ;;  %p1005_p1 = scmp.ge.s32.totalorder %s1421_s19, 1 }
   0x5   : > { %p213_p2 = scmp.lt.s32.totalorder %s1421_s19, 9 }
   0x6   : > { %s1675_s20 = smov (%p31_p0, %s29_s20), 0  ;;  %s1677_s21 = smov (!%p31_p0, %s33_s21), %s1417_s18 }
   0x7   : > { %p214_p3 = pnand %p1005_p1, %p213_p2  ;;  %p35_p4 = scmp.ge.s32.totalorder %s1677_s21, 2 }
   0x8   : > { %p260_p5 = scmp.lt.s32.totalorder (!%p214_p3), %s1405_s15, 3  ;;  %s277_s22 = smul.u32 (!%p214_p3), %s1405_s15, %s1409_s16 }
   0x9   : > { %s1679_s21 = smov (%p35_p4, %s1677_s21), 0  ;;  %217 = sbr.rel (%p214_p3) target bundleno = 349 (0x15d), region = 36 }
   0xa   : > { %p280_p6 = scmp.lt.s32.totalorder (!%p214_p3), %s277_s22, 3  ;;  %p1012_p7 = scmp.ne.s32.totalorder (!%p214_p3), %s1409_s16, 0 }
   0xe   : > { %s261_s23 = scalar_select %p260_p5, %s1405_s15, 3 }
   0xf   : > { %s1681_s22 = smov (!%p280_p6, %s277_s22), 3  ;;  %295 = sbr.rel (%p1012_p7) target bundleno = 278 (0x116), region = 40 }
  0x10   : > { %s1150_s24 = sshll.u32 %s261_s23, 7  ;;  %s1152_s5 = sshll.u32 %s1681_s22, 6 }
  0x11   : > { %s1490_s27 = scalar_lea.vmem %s1665_s0, %s1150_s24  ;;  %s1495_s30 = scalar_lea.vmem %s1666_s1, %s1150_s24 }
  0x12   : > { %s1500_s8 = scalar_lea.vmem %s1669_s4, %s1152_s5  ;;  %p296_p8 = scmp.eq.s32.totalorder (!%p1012_p7), %s1405_s15, 0 }
  0x14   : > { %301 = sbr.rel (!%p296_p8) target bundleno = 25 (0x19), region = 44  ;;  %v1423_v0 = vmov (%p296_p8), 0.0  }
  0x15   : > { %302 = vst [vmem:[#allocation3] sm:$0x3] (%p296_p8), %v1423_v0 }
  0x19 PF: > { %v1177_v1 = vld [vmem:[%s1495_s30 + $0x38] sm:$0xff]  ;;  %v1176_v3 = vld [vmem:[%s1495_s30 + $0x30] sm:$0xff]  ;;  %v1175_v5 = vld [vmem:[%s1495_s30 + $0x28] sm:$0xff]  ;;  %s1186_s9 = sshll.u32 %s1405_s15, 6  ;;  %vm719_vm0 = vcmask 1040384  }
  0x1a   : > { %v1185_v2 = vld [vmem:[%s1495_s30 + $0x78] sm:$0xff]  ;;  %527 = vmatpush.bf16.msra.mxu0 %v1177_v1  ;;  %v1184_v4 = vld [vmem:[%s1495_s30 + $0x70] sm:$0xff]  ;;  %1322 = vmatpush.bf16.msra.mxu2 %v1177_v1  ;;  %v1183_v6 = vld [vmem:[%s1495_s30 + $0x68] sm:$0xff]  ;;  %s1553_s10 = scalar_lea.vmem [#allocation2], %s1186_s9 }
  0x1b   : > { %576 = vmatpush.bf16.msra.mxu1 %v1185_v2  ;;  %1330 = vmatpush.bf16.msra.mxu3 %v1185_v2  ;;  %v1174_v7 = vld [vmem:[%s1495_s30 + $0x20] sm:$0xff]  ;;  %v1173_v9 = vld [vmem:[%s1495_s30 + $0x18] sm:$0xff]  ;;  %v1172_v11 = vld [vmem:[%s1495_s30 + $0x10] sm:$0xff] }
  0x1c   : > { %v1182_v8 = vld [vmem:[%s1495_s30 + $0x60] sm:$0xff]  ;;  %v1181_v10 = vld [vmem:[%s1495_s30 + $0x58] sm:$0xff]  ;;  %v1180_v12 = vld [vmem:[%s1495_s30 + $0x50] sm:$0xff] }
  0x1d   : > { %v1171_v13 = vld [vmem:[%s1495_s30 + $0x8] sm:$0xff]  ;;  %v1170_v15 = vld [vmem:[%s1495_s30] sm:$0xff]  ;;  %v1024_v29 = vld [vmem:[%s1490_s27 + $0x10] sm:$0xf] }
  0x1e   : > { %528 = vmatpush.bf16.msra.mxu0 %v1176_v3  ;;  %1323 = vmatpush.bf16.msra.mxu2 %v1176_v3  ;;  %v1179_v14 = vld [vmem:[%s1495_s30 + $0x48] sm:$0xff]  ;;  %v1178_v16 = vld [vmem:[%s1495_s30 + $0x40] sm:$0xff]  ;;  %v1157_v30 = vld [vmem:[%s1490_s27 + $0x14] sm:$0xf0] }
  0x1f   : > { %577 = vmatpush.bf16.msra.mxu1 %v1184_v4  ;;  %1331 = vmatpush.bf16.msra.mxu3 %v1184_v4  ;;  %v1016_v17 = vld [vmem:[%s1490_s27] sm:$0xf]  ;;  %v1155_v18 = vld [vmem:[%s1490_s27 + $0x4] sm:$0xf0]  ;;  %v1154_v19 = vld [vmem:[%s1490_s27 + $0x4] sm:$0xf]  ;;  %v1025_v37 = vor.u32 %v1157_v30, %v1024_v29 }
  0x20   : > { %v1018_v20 = vld [vmem:[%s1490_s27 + $0x8] sm:$0xf0]  ;;  %v1048_v21 = vld [vmem:[%s1490_s27 + $0x40] sm:$0xf]  ;;  %v1163_v22 = vld [vmem:[%s1490_s27 + $0x44] sm:$0xf0]  ;;  %v1017_v25 = vor.u32 %v1155_v18, %v1016_v17 }
  0x21   : > { %v1162_v23 = vld [vmem:[%s1490_s27 + $0x44] sm:$0xf]  ;;  %v1050_v24 = vld [vmem:[%s1490_s27 + $0x48] sm:$0xf0]  ;;  %v1021_v26 = vor.u32 %v1154_v19, %v1018_v20  ;;  %v1049_v27 = vor.u32 %v1163_v22, %v1048_v21  ;;  %v1156_v31 = vld [vmem:[%s1490_s27 + $0x14] sm:$0xf] }
  0x22   : > { %529 = vmatpush.bf16.msra.mxu0 %v1175_v5  ;;  %1324 = vmatpush.bf16.msra.mxu2 %v1175_v5  ;;  %v1053_v28 = vor.u32 %v1162_v23, %v1050_v24  ;;  %v1026_v32 = vld [vmem:[%s1490_s27 + $0x18] sm:$0xf0]  ;;  %v1056_v33 = vld [vmem:[%s1490_s27 + $0x50] sm:$0xf]  ;;  %v1165_v34 = vld [vmem:[%s1490_s27 + $0x54] sm:$0xf0] }
  0x23   : > { %578 = vmatpush.bf16.msra.mxu1 %v1183_v6  ;;  %1332 = vmatpush.bf16.msra.mxu3 %v1183_v6  ;;  %v1164_v35 = vld [vmem:[%s1490_s27 + $0x54] sm:$0xf]  ;;  %v1058_v36 = vld [vmem:[%s1490_s27 + $0x58] sm:$0xf0]  ;;  %v1029_v38 = vor.u32 %v1156_v31, %v1026_v32  ;;  %v1057_v39 = vor.u32 %v1165_v34, %v1056_v33  ;;  %v1032_v41 = vld [vmem:[%s1490_s27 + $0x20] sm:$0xf] }
  0x24   : > { %v1061_v40 = vor.u32 %v1164_v35, %v1058_v36  ;;  %v1159_v42 = vld [vmem:[%s1490_s27 + $0x24] sm:$0xf0]  ;;  %v1158_v43 = vld [vmem:[%s1490_s27 + $0x24] sm:$0xf]  ;;  %v1034_v44 = vld [vmem:[%s1490_s27 + $0x28] sm:$0xf0] }
  0x25   : > { %v1064_v45 = vld [vmem:[%s1490_s27 + $0x60] sm:$0xf]  ;;  %v1167_v46 = vld [vmem:[%s1490_s27 + $0x64] sm:$0xf0]  ;;  %v1166_v47 = vld [vmem:[%s1490_s27 + $0x64] sm:$0xf]  ;;  %v1033_v49 = vor.u32 %v1159_v42, %v1032_v41  ;;  %v1037_v50 = vor.u32 %v1158_v43, %v1034_v44 }
  0x26   : > { %530 = vmatpush.bf16.msra.mxu0 %v1174_v7  ;;  %1325 = vmatpush.bf16.msra.mxu2 %v1174_v7  ;;  %v1066_v48 = vld [vmem:[%s1490_s27 + $0x68] sm:$0xf0]  ;;  %v1065_v51 = vor.u32 %v1167_v46, %v1064_v45  ;;  %v1040_v53 = vld [vmem:[%s1490_s27 + $0x30] sm:$0xf]  ;;  %v1161_v54 = vld [vmem:[%s1490_s27 + $0x34] sm:$0xf0] }
  0x27   : > { %579 = vmatpush.bf16.msra.mxu1 %v1182_v8  ;;  %1333 = vmatpush.bf16.msra.mxu3 %v1182_v8  ;;  %v1069_v52 = vor.u32 %v1166_v47, %v1066_v48  ;;  %v1160_v55 = vld [vmem:[%s1490_s27 + $0x34] sm:$0xf]  ;;  %v1042_v56 = vld [vmem:[%s1490_s27 + $0x38] sm:$0xf0]  ;;  %v1072_v57 = vld [vmem:[%s1490_s27 + $0x70] sm:$0xf]  ;;  %v1041_v61 = vor.u32 %v1161_v54, %v1040_v53 }
  0x28   : > { %v1169_v58 = vld [vmem:[%s1490_s27 + $0x74] sm:$0xf0]  ;;  %v1168_v59 = vld [vmem:[%s1490_s27 + $0x74] sm:$0xf]  ;;  %v1074_v60 = vld [vmem:[%s1490_s27 + $0x78] sm:$0xf0]  ;;  %v1045_v62 = vor.u32 %v1160_v55, %v1042_v56 }
  0x29   : > { %v1073_v63 = vor.u32 %v1169_v58, %v1072_v57  ;;  %v1077_v0 = vor.u32 %v1168_v59, %v1074_v60 }
  0x2a   : > { %531 = vmatpush.bf16.msra.mxu0 %v1173_v9  ;;  %1326 = vmatpush.bf16.msra.mxu2 %v1173_v9 }
  0x2b   : > { %580 = vmatpush.bf16.msra.mxu1 %v1181_v10  ;;  %1334 = vmatpush.bf16.msra.mxu3 %v1181_v10 }
  0x2e   : > { %532 = vmatpush.bf16.msra.mxu0 %v1172_v11  ;;  %1327 = vmatpush.bf16.msra.mxu2 %v1172_v11 }
  0x2f   : > { %581 = vmatpush.bf16.msra.mxu1 %v1180_v12  ;;  %1335 = vmatpush.bf16.msra.mxu3 %v1180_v12 }
  0x32   : > { %533 = vmatpush.bf16.msra.mxu0 %v1171_v13  ;;  %1328 = vmatpush.bf16.msra.mxu2 %v1171_v13 }
  0x33   : > { %582 = vmatpush.bf16.msra.mxu1 %v1179_v14  ;;  %1336 = vmatpush.bf16.msra.mxu3 %v1179_v14 }
  0x36   : > { %534 = vmatpush.bf16.msra.mxu0 %v1170_v15  ;;  %1329 = vmatpush.bf16.msra.mxu2 %v1170_v15 }
  0x37   : > { %583 = vmatpush.bf16.msra.mxu1 %v1178_v16  ;;  %1337 = vmatpush.bf16.msra.mxu3 %v1178_v16 }
  0x39   : > { %535 = vmatmul.bf16.vlgmr.msra.gmra.mxu0 %v1017_v25  ;;  %555 = vmatmul.bf16.vlgmr.msra.gmra.mxu2 %v1049_v27 }
  0x3a   : > { %584 = vmatmul.bf16.vlgmr.msra.gmra.mxu1 %v1021_v26  ;;  %604 = vmatmul.bf16.vlgmr.msra.gmra.mxu3 %v1053_v28 }
  0x49   : > { %540 = vmatmul.bf16.gmra.mxu0 %v1025_v37  ;;  %560 = vmatmul.bf16.gmra.mxu2 %v1057_v39 }
  0x4a   : > { %589 = vmatmul.bf16.gmra.mxu1 %v1029_v38  ;;  %609 = vmatmul.bf16.gmra.mxu3 %v1061_v40 }
  0x59   : > { %545 = vmatmul.bf16.gmra.mxu0 %v1033_v49  ;;  %565 = vmatmul.bf16.gmra.mxu2 %v1065_v51 }
  0x5a   : > { %594 = vmatmul.bf16.gmra.mxu1 %v1037_v50  ;;  %614 = vmatmul.bf16.gmra.mxu3 %v1069_v52 }
  0x69   : > { %550 = vmatmul.bf16.gmra.mxu0 %v1041_v61  ;;  %570 = vmatmul.bf16.gmra.mxu2 %v1073_v63 }
  0x6a   : > { %599 = vmatmul.bf16.gmra.mxu1 %v1045_v62  ;;  %619 = vmatmul.bf16.gmra.mxu3 %v1077_v0 }
  0xb6   : > { %v536_v1 = vpop.f32.mrf.mxu0 }
  0xb7   : > { %v585_v2 = vpop.f32.mrf.mxu1 }
  0xb8   : > { %v586_v7 = vadd.f32 %v585_v2, %v536_v1 }
  0xba   : > { %v682_v40 = vmul.f32 %v586_v7, %v586_v7 }
  0xbc   : > { %v556_v3 = vpop.f32.mrf.mxu2 }
  0xbd   : > { %v605_v4 = vpop.f32.mrf.mxu3 }
  0xbe   : > { %v538_v5 = vpop.f32.mrf.mxu0  ;;  %v1556_v10 = vadd.f32 %v605_v4, %v556_v3 }
  0xbf   : > { %v587_v6 = vpop.f32.mrf.mxu1 }
  0xc0   : > { %v588_v8 = vadd.f32 %v587_v6, %v538_v5 }
  0xc2   : > { %v1192_v9 = vpack.c.bf16 %v588_v8, %v586_v7  ;;  %v683_v38 = vmul.f32 %v588_v8, %v588_v8  ;;  %v661_v41 = vadd.f32 %v588_v8, %v586_v7 }
  0xc4   : > { %1193 = vst [vmem:[%s1553_s10] sm:$0xff] %v1192_v9   ;;  %v558_v11 = vpop.f32.mrf.mxu2  ;;  %v698_v48 = vadd.f32 %v683_v38, %v682_v40  ;;  %v690_v9 = vmul.f32 %v1556_v10, %v1556_v10 }
  0xc5   : > { %v607_v12 = vpop.f32.mrf.mxu3 }
  0xc6   : > { %v541_v13 = vpop.f32.mrf.mxu0  ;;  %v1558_v15 = vadd.f32 %v607_v12, %v558_v11 }
  0xc7   : > { %v590_v14 = vpop.f32.mrf.mxu1 }
  0xc8   : > { %v1212_v16 = vpack.c.bf16 %v1558_v15, %v1556_v10  ;;  %v591_v21 = vadd.f32 %v590_v14, %v541_v13  ;;  %v691_v14 = vmul.f32 %v1558_v15, %v1558_v15 }
  0xca   : > { %1304 = vst [vmem:[%s1553_s10 + $0x20] sm:$0xff] %v1212_v16   ;;  %v684_v42 = vmul.f32 %v591_v21, %v591_v21  ;;  %v662_v49 = vadd.f32 %v661_v41, %v591_v21 }
  0xcc   : > { %v561_v17 = vpop.f32.mrf.mxu2  ;;  %v699_v52 = vadd.f32 %v698_v48, %v684_v42 }
  0xcd   : > { %v610_v18 = vpop.f32.mrf.mxu3 }
  0xce   : > { %v543_v19 = vpop.f32.mrf.mxu0  ;;  %v1564_v24 = vadd.f32 %v610_v18, %v561_v17 }
  0xcf   : > { %v592_v20 = vpop.f32.mrf.mxu1 }
  0xd0   : > { %v593_v22 = vadd.f32 %v592_v20, %v543_v19 }
  0xd2   : > { %v1197_v23 = vpack.c.bf16 %v593_v22, %v591_v21  ;;  %v685_v50 = vmul.f32 %v593_v22, %v593_v22  ;;  %v663_v53 = vadd.f32 %v662_v49, %v593_v22  ;;  %v692_v21 = vmul.f32 %v1564_v24, %v1564_v24 }
  0xd4   : > { %1301 = vst [vmem:[%s1553_s10 + $0x8] sm:$0xff] %v1197_v23   ;;  %v563_v25 = vpop.f32.mrf.mxu2  ;;  %v700_v56 = vadd.f32 %v699_v52, %v685_v50 }
  0xd5   : > { %v612_v26 = vpop.f32.mrf.mxu3 }
  0xd6   : > { %v546_v27 = vpop.f32.mrf.mxu0  ;;  %v1566_v29 = vadd.f32 %v612_v26, %v563_v25 }
  0xd7   : > { %v595_v28 = vpop.f32.mrf.mxu1 }
  0xd8   : > { %v1217_v30 = vpack.c.bf16 %v1566_v29, %v1564_v24  ;;  %v596_v35 = vadd.f32 %v595_v28, %v546_v27 }
  0xda   : > { %1305 = vst [vmem:[%s1553_s10 + $0x28] sm:$0xff] %v1217_v30   ;;  %v686_v54 = vmul.f32 %v596_v35, %v596_v35  ;;  %v664_v57 = vadd.f32 %v663_v53, %v596_v35 }
  0xdc   : > { %v566_v31 = vpop.f32.mrf.mxu2  ;;  %v701_v59 = vadd.f32 %v700_v56, %v686_v54 }
  0xdd   : > { %v615_v32 = vpop.f32.mrf.mxu3 }
  0xde   : > { %v548_v33 = vpop.f32.mrf.mxu0  ;;  %v616_v39 = vadd.f32 %v615_v32, %v566_v31 }
  0xdf   : > { %v597_v34 = vpop.f32.mrf.mxu1 }
  0xe0   : > { %v598_v36 = vadd.f32 %v597_v34, %v548_v33  ;;  %v694_v28 = vmul.f32 %v616_v39, %v616_v39 }
  0xe2   : > { %v1202_v37 = vpack.c.bf16 %v598_v36, %v596_v35  ;;  %v687_v58 = vmul.f32 %v598_v36, %v598_v36  ;;  %v665_v60 = vadd.f32 %v664_v57, %v598_v36 }
  0xe4   : > { %1302 = vst [vmem:[%s1553_s10 + $0x10] sm:$0xff] %v1202_v37   ;;  %v568_v43 = vpop.f32.mrf.mxu2  ;;  %v702_v2 = vadd.f32 %v701_v59, %v687_v58 }
  0xe5   : > { %v617_v44 = vpop.f32.mrf.mxu3 }
  0xe6   : > { %v551_v45 = vpop.f32.mrf.mxu0  ;;  %v618_v47 = vadd.f32 %v617_v44, %v568_v43 }
  0xe7   : > { %v600_v46 = vpop.f32.mrf.mxu1 }
  0xe8   : > { %v1222_v51 = vpack.c.bf16 %v618_v47, %v616_v39  ;;  %v601_v55 = vadd.f32 %v600_v46, %v551_v45  ;;  %v695_v31 = vmul.f32 %v618_v47, %v618_v47 }
  0xea   : > { %1306 = vst [vmem:[%s1553_s10 + $0x30] sm:$0xff] %v1222_v51   ;;  %v688_v61 = vmul.f32 %v601_v55, %v601_v55  ;;  %v666_v3 = vadd.f32 %v665_v60, %v601_v55 }
  0xec   : > { %v571_v62 = vpop.f32.mrf.mxu2  ;;  %v703_v5 = vadd.f32 %v702_v2, %v688_v61 }
  0xed   : > { %v620_v63 = vpop.f32.mrf.mxu3 }
  0xee   : > { %v553_v0 = vpop.f32.mrf.mxu0  ;;  %v621_v13 = vadd.f32 %v620_v63, %v571_v62 }
  0xef   : > { %v602_v1 = vpop.f32.mrf.mxu1 }
  0xf0   : > { %v603_v4 = vadd.f32 %v602_v1, %v553_v0  ;;  %v696_v35 = vmul.f32 %v621_v13, %v621_v13 }
  0xf2   : > { %v1207_v6 = vpack.c.bf16 %v603_v4, %v601_v55  ;;  %v667_v7 = vadd.f32 %v666_v3, %v603_v4  ;;  %v689_v8 = vmul.f32 %v603_v4, %v603_v4 }
  0xf4   : > { %1303 = vst [vmem:[%s1553_s10 + $0x18] sm:$0xff] %v1207_v6   ;;  %v668_v11 = vadd.f32 %v667_v7, %v1556_v10  ;;  %v704_v12 = vadd.f32 %v703_v5, %v689_v8  ;;  %v573_v18 = vpop.f32.mrf.mxu2  ;;  %v693_v10 = vmul.f32 %v1566_v29, %v1566_v29 }
  0xf5   : > { %v622_v19 = vpop.f32.mrf.mxu3 }
  0xf6   : > { %v669_v16 = vadd.f32 %v668_v11, %v1558_v15  ;;  %v705_v17 = vadd.f32 %v704_v12, %v690_v9  ;;  %v623_v20 = vadd.f32 %v622_v19, %v573_v18 }
  0xf8   : > { %v670_v22 = vadd.f32 %v669_v16, %v1564_v24  ;;  %v706_v23 = vadd.f32 %v705_v17, %v691_v14  ;;  %v1227_v25 = vpack.c.bf16 %v623_v20, %v621_v13  ;;  %v697_v38 = vmul.f32 %v623_v20, %v623_v20 }
  0xfa   : > { %v707_v26 = vadd.f32 %v706_v23, %v692_v21  ;;  %v671_v27 = vadd.f32 %v670_v22, %v1566_v29  ;;  %1307 = vst [vmem:[%s1553_s10 + $0x38] sm:$0xff] %v1227_v25  }
  0xfc   : > { %v672_v15 = vadd.f32 %v671_v27, %v616_v39  ;;  %v708_v30 = vadd.f32 %v707_v26, %v693_v10 }
  0xfe   : > { %v673_v32 = vadd.f32 %v672_v15, %v618_v47  ;;  %v709_v33 = vadd.f32 %v708_v30, %v694_v28  ;;  %v660_v47 = vld [vmem:[#allocation3] sm:$0x3] }
 0x100   : > { %v674_v34 = vadd.f32 %v673_v32, %v621_v13  ;;  %v710_v36 = vadd.f32 %v709_v33, %v695_v31 }
 0x102   : > { %v711_v37 = vadd.f32 %v710_v36, %v696_v35  ;;  %v675_v24 = vadd.f32 %v674_v34, %v623_v20 }
 0x104   : > { %v676_v40 = vrot.slane %v675_v24, 4  ;;  %v712_v41 = vadd.f32 %v711_v37, %v697_v38 }
 0x106   : > { %v677_v42 = vadd.f32 %v676_v40, %v675_v24  ;;  %v713_v43 = vrot.slane %v712_v41, 4 }
 0x108   : > { %v678_v44 = vrot.slane %v677_v42, 2  ;;  %v714_v45 = vadd.f32 %v713_v43, %v712_v41 }
 0x10a   : > { %v679_v29 = vadd.f32 %v678_v44, %v677_v42  ;;  %v715_v46 = vrot.slane %v714_v45, 2 }
 0x10c   : > { %v680_v48 = vrot.slane %v679_v29, 1  ;;  %v716_v39 = vadd.f32 %v715_v46, %v714_v45 }
 0x10e   : > { %v717_v49 = vrot.slane %v716_v39, 1  ;;  %v681_v50 = vadd.f32 %v680_v48, %v679_v29 }
 0x110   : > { %v718_v51 = vadd.f32 %v717_v49, %v716_v39 }
 0x112   : > { %v720_v52 = vsel %vm719_vm0, %v681_v50, %v718_v51 }
 0x113   : > { %v721_v53 = vadd.f32 %v720_v52, %v660_v47 }
 0x115   : > { %722 = vst [vmem:[#allocation3] sm:$0x3] %v721_v53 }
 0x116 PF: > { %p1144_p9 = scmp.ne.s32.totalorder %s1409_s16, 1 }
 0x117   : > { %p727_p10 = scmp.eq.s32.totalorder (!%p1144_p9), %s1405_s15, 0 }
 0x118   : > { %726 = sbr.rel (%p1144_p9) target bundleno = 349 (0x15d), region = 48 }
 0x11d   : > { %732 = sbr.rel (!%p727_p10) target bundleno = 324 (0x144), region = 52  ;;  %v733_v54 = vld [vmem:[#allocation3] sm:$0x1] (%p727_p10)  ;;  %v735_v55 = vld [vmem:[#allocation3 + $0x1] sm:$0x1] (%p727_p10)  ;;  %vm759_vm4 = vcmask (%p727_p10), 1040384  }
 0x11e   : > { %v734_v56 = vmul.f32 (%p727_p10), 0.001953125, %v733_v54  ;;  %v736_v57 = vmul.f32 (%p727_p10), 0.001953125, %v735_v55  ;;  %v751_v4 = vld [vmem:[%s1667_s2] sm:$0x1] (%p727_p10) }
 0x11f   : > { %v753_v7 = vld [vmem:[%s1668_s3] sm:$0x1] (%p727_p10) }
 0x120   : > { %v737_v58 = vmul.f32 (%p727_p10), %v734_v56, %v734_v56 }
 0x122   : > { %v738_v59 = vsub.f32 %v736_v57, %v737_v58 }
 0x124   : > { %v739_v60 = vmax.f32 %v738_v59, 0.0 }
 0x126   : > { %v740_v61 = vadd.f32 1e-05, %v739_v60 }
 0x128   : > { %1379 = vrsqrt.f32 %v740_v61  ;;  %vm747_vm1 = vweird.f32 %v740_v61 }
 0x12e   : > { %v1380_v62 = vpop.eup %1379 }
 0x12f   : > { %v742_v63 = vmul.f32 %v1380_v62, %v740_v61  ;;  %vm748_vm2 = vweird.f32 %v1380_v62 }
 0x130   : > { %vm749_vm3 = vmor %vm747_vm1, %vm748_vm2 }
 0x131   : > { %v743_v0 = vmul.f32 %v1380_v62, %v742_v63 }
 0x133   : > { %v744_v1 = vmul.f32 0.5, %v743_v0 }
 0x135   : > { %v745_v2 = vsub.f32 1.5, %v744_v1 }
 0x137   : > { %v746_v3 = vmul.f32 %v1380_v62, %v745_v2 }
 0x139   : > { %v750_v5 = vsel %vm749_vm3, %v1380_v62, %v746_v3 }
 0x13a   : > { %v752_v6 = vmul.f32 %v751_v4, %v750_v5 }
 0x13c   : > { %v754_v8 = vmul.f32 %v752_v6, %v734_v56 }
 0x13e   : > { %v755_v9 = vsub.f32 %v753_v7, %v754_v8 }
 0x140   : > { %v757_v11 = vperm.slane %v755_v9, 0 }
 0x142   : > { %v760_v12 = vsel %vm759_vm4, %v752_v6, %v757_v11 }
 0x143   : > { %761 = vst [vmem:[#allocation4] sm:$0x3] %v760_v12 }
 0x144 PF: > { %s1188_s16 = sshll.u32 %s1405_s15, 6 }
 0x145   : > { %s1598_s22 = scalar_lea.vmem [#allocation2], %s1188_s16 }
 0x146   : > { %v1230_v14 = vld [vmem:[%s1598_s22] sm:$0xff]   ;;  %v1308_v16 = vld [vmem:[%s1598_s22 + $0x8] sm:$0xff]   ;;  %v1309_v17 = vld [vmem:[%s1598_s22 + $0x10] sm:$0xff]  }
 0x147   : > { %v1231_v18 = vunpack.c.l.bf16 %v1230_v14  ;;  %v1232_v19 = vunpack.c.h.bf16 %v1230_v14  ;;  %v1235_v21 = vunpack.c.l.bf16 %v1308_v16  ;;  %v1236_v22 = vunpack.c.h.bf16 %v1308_v16  ;;  %v1310_v23 = vld [vmem:[%s1598_s22 + $0x18] sm:$0xff]   ;;  %v1311_v44 = vld [vmem:[%s1598_s22 + $0x20] sm:$0xff]   ;;  %v1312_v39 = vld [vmem:[%s1598_s22 + $0x28] sm:$0xff]  }
 0x148   : > { %v1239_v25 = vunpack.c.l.bf16 %v1309_v17  ;;  %v1240_v10 = vunpack.c.h.bf16 %v1309_v17  ;;  %v1243_v26 = vunpack.c.l.bf16 %v1310_v23  ;;  %v1244_v27 = vunpack.c.h.bf16 %v1310_v23  ;;  %v1313_v52 = vld [vmem:[%s1598_s22 + $0x30] sm:$0xff]   ;;  %v1314_v57 = vld [vmem:[%s1598_s22 + $0x38] sm:$0xff]  }
 0x149   : > { %v1247_v55 = vunpack.c.l.bf16 %v1311_v44  ;;  %v1248_v56 = vunpack.c.h.bf16 %v1311_v44  ;;  %v1251_v60 = vunpack.c.l.bf16 %v1312_v39  ;;  %v1252_v61 = vunpack.c.h.bf16 %v1312_v39 }
 0x14a   : > { %v1596_v13 = vld [vmem:[#allocation4] ss:$0 sm:$0xff]  ;;  %v1603_v20 = vld [vmem:[#allocation4 + $0x1] ss:$0 sm:$0xff]  ;;  %v1255_v0 = vunpack.c.l.bf16 %v1313_v52  ;;  %v1256_v1 = vunpack.c.h.bf16 %v1313_v52  ;;  %v1259_v4 = vunpack.c.l.bf16 %v1314_v57  ;;  %v1260_v5 = vunpack.c.h.bf16 %v1314_v57 }
 0x14b   : > { %v799_v28 = vmul.f32 %v1596_v13, %v1231_v18  ;;  %v800_v15 = vmul.f32 %v1596_v13, %v1232_v19  ;;  %v801_v30 = vmul.f32 %v1596_v13, %v1235_v21  ;;  %v802_v31 = vmul.f32 %v1596_v13, %v1236_v22 }
 0x14c   : > { %v803_v32 = vmul.f32 %v1596_v13, %v1239_v25  ;;  %v804_v33 = vmul.f32 %v1596_v13, %v1240_v10  ;;  %v805_v34 = vmul.f32 %v1596_v13, %v1243_v26  ;;  %v806_v35 = vmul.f32 %v1596_v13, %v1244_v27 }
 0x14d   : > { %v817_v36 = vadd.f32 %v1603_v20, %v799_v28  ;;  %v818_v37 = vadd.f32 %v1603_v20, %v800_v15  ;;  %v819_v24 = vadd.f32 %v1603_v20, %v801_v30  ;;  %v820_v38 = vadd.f32 %v1603_v20, %v802_v31 }
 0x14e   : > { %v821_v40 = vadd.f32 %v1603_v20, %v803_v32  ;;  %v822_v41 = vadd.f32 %v1603_v20, %v804_v33  ;;  %v823_v42 = vadd.f32 %v1603_v20, %v805_v34  ;;  %v824_v43 = vadd.f32 %v1603_v20, %v806_v35 }
 0x14f   : > { %v833_v45 = vmax.f32 %v817_v36, 0.0  ;;  %v834_v29 = vmax.f32 %v818_v37, 0.0  ;;  %v835_v46 = vmax.f32 %v819_v24, 0.0  ;;  %v836_v48 = vmax.f32 %v820_v38, 0.0 }
 0x150   : > { %v837_v49 = vmax.f32 %v821_v40, 0.0  ;;  %v838_v47 = vmax.f32 %v822_v41, 0.0  ;;  %v839_v50 = vmax.f32 %v823_v42, 0.0  ;;  %v840_v51 = vmax.f32 %v824_v43, 0.0 }
 0x151   : > { %v1264_v53 = vpack.c.bf16 %v834_v29, %v833_v45  ;;  %v1269_v54 = vpack.c.bf16 %v836_v48, %v835_v46  ;;  %v807_v62 = vmul.f32 %v1596_v13, %v1247_v55  ;;  %v808_v63 = vmul.f32 %v1596_v13, %v1248_v56 }
 0x152   : > { %v1274_v58 = vpack.c.bf16 %v838_v47, %v837_v49  ;;  %v1279_v59 = vpack.c.bf16 %v840_v51, %v839_v50  ;;  %v809_v2 = vmul.f32 %v1596_v13, %v1251_v60  ;;  %v810_v3 = vmul.f32 %v1596_v13, %v1252_v61 }
 0x153   : > { %1265 = vst [vmem:[%s1500_s8] sm:$0xff] %v1264_v53   ;;  %v825_v6 = vadd.f32 %v1603_v20, %v807_v62  ;;  %v826_v7 = vadd.f32 %v1603_v20, %v808_v63  ;;  %v811_v8 = vmul.f32 %v1596_v13, %v1255_v0  ;;  %v812_v9 = vmul.f32 %v1596_v13, %v1256_v1 }
 0x154   : > { %1315 = vst [vmem:[%s1500_s8 + $0x8] sm:$0xff] %v1269_v54   ;;  %v827_v11 = vadd.f32 %v1603_v20, %v809_v2  ;;  %v828_v12 = vadd.f32 %v1603_v20, %v810_v3  ;;  %v813_v14 = vmul.f32 %v1596_v13, %v1259_v4  ;;  %v814_v16 = vmul.f32 %v1596_v13, %v1260_v5 }
 0x155   : > { %1316 = vst [vmem:[%s1500_s8 + $0x10] sm:$0xff] %v1274_v58   ;;  %v841_v17 = vmax.f32 %v825_v6, 0.0  ;;  %v842_v18 = vmax.f32 %v826_v7, 0.0  ;;  %v829_v19 = vadd.f32 %v1603_v20, %v811_v8  ;;  %v830_v21 = vadd.f32 %v1603_v20, %v812_v9 }
 0x156   : > { %1317 = vst [vmem:[%s1500_s8 + $0x18] sm:$0xff] %v1279_v59   ;;  %v843_v22 = vmax.f32 %v827_v11, 0.0  ;;  %v844_v23 = vmax.f32 %v828_v12, 0.0  ;;  %v831_v25 = vadd.f32 %v1603_v20, %v813_v14  ;;  %v832_v10 = vadd.f32 %v1603_v20, %v814_v16 }
 0x157   : > { %v1284_v26 = vpack.c.bf16 %v842_v18, %v841_v17  ;;  %v845_v27 = vmax.f32 %v829_v19, 0.0  ;;  %v846_v28 = vmax.f32 %v830_v21, 0.0 }
 0x158   : > { %v1289_v15 = vpack.c.bf16 %v844_v23, %v843_v22  ;;  %v847_v13 = vmax.f32 %v831_v25, 0.0  ;;  %v848_v30 = vmax.f32 %v832_v10, 0.0 }
 0x159   : > { %1318 = vst [vmem:[%s1500_s8 + $0x20] sm:$0xff] %v1284_v26   ;;  %v1294_v31 = vpack.c.bf16 %v846_v28, %v845_v27 }
 0x15a   : > { %1319 = vst [vmem:[%s1500_s8 + $0x28] sm:$0xff] %v1289_v15   ;;  %v1299_v32 = vpack.c.bf16 %v848_v30, %v847_v13 }
 0x15b   : > { %1320 = vst [vmem:[%s1500_s8 + $0x30] sm:$0xff] %v1294_v31  }
 0x15c   : > { %1321 = vst [vmem:[%s1500_s8 + $0x38] sm:$0xff] %v1299_v32  }
 0x15d PF: > { %s14_s19 = sadd.s32 1, %s1421_s19   ;;  %s1670_s15 = smov %s1413_s17 }
 0x15e   : > { %p11_p11 = scmp.ge.s32.totalorder %s14_s19, 10   ;;  %s1671_s16 = smov %s1417_s18 }
 0x15f   : > { %s1672_s17 = smov %s1675_s20  ;;  %s1673_s18 = smov %s1679_s21 }
 0x160   :  { %13 = sbr.rel (!%p11_p11) target bundleno = 3 (0x3), region = 87 }

// kernel: generator_forward.7
= control target key start
LH: loop header
LB: loop body
LE: loop exit
PB: predicated region body
PF: predicated region fallthrough
CT: control target
= control target key end

     0   :  { %s1413_s9 = smov 0   ;;  %s1415_s10 = smov 0   ;;  %s1535_s0 = inlined_call_operand.vmem [shape: bf16[4,512,128], index: 0, kind: input, shape index: {}]   ;;  %s1536_s1 = inlined_call_operand.vmem [shape: bf16[4,128,128], index: 1, kind: input, shape index: {}]   ;;  %s1537_s2 = inlined_call_operand.vmem [shape: bf16[4,512,128], index: 2, kind: output, shape index: {}]  }
   0x1   :  { %s1417_s11 = smov 0  }
   0x2 LB: > { %s24_s12 = sadd.s32 1, %s1392_s10  ;;  %p923_p0 = scmp.ge.s32.totalorder %s1396_s11, 1  ;;  %s1396_s11 = sphi %s1417_s11, %s12_s11   ;;  %s1392_s10 = sphi %s1415_s10, %s1539_s10   ;;  %s1388_s9 = sphi %s1413_s9, %s1538_s9  }
   0x3   : > { %p26_p1 = scmp.ge.s32.totalorder %s24_s12, 4  ;;  %p143_p2 = scmp.lt.s32.totalorder %s1396_s11, 5 }
   0x5   : > { %s1541_s12 = smov (%p26_p1, %s24_s12), 0  ;;  %p144_p3 = pnand %p923_p0, %p143_p2 }
   0x6   : > { %p179_p4 = scmp.lt.s32.totalorder (!%p144_p3), %s1388_s9, 3 }
   0x7   : > { %147 = sbr.rel (%p144_p3) target bundleno = 304 (0x130), region = 28 }
   0xc   : > { %s1543_s9 = smov (!%p179_p4, %s1388_s9), 3 }
   0xd   : > { %s1093_s13 = sshll.u32 %s1543_s9, 6  ;;  %s1092_s17 = sshll.u32 %s1543_s9, 8 }
   0xe   : > { %s1437_s16 = scalar_lea.vmem %s1536_s1, %s1093_s13  ;;  %s1452_s20 = scalar_lea.vmem %s1535_s0, %s1092_s17 }
   0xf   : > { %v1134_v0 = vld [vmem:[%s1437_s16 + $0x38] sm:$0xff]  ;;  %v1133_v1 = vld [vmem:[%s1437_s16 + $0x30] sm:$0xff]  ;;  %v1132_v2 = vld [vmem:[%s1437_s16 + $0x28] sm:$0xff]  ;;  %s1492_s23 = scalar_lea.vmem %s1537_s2, %s1092_s17 }
  0x10   : > { %523 = vmatpush.bf16.msra.mxu0 %v1134_v0  ;;  %1326 = vmatpush.bf16.msra.mxu1 %v1134_v0  ;;  %v1131_v3 = vld [vmem:[%s1437_s16 + $0x20] sm:$0xff]  ;;  %v1130_v4 = vld [vmem:[%s1437_s16 + $0x18] sm:$0xff]  ;;  %v1129_v5 = vld [vmem:[%s1437_s16 + $0x10] sm:$0xff] }
  0x11   : > { %1327 = vmatpush.bf16.msra.mxu2 %v1134_v0  ;;  %1328 = vmatpush.bf16.msra.mxu3 %v1134_v0  ;;  %v1128_v6 = vld [vmem:[%s1437_s16 + $0x8] sm:$0xff]  ;;  %v1127_v7 = vld [vmem:[%s1437_s16] sm:$0xff]  ;;  %v1097_v16 = vld [vmem:[%s1452_s20 + $0x10] sm:$0xff] }
  0x12   : > { %v1095_v8 = vld [vmem:[%s1452_s20] sm:$0xff]  ;;  %v1096_v12 = vld [vmem:[%s1452_s20 + $0x8] sm:$0xff]  ;;  %v1105_v17 = vld [vmem:[%s1452_s20 + $0x50] sm:$0xff] }
  0x13   : > { %v1103_v9 = vld [vmem:[%s1452_s20 + $0x40] sm:$0xff]  ;;  %v1104_v13 = vld [vmem:[%s1452_s20 + $0x48] sm:$0xff]  ;;  %v1113_v18 = vld [vmem:[%s1452_s20 + $0x90] sm:$0xff] }
  0x14   : > { %524 = vmatpush.bf16.msra.mxu0 %v1133_v1  ;;  %1329 = vmatpush.bf16.msra.mxu1 %v1133_v1  ;;  %v1111_v10 = vld [vmem:[%s1452_s20 + $0x80] sm:$0xff]  ;;  %v1112_v14 = vld [vmem:[%s1452_s20 + $0x88] sm:$0xff]  ;;  %v1121_v19 = vld [vmem:[%s1452_s20 + $0xd0] sm:$0xff] }
  0x15   : > { %1330 = vmatpush.bf16.msra.mxu2 %v1133_v1  ;;  %1331 = vmatpush.bf16.msra.mxu3 %v1133_v1  ;;  %v1119_v11 = vld [vmem:[%s1452_s20 + $0xc0] sm:$0xff]  ;;  %v1120_v15 = vld [vmem:[%s1452_s20 + $0xc8] sm:$0xff]  ;;  %v1098_v20 = vld [vmem:[%s1452_s20 + $0x18] sm:$0xff] }
  0x16   : > { %v1106_v21 = vld [vmem:[%s1452_s20 + $0x58] sm:$0xff]  ;;  %v1099_v24 = vld [vmem:[%s1452_s20 + $0x20] sm:$0xff]  ;;  %v1100_v28 = vld [vmem:[%s1452_s20 + $0x28] sm:$0xff] }
  0x17   : > { %v1114_v22 = vld [vmem:[%s1452_s20 + $0x98] sm:$0xff]  ;;  %v1107_v25 = vld [vmem:[%s1452_s20 + $0x60] sm:$0xff]  ;;  %v1108_v29 = vld [vmem:[%s1452_s20 + $0x68] sm:$0xff] }
  0x18   : > { %525 = vmatpush.bf16.msra.mxu0 %v1132_v2  ;;  %1332 = vmatpush.bf16.msra.mxu1 %v1132_v2  ;;  %v1122_v23 = vld [vmem:[%s1452_s20 + $0xd8] sm:$0xff]  ;;  %v1115_v26 = vld [vmem:[%s1452_s20 + $0xa0] sm:$0xff]  ;;  %v1116_v30 = vld [vmem:[%s1452_s20 + $0xa8] sm:$0xff] }
  0x19   : > { %1333 = vmatpush.bf16.msra.mxu2 %v1132_v2  ;;  %1334 = vmatpush.bf16.msra.mxu3 %v1132_v2  ;;  %v1123_v27 = vld [vmem:[%s1452_s20 + $0xe0] sm:$0xff]  ;;  %v1124_v31 = vld [vmem:[%s1452_s20 + $0xe8] sm:$0xff]  ;;  %v1101_v32 = vld [vmem:[%s1452_s20 + $0x30] sm:$0xff] }
  0x1a   : > { %v1109_v33 = vld [vmem:[%s1452_s20 + $0x70] sm:$0xff]  ;;  %v1102_v36 = vld [vmem:[%s1452_s20 + $0x38] sm:$0xff] }
  0x1b   : > { %v1117_v34 = vld [vmem:[%s1452_s20 + $0xb0] sm:$0xff]  ;;  %v1110_v37 = vld [vmem:[%s1452_s20 + $0x78] sm:$0xff] }
  0x1c   : > { %526 = vmatpush.bf16.msra.mxu0 %v1131_v3  ;;  %1335 = vmatpush.bf16.msra.mxu1 %v1131_v3  ;;  %v1125_v35 = vld [vmem:[%s1452_s20 + $0xf0] sm:$0xff]  ;;  %v1118_v38 = vld [vmem:[%s1452_s20 + $0xb8] sm:$0xff] }
  0x1d   : > { %1336 = vmatpush.bf16.msra.mxu2 %v1131_v3  ;;  %1337 = vmatpush.bf16.msra.mxu3 %v1131_v3  ;;  %v1126_v39 = vld [vmem:[%s1452_s20 + $0xf8] sm:$0xff] }
  0x20   : > { %527 = vmatpush.bf16.msra.mxu0 %v1130_v4  ;;  %1338 = vmatpush.bf16.msra.mxu1 %v1130_v4 }
  0x21   : > { %1339 = vmatpush.bf16.msra.mxu2 %v1130_v4  ;;  %1340 = vmatpush.bf16.msra.mxu3 %v1130_v4 }
  0x24   : > { %528 = vmatpush.bf16.msra.mxu0 %v1129_v5  ;;  %1341 = vmatpush.bf16.msra.mxu1 %v1129_v5 }
  0x25   : > { %1342 = vmatpush.bf16.msra.mxu2 %v1129_v5  ;;  %1343 = vmatpush.bf16.msra.mxu3 %v1129_v5 }
  0x28   : > { %529 = vmatpush.bf16.msra.mxu0 %v1128_v6  ;;  %1344 = vmatpush.bf16.msra.mxu1 %v1128_v6 }
  0x29   : > { %1345 = vmatpush.bf16.msra.mxu2 %v1128_v6  ;;  %1346 = vmatpush.bf16.msra.mxu3 %v1128_v6 }
  0x2c   : > { %530 = vmatpush.bf16.msra.mxu0 %v1127_v7  ;;  %1347 = vmatpush.bf16.msra.mxu1 %v1127_v7 }
  0x2d   : > { %1348 = vmatpush.bf16.msra.mxu2 %v1127_v7  ;;  %1349 = vmatpush.bf16.msra.mxu3 %v1127_v7 }
  0x2f   : > { %531 = vmatmul.bf16.vlgmr.msra.gmra.mxu0 %v1095_v8  ;;  %571 = vmatmul.bf16.vlgmr.msra.gmra.mxu1 %v1103_v9 }
  0x30   : > { %611 = vmatmul.bf16.vlgmr.msra.gmra.mxu2 %v1111_v10  ;;  %651 = vmatmul.bf16.vlgmr.msra.gmra.mxu3 %v1119_v11 }
  0x3f   : > { %536 = vmatmul.bf16.gmra.mxu0 %v1096_v12  ;;  %576 = vmatmul.bf16.gmra.mxu1 %v1104_v13 }
  0x40   : > { %616 = vmatmul.bf16.gmra.mxu2 %v1112_v14  ;;  %656 = vmatmul.bf16.gmra.mxu3 %v1120_v15 }
  0x4f   : > { %541 = vmatmul.bf16.gmra.mxu0 %v1097_v16  ;;  %581 = vmatmul.bf16.gmra.mxu1 %v1105_v17 }
  0x50   : > { %621 = vmatmul.bf16.gmra.mxu2 %v1113_v18  ;;  %661 = vmatmul.bf16.gmra.mxu3 %v1121_v19 }
  0x5f   : > { %546 = vmatmul.bf16.gmra.mxu0 %v1098_v20  ;;  %586 = vmatmul.bf16.gmra.mxu1 %v1106_v21 }
  0x60   : > { %626 = vmatmul.bf16.gmra.mxu2 %v1114_v22  ;;  %666 = vmatmul.bf16.gmra.mxu3 %v1122_v23 }
  0x6f   : > { %551 = vmatmul.bf16.gmra.mxu0 %v1099_v24  ;;  %591 = vmatmul.bf16.gmra.mxu1 %v1107_v25 }
  0x70   : > { %631 = vmatmul.bf16.gmra.mxu2 %v1115_v26  ;;  %671 = vmatmul.bf16.gmra.mxu3 %v1123_v27 }
  0x7f   : > { %556 = vmatmul.bf16.gmra.mxu0 %v1100_v28  ;;  %596 = vmatmul.bf16.gmra.mxu1 %v1108_v29 }
  0x80   : > { %636 = vmatmul.bf16.gmra.mxu2 %v1116_v30  ;;  %676 = vmatmul.bf16.gmra.mxu3 %v1124_v31 }
  0x8f   : > { %561 = vmatmul.bf16.gmra.mxu0 %v1101_v32  ;;  %601 = vmatmul.bf16.gmra.mxu1 %v1109_v33 }
  0x90   : > { %641 = vmatmul.bf16.gmra.mxu2 %v1117_v34  ;;  %681 = vmatmul.bf16.gmra.mxu3 %v1125_v35 }
  0x9f   : > { %566 = vmatmul.bf16.gmra.mxu0 %v1102_v36  ;;  %606 = vmatmul.bf16.gmra.mxu1 %v1110_v37 }
  0xa0   : > { %646 = vmatmul.bf16.gmra.mxu2 %v1118_v38  ;;  %686 = vmatmul.bf16.gmra.mxu3 %v1126_v39 }
  0xac   : > { %v532_v40 = vpop.f32.mrf.mxu0  ;;  %v572_v41 = vpop.f32.mrf.mxu1 }
  0xb3   : > { %v612_v42 = vpop.f32.mrf.mxu2  ;;  %v652_v43 = vpop.f32.mrf.mxu3 }
  0xb4   : > { %v534_v44 = vpop.f32.mrf.mxu0  ;;  %v574_v45 = vpop.f32.mrf.mxu1 }
  0xb5   : > { %v1138_v46 = vpack.c.bf16 %v534_v44, %v532_v40  ;;  %v1178_v47 = vpack.c.bf16 %v574_v45, %v572_v41 }
  0xb7   : > { %1139 = vst [vmem:[%s1492_s23] sm:$0xff] %v1138_v46  }
  0xb8   : > { %1302 = vst [vmem:[%s1492_s23 + $0x40] sm:$0xff] %v1178_v47  }
  0xbb   : > { %v614_v48 = vpop.f32.mrf.mxu2  ;;  %v654_v49 = vpop.f32.mrf.mxu3 }
  0xbc   : > { %v1218_v50 = vpack.c.bf16 %v614_v48, %v612_v42  ;;  %v1258_v51 = vpack.c.bf16 %v654_v49, %v652_v43  ;;  %v537_v52 = vpop.f32.mrf.mxu0  ;;  %v577_v53 = vpop.f32.mrf.mxu1 }
  0xbe   : > { %1310 = vst [vmem:[%s1492_s23 + $0x80] sm:$0xff] %v1218_v50  }
  0xbf   : > { %1318 = vst [vmem:[%s1492_s23 + $0xc0] sm:$0xff] %v1258_v51  }
  0xc3   : > { %v617_v54 = vpop.f32.mrf.mxu2  ;;  %v657_v55 = vpop.f32.mrf.mxu3 }
  0xc4   : > { %v539_v56 = vpop.f32.mrf.mxu0  ;;  %v579_v57 = vpop.f32.mrf.mxu1 }
  0xc5   : > { %v1143_v58 = vpack.c.bf16 %v539_v56, %v537_v52  ;;  %v1183_v59 = vpack.c.bf16 %v579_v57, %v577_v53 }
  0xc7   : > { %1295 = vst [vmem:[%s1492_s23 + $0x8] sm:$0xff] %v1143_v58  }
  0xc8   : > { %1303 = vst [vmem:[%s1492_s23 + $0x48] sm:$0xff] %v1183_v59  }
  0xcb   : > { %v619_v60 = vpop.f32.mrf.mxu2  ;;  %v659_v61 = vpop.f32.mrf.mxu3 }
  0xcc   : > { %v1223_v62 = vpack.c.bf16 %v619_v60, %v617_v54  ;;  %v1263_v63 = vpack.c.bf16 %v659_v61, %v657_v55  ;;  %v542_v0 = vpop.f32.mrf.mxu0  ;;  %v582_v1 = vpop.f32.mrf.mxu1 }
  0xce   : > { %1311 = vst [vmem:[%s1492_s23 + $0x88] sm:$0xff] %v1223_v62  }
  0xcf   : > { %1319 = vst [vmem:[%s1492_s23 + $0xc8] sm:$0xff] %v1263_v63  }
  0xd3   : > { %v622_v2 = vpop.f32.mrf.mxu2  ;;  %v662_v3 = vpop.f32.mrf.mxu3 }
  0xd4   : > { %v544_v4 = vpop.f32.mrf.mxu0  ;;  %v584_v5 = vpop.f32.mrf.mxu1 }
  0xd5   : > { %v1148_v6 = vpack.c.bf16 %v544_v4, %v542_v0  ;;  %v1188_v7 = vpack.c.bf16 %v584_v5, %v582_v1 }
  0xd7   : > { %1296 = vst [vmem:[%s1492_s23 + $0x10] sm:$0xff] %v1148_v6  }
  0xd8   : > { %1304 = vst [vmem:[%s1492_s23 + $0x50] sm:$0xff] %v1188_v7  }
  0xdb   : > { %v624_v8 = vpop.f32.mrf.mxu2  ;;  %v664_v9 = vpop.f32.mrf.mxu3 }
  0xdc   : > { %v1228_v10 = vpack.c.bf16 %v624_v8, %v622_v2  ;;  %v1268_v11 = vpack.c.bf16 %v664_v9, %v662_v3  ;;  %v547_v12 = vpop.f32.mrf.mxu0  ;;  %v587_v13 = vpop.f32.mrf.mxu1 }
  0xde   : > { %1312 = vst [vmem:[%s1492_s23 + $0x90] sm:$0xff] %v1228_v10  }
  0xdf   : > { %1320 = vst [vmem:[%s1492_s23 + $0xd0] sm:$0xff] %v1268_v11  }
  0xe3   : > { %v627_v14 = vpop.f32.mrf.mxu2  ;;  %v667_v15 = vpop.f32.mrf.mxu3 }
  0xe4   : > { %v549_v16 = vpop.f32.mrf.mxu0  ;;  %v589_v17 = vpop.f32.mrf.mxu1 }
  0xe5   : > { %v1153_v18 = vpack.c.bf16 %v549_v16, %v547_v12  ;;  %v1193_v19 = vpack.c.bf16 %v589_v17, %v587_v13 }
  0xe7   : > { %1297 = vst [vmem:[%s1492_s23 + $0x18] sm:$0xff] %v1153_v18  }
  0xe8   : > { %1305 = vst [vmem:[%s1492_s23 + $0x58] sm:$0xff] %v1193_v19  }
  0xeb   : > { %v629_v20 = vpop.f32.mrf.mxu2  ;;  %v669_v21 = vpop.f32.mrf.mxu3 }
  0xec   : > { %v1233_v22 = vpack.c.bf16 %v629_v20, %v627_v14  ;;  %v1273_v23 = vpack.c.bf16 %v669_v21, %v667_v15  ;;  %v552_v24 = vpop.f32.mrf.mxu0  ;;  %v592_v25 = vpop.f32.mrf.mxu1 }
  0xee   : > { %1313 = vst [vmem:[%s1492_s23 + $0x98] sm:$0xff] %v1233_v22  }
  0xef   : > { %1321 = vst [vmem:[%s1492_s23 + $0xd8] sm:$0xff] %v1273_v23  }
  0xf3   : > { %v632_v26 = vpop.f32.mrf.mxu2  ;;  %v672_v27 = vpop.f32.mrf.mxu3 }
  0xf4   : > { %v554_v28 = vpop.f32.mrf.mxu0  ;;  %v594_v29 = vpop.f32.mrf.mxu1 }
  0xf5   : > { %v1158_v30 = vpack.c.bf16 %v554_v28, %v552_v24  ;;  %v1198_v31 = vpack.c.bf16 %v594_v29, %v592_v25 }
  0xf7   : > { %1298 = vst [vmem:[%s1492_s23 + $0x20] sm:$0xff] %v1158_v30  }
  0xf8   : > { %1306 = vst [vmem:[%s1492_s23 + $0x60] sm:$0xff] %v1198_v31  }
  0xfb   : > { %v634_v32 = vpop.f32.mrf.mxu2  ;;  %v674_v33 = vpop.f32.mrf.mxu3 }
  0xfc   : > { %v1238_v34 = vpack.c.bf16 %v634_v32, %v632_v26  ;;  %v1278_v35 = vpack.c.bf16 %v674_v33, %v672_v27  ;;  %v557_v36 = vpop.f32.mrf.mxu0  ;;  %v597_v37 = vpop.f32.mrf.mxu1 }
  0xfe   : > { %1314 = vst [vmem:[%s1492_s23 + $0xa0] sm:$0xff] %v1238_v34  }
  0xff   : > { %1322 = vst [vmem:[%s1492_s23 + $0xe0] sm:$0xff] %v1278_v35  }
 0x103   : > { %v637_v38 = vpop.f32.mrf.mxu2  ;;  %v677_v39 = vpop.f32.mrf.mxu3 }
 0x104   : > { %v559_v40 = vpop.f32.mrf.mxu0  ;;  %v599_v41 = vpop.f32.mrf.mxu1 }
 0x105   : > { %v1163_v42 = vpack.c.bf16 %v559_v40, %v557_v36  ;;  %v1203_v43 = vpack.c.bf16 %v599_v41, %v597_v37 }
 0x107   : > { %1299 = vst [vmem:[%s1492_s23 + $0x28] sm:$0xff] %v1163_v42  }
 0x108   : > { %1307 = vst [vmem:[%s1492_s23 + $0x68] sm:$0xff] %v1203_v43  }
 0x10b   : > { %v639_v44 = vpop.f32.mrf.mxu2  ;;  %v679_v45 = vpop.f32.mrf.mxu3 }
 0x10c   : > { %v1243_v46 = vpack.c.bf16 %v639_v44, %v637_v38  ;;  %v1283_v47 = vpack.c.bf16 %v679_v45, %v677_v39  ;;  %v562_v48 = vpop.f32.mrf.mxu0  ;;  %v602_v49 = vpop.f32.mrf.mxu1 }
 0x10e   : > { %1315 = vst [vmem:[%s1492_s23 + $0xa8] sm:$0xff] %v1243_v46  }
 0x10f   : > { %1323 = vst [vmem:[%s1492_s23 + $0xe8] sm:$0xff] %v1283_v47  }
 0x113   : > { %v642_v50 = vpop.f32.mrf.mxu2  ;;  %v682_v51 = vpop.f32.mrf.mxu3 }
 0x114   : > { %v564_v52 = vpop.f32.mrf.mxu0  ;;  %v604_v53 = vpop.f32.mrf.mxu1 }
 0x115   : > { %v1168_v54 = vpack.c.bf16 %v564_v52, %v562_v48  ;;  %v1208_v55 = vpack.c.bf16 %v604_v53, %v602_v49 }
 0x117   : > { %1300 = vst [vmem:[%s1492_s23 + $0x30] sm:$0xff] %v1168_v54  }
 0x118   : > { %1308 = vst [vmem:[%s1492_s23 + $0x70] sm:$0xff] %v1208_v55  }
 0x11b   : > { %v644_v56 = vpop.f32.mrf.mxu2  ;;  %v684_v57 = vpop.f32.mrf.mxu3 }
 0x11c   : > { %v1248_v58 = vpack.c.bf16 %v644_v56, %v642_v50  ;;  %v1288_v59 = vpack.c.bf16 %v684_v57, %v682_v51  ;;  %v567_v60 = vpop.f32.mrf.mxu0  ;;  %v607_v61 = vpop.f32.mrf.mxu1 }
 0x11e   : > { %1316 = vst [vmem:[%s1492_s23 + $0xb0] sm:$0xff] %v1248_v58  }
 0x11f   : > { %1324 = vst [vmem:[%s1492_s23 + $0xf0] sm:$0xff] %v1288_v59  }
 0x123   : > { %v647_v62 = vpop.f32.mrf.mxu2  ;;  %v687_v63 = vpop.f32.mrf.mxu3 }
 0x124   : > { %v569_v0 = vpop.f32.mrf.mxu0  ;;  %v609_v1 = vpop.f32.mrf.mxu1 }
 0x125   : > { %v1173_v2 = vpack.c.bf16 %v569_v0, %v567_v60  ;;  %v1213_v3 = vpack.c.bf16 %v609_v1, %v607_v61 }
 0x127   : > { %1301 = vst [vmem:[%s1492_s23 + $0x38] sm:$0xff] %v1173_v2  }
 0x128   : > { %1309 = vst [vmem:[%s1492_s23 + $0x78] sm:$0xff] %v1213_v3  }
 0x12b   : > { %v649_v4 = vpop.f32.mrf.mxu2  ;;  %v689_v5 = vpop.f32.mrf.mxu3 }
 0x12c   : > { %v1253_v6 = vpack.c.bf16 %v649_v4, %v647_v62  ;;  %v1293_v7 = vpack.c.bf16 %v689_v5, %v687_v63 }
 0x12e   : > { %1317 = vst [vmem:[%s1492_s23 + $0xb8] sm:$0xff] %v1253_v6  }
 0x12f   : > { %1325 = vst [vmem:[%s1492_s23 + $0xf8] sm:$0xff] %v1293_v7  }
 0x130 PF: > { %s12_s11 = sadd.s32 1, %s1396_s11   ;;  %s1538_s9 = smov %s1392_s10 }
 0x131   : > { %p9_p5 = scmp.ge.s32.totalorder %s12_s11, 6   ;;  %s1539_s10 = smov %s1541_s12 }
 0x133   :  { %11 = sbr.rel (!%p9_p5) target bundleno = 2 (0x2), region = 61 }

</bundles_post_ra>
